<compile_context>
chip_gen: v7x
topology: tpu7x:2x2x1
jax: 0.10.0
libtpu: 0.0.40
codegen_flags: <defaults>
</compile_context>

<pallas_src>
import math
import jax
import jax.numpy as jnp
from jax import lax
from jax.experimental import pallas as pl
from jax.experimental.pallas import tpu as pltpu

CODE_PAD = 128  # lane-tile padded width for each of mean / log_std


def vgae_kernel(x_ref, adj_ref, wf_ref, bf_ref, bms_ref, noise_ref,
                z_ref, rec_ref):
    # Per-grid-step refs:
    #   x_ref     [G*N, F]   bf16   node features, G graphs stacked on rows
    #   adj_ref   [G, N, N]  bf16   normalized adjacency per graph
    #   wf_ref    [F, 2*CP]  bf16   folded weight  W1 @ [Wm | Ws]  (zero-padded)
    #   bf_ref    [1, 2*CP]  f32    folded bias    b1 @ [Wm | Ws]
    #   bms_ref   [1, 2*CP]  f32    head bias      [bm | bs]       (zero-padded)
    #   noise_ref [G*N, C]   f32
    #   z_ref     [G*N, C]   f32 out
    #   rec_ref   [G, N, N]  f32 out
    G, N, _ = adj_ref.shape
    C = noise_ref.shape[-1]
    CP = CODE_PAD

    # Stage A: one dense-weight matmul over all G graphs (M = G*N rows).
    s = jnp.dot(x_ref[...], wf_ref[...],
                preferred_element_type=jnp.float32).astype(jnp.bfloat16)  # [G*N, 2CP]

    bfv = bf_ref[...]      # [1, 2CP]
    bmsv = bms_ref[...]    # [1, 2CP]

    # Stage B: per-graph adjacency matmuls + decoder; static unroll keeps every
    # index / slice static (G is small).
    for g in range(G):
        rows = slice(g * N, (g + 1) * N)
        adj_g = adj_ref[g]                                         # [N, N] bf16

        t = jnp.dot(adj_g, s[rows, :],
                    preferred_element_type=jnp.float32) + bfv      # [N, 2CP] f32
        ms = jnp.dot(adj_g, t.astype(jnp.bfloat16),
                     preferred_element_type=jnp.float32) + bmsv    # [N, 2CP] f32

        mean = ms[:, :C]            # lane-tile aligned (offset 0)
        log_std = ms[:, CP:CP + C]  # lane-tile aligned (offset 128)

        # Reparameterization in f32: z = mean + noise * exp(log_std).
        z = mean + noise_ref[rows, :] * jnp.exp(log_std)           # [N, C] f32
        z_ref[rows, :] = z

        # Decoder: sigmoid(z @ z^T).  Contract the last dims of (z, z) so no
        # RHS transpose is materialized; K=C=16 keeps this matmul tiny, so it
        # stays f32 for accuracy at negligible MXU cost.
        logits = lax.dot_general(z, z,
                                 dimension_numbers=(((1,), (1,)), ((), ())),
                                 preferred_element_type=jnp.float32)
        # sigmoid = 1 / (1 + exp(-x)): exp + approx reciprocal both hit the EUP.
        rec_ref[g] = pl.reciprocal(1.0 + jnp.exp(-logits), approx=True)


def vgae_forward(x, adj, params, noise, *, graphs_per_step=4):
    """Batched VGAE forward.

    x:     [B, N, F]   node features per graph
    adj:   [B, N, N]   (normalized) adjacency per graph
    noise: [B, N, C]   reparameterization noise per graph
    Returns (z [B, N, C], adj_rec [B, N, N]).
    """
    B, N, F = x.shape
    C = params["wm"].shape[1]
    CP = CODE_PAD

    # Graphs per grid step: largest divisor of B not exceeding graphs_per_step.
    G = min(graphs_per_step, B)
    while B % G:
        G -= 1
    steps = B // G

    hi = jax.lax.Precision.HIGHEST
    f32 = jnp.float32

    def pad_cols(a, width):
        return jnp.pad(a, ((0, 0), (0, width - a.shape[1])))

    # Fused mean/log_std head, each zero-padded to CP lanes: [H, 2*CP].
    w_ms = jnp.concatenate([pad_cols(params["wm"], CP),
                            pad_cols(params["ws"], CP)], axis=1)
    b_ms = jnp.concatenate([pad_cols(params["bm"], CP),
                            pad_cols(params["bs"], CP)], axis=1).astype(f32)
    # Fold GCN layer 1 into the head (encoder is linear -> exact algebra).
    wf = jnp.dot(params["w1"], w_ms, precision=hi).astype(jnp.bfloat16)  # [F, 2CP]
    bf = jnp.dot(params["b1"], w_ms, precision=hi).astype(f32)           # [1, 2CP]

    # bf16 MXU inputs (f32 accumulation in-kernel); graphs stacked on rows.
    x2 = x.reshape(B * N, F).astype(jnp.bfloat16)
    adj_bf = adj.astype(jnp.bfloat16)
    noise2 = noise.reshape(B * N, C).astype(f32)

    flops = 2 * B * N * (F * 2 * CP + 2 * N * 2 * CP + N * C)
    transcendentals = B * N * (C + N)
    bytes_accessed = (2 * B * N * F + 2 * B * N * N        # x, adj (bf16 in)
                      + 4 * B * N * C                      # noise in
                      + 2 * F * 2 * CP + 4 * 2 * 2 * CP    # weights / biases
                      + 4 * B * N * C + 4 * B * N * N)     # z, rec out

    in_specs = [
        pl.BlockSpec((G * N, F), lambda b: (b, 0)),        # x
        pl.BlockSpec((G, N, N), lambda b: (b, 0, 0)),      # adj
        pl.BlockSpec((F, 2 * CP), lambda b: (0, 0)),       # folded weight (shared)
        pl.BlockSpec((1, 2 * CP), lambda b: (0, 0)),       # folded layer-1 bias
        pl.BlockSpec((1, 2 * CP), lambda b: (0, 0)),       # head bias
        pl.BlockSpec((G * N, C), lambda b: (b, 0)),        # noise (true width)
    ]
    out_specs = (
        pl.BlockSpec((G * N, C), lambda b: (b, 0)),        # z (true width)
        pl.BlockSpec((G, N, N), lambda b: (b, 0, 0)),      # adj_rec
    )
    out_shapes = (
        jax.ShapeDtypeStruct((B * N, C), f32),
        jax.ShapeDtypeStruct((B, N, N), f32),
    )

    z_flat, adj_rec = pl.pallas_call(
        vgae_kernel,
        out_shape=out_shapes,
        grid=(steps,),
        in_specs=in_specs,
        out_specs=out_specs,
        compiler_params=pltpu.CompilerParams(
            dimension_semantics=("parallel",)),   # shards steps across TCs on v7x
        cost_estimate=pl.CostEstimate(flops=int(flops),
                                      transcendentals=int(transcendentals),
                                      bytes_accessed=int(bytes_accessed)),
    )(x2, adj_bf, wf, bf, b_ms, noise2)

    return z_flat.reshape(B, N, C), adj_rec


def init_gcn_params(key, in_feats, out_feats):
    # Matches PyTorch GraphConvolutionLayer.reset_parameters:
    # uniform(-stdv, stdv) with stdv = 1/sqrt(out_feats). Bias kept [1, out].
    stdv = 1.0 / math.sqrt(out_feats)
    kw, kb = jax.random.split(key)
    w = jax.random.uniform(kw, (in_feats, out_feats), jnp.float32,
                           minval=-stdv, maxval=stdv)
    b = jax.random.uniform(kb, (1, out_feats), jnp.float32,
                           minval=-stdv, maxval=stdv)
    return w, b


if __name__ == "__main__":
    # 8 graphs of 128 nodes: grid of 2 steps x 4 graphs/step (even grid keeps
    # both v7x TensorCores fed; N=128 keeps the N x N decoder lane-dense).
    B = 8
    N = 128
    feature_size = 32
    hidden_size = 32
    code_size = 16

    root = jax.random.PRNGKey(0)
    k_x, k_adj, k_g1, k_gm, k_gs, k_noise = jax.random.split(root, 6)

    x = jax.random.normal(k_x, (B, N, feature_size), jnp.float32)

    # Symmetrically-normalized dense adjacency D^{-1/2} A D^{-1/2}.
    a = jax.random.uniform(k_adj, (B, N, N), jnp.float32)
    a = (a + jnp.swapaxes(a, -1, -2)) * 0.5
    deg = jnp.sum(a, axis=-1)
    d_inv_sqrt = 1.0 / jnp.sqrt(deg)
    adj = a * d_inv_sqrt[:, :, None] * d_inv_sqrt[:, None, :]

    w1, b1 = init_gcn_params(k_g1, feature_size, hidden_size)
    wm, bm = init_gcn_params(k_gm, hidden_size, code_size)
    ws, bs = init_gcn_params(k_gs, hidden_size, code_size)
    params = {"w1": w1, "b1": b1, "wm": wm, "bm": bm, "ws": ws, "bs": bs}

    # th.randn(x.size(0), code_size) equivalent: deterministic, passed in.
    noise = jax.random.normal(k_noise, (B, N, code_size), jnp.float32)

    z, adj_rec = jax.jit(vgae_forward)(x, adj, params, noise)
    jax.block_until_ready((z, adj_rec))

    # Plain-JAX f32 reference (HIGHEST precision), same math per graph.
    def mm(a_, b_):
        return jnp.dot(a_, b_, precision=jax.lax.Precision.HIGHEST)

    def ref_one(xg, adjg, ng):
        h = mm(adjg, mm(xg, w1)) + b1
        mean = mm(adjg, mm(h, wm)) + bm
        log_std = mm(adjg, mm(h, ws)) + bs
        zg = mean + ng * jnp.exp(log_std)
        rec = jax.nn.sigmoid(mm(zg, zg.T))
        return zg, rec

    z_ref, rec_ref = jax.vmap(ref_one)(x, adj, noise)
    assert z.shape == (B, N, code_size) and adj_rec.shape == (B, N, N)
    # bf16 MXU operands (f32 accumulation) -> tolerances loosened vs. the pure
    # f32 HIGHEST reference, per the chosen precision policy.
    assert jnp.allclose(z, z_ref, atol=2e-2, rtol=2e-2)
    assert jnp.allclose(adj_rec, rec_ref, atol=5e-2, rtol=5e-2)

    print("KERNEL_OK")
</pallas_src>

<mosaic_0001>
module attributes {stable_mosaic.version = 11 : i64} {
  func.func @vgae_kernel(%arg0: i32, %arg1: memref<512x32xbf16, #tpu.memory_space<vmem>>, %arg2: memref<4x128x128xbf16, #tpu.memory_space<vmem>>, %arg3: memref<32x256xbf16, #tpu.memory_space<vmem>>, %arg4: memref<1x256xf32, #tpu.memory_space<vmem>>, %arg5: memref<1x256xf32, #tpu.memory_space<vmem>>, %arg6: memref<512x16xf32, #tpu.memory_space<vmem>>, %arg7: memref<512x16xf32, #tpu.memory_space<vmem>>, %arg8: memref<4x128x128xf32, #tpu.memory_space<vmem>>) attributes {dimension_semantics = [#tpu.dimension_semantics<parallel>], iteration_bounds = array<i64: 2>, scalar_prefetch = 0 : i64, scratch_operands = 0 : i64, tpu.core_type = #tpu.core_type<tc>, window_params = [{transform_indices = @transform_0, window_bounds = array<i64: 512, 32>}, {transform_indices = @transform_1, window_bounds = array<i64: 4, 128, 128>}, {pipeline_mode = #tpu.pipeline_mode<synchronous>, transform_indices = @transform_2, window_bounds = array<i64: 32, 256>}, {pipeline_mode = #tpu.pipeline_mode<synchronous>, transform_indices = @transform_3, window_bounds = array<i64: 1, 256>}, {pipeline_mode = #tpu.pipeline_mode<synchronous>, transform_indices = @transform_4, window_bounds = array<i64: 1, 256>}, {transform_indices = @transform_5, window_bounds = array<i64: 512, 16>}, {transform_indices = @transform_6, window_bounds = array<i64: 512, 16>}, {transform_indices = @transform_7, window_bounds = array<i64: 4, 128, 128>}]} {
    %c0 = arith.constant 0 : index
    %c0_0 = arith.constant 0 : index
    %0 = vector.load %arg1[%c0, %c0_0] : memref<512x32xbf16, #tpu.memory_space<vmem>>, vector<512x32xbf16>
    %c0_1 = arith.constant 0 : index
    %c0_2 = arith.constant 0 : index
    %1 = vector.load %arg3[%c0_1, %c0_2] : memref<32x256xbf16, #tpu.memory_space<vmem>>, vector<32x256xbf16>
    %cst = arith.constant dense<0.000000e+00> : vector<512x256xf32>
    %2 = tpu.matmul %0, %1, %cst {dimension_numbers = #tpu.dot_dimension_numbers<[1], [0], [0], [1], [0, 0, 1, 1], [], []>} : vector<512x32xbf16>, vector<32x256xbf16>, vector<512x256xf32> -> vector<512x256xf32>
    %3 = arith.truncf %2 : vector<512x256xf32> to vector<512x256xbf16>
    %c0_3 = arith.constant 0 : index
    %c0_4 = arith.constant 0 : index
    %4 = vector.load %arg4[%c0_3, %c0_4] : memref<1x256xf32, #tpu.memory_space<vmem>>, vector<1x256xf32>
    %c0_5 = arith.constant 0 : index
    %c0_6 = arith.constant 0 : index
    %5 = vector.load %arg5[%c0_5, %c0_6] : memref<1x256xf32, #tpu.memory_space<vmem>>, vector<1x256xf32>
    %c0_7 = arith.constant 0 : index
    %c0_8 = arith.constant 0 : index
    %c0_9 = arith.constant 0 : index
    %6 = vector.load %arg2[%c0_7, %c0_8, %c0_9] : memref<4x128x128xbf16, #tpu.memory_space<vmem>>, vector<1x128x128xbf16>
    %7 = vector.shape_cast %6 : vector<1x128x128xbf16> to vector<128x128xbf16>
    %8 = vector.extract_strided_slice %3 {offsets = [0, 0], sizes = [128, 256], strides = [1, 1]} : vector<512x256xbf16> to vector<128x256xbf16>
    %cst_10 = arith.constant dense<0.000000e+00> : vector<128x256xf32>
    %9 = tpu.matmul %7, %8, %cst_10 {dimension_numbers = #tpu.dot_dimension_numbers<[1], [0], [0], [1], [0, 0, 1, 1], [], []>} : vector<128x128xbf16>, vector<128x256xbf16>, vector<128x256xf32> -> vector<128x256xf32>
    %10 = vector.broadcast %4 : vector<1x256xf32> to vector<128x256xf32>
    %11 = arith.addf %9, %10 : vector<128x256xf32>
    %12 = arith.truncf %11 : vector<128x256xf32> to vector<128x256xbf16>
    %cst_11 = arith.constant dense<0.000000e+00> : vector<128x256xf32>
    %13 = tpu.matmul %7, %12, %cst_11 {dimension_numbers = #tpu.dot_dimension_numbers<[1], [0], [0], [1], [0, 0, 1, 1], [], []>} : vector<128x128xbf16>, vector<128x256xbf16>, vector<128x256xf32> -> vector<128x256xf32>
    %14 = vector.broadcast %5 : vector<1x256xf32> to vector<128x256xf32>
    %15 = arith.addf %13, %14 : vector<128x256xf32>
    %16 = vector.extract_strided_slice %15 {offsets = [0, 0], sizes = [128, 16], strides = [1, 1]} : vector<128x256xf32> to vector<128x16xf32>
    %17 = vector.extract_strided_slice %15 {offsets = [0, 128], sizes = [128, 16], strides = [1, 1]} : vector<128x256xf32> to vector<128x16xf32>
    %c0_12 = arith.constant 0 : index
    %c0_13 = arith.constant 0 : index
    %18 = vector.load %arg6[%c0_12, %c0_13] : memref<512x16xf32, #tpu.memory_space<vmem>>, vector<128x16xf32>
    %19 = math.exp %17 : vector<128x16xf32>
    %20 = arith.mulf %18, %19 : vector<128x16xf32>
    %21 = arith.addf %16, %20 : vector<128x16xf32>
    %c0_14 = arith.constant 0 : index
    %c0_15 = arith.constant 0 : index
    %22 = vector.load %arg7[%c0_14, %c0_15] : memref<512x16xf32, #tpu.memory_space<vmem>>, vector<128x16xf32>
    tpu.vector_store %arg7[%c0_14, %c0_15], %21 {strides = array<i32>} : memref<512x16xf32, #tpu.memory_space<vmem>>, vector<128x16xf32>,
    %cst_16 = arith.constant dense<0.000000e+00> : vector<128x128xf32>
    %23 = tpu.matmul %21, %21, %cst_16 {dimension_numbers = #tpu.dot_dimension_numbers<[1], [1], [0], [0], [0, 0, 1, 0], [], []>} : vector<128x16xf32>, vector<128x16xf32>, vector<128x128xf32> -> vector<128x128xf32>
    %cst_17 = arith.constant 0.000000e+00 : f32
    %24 = vector.broadcast %cst_17 : f32 to vector<128x128xf32>
    %25 = arith.subf %24, %23 : vector<128x128xf32>
    %26 = math.exp %25 : vector<128x128xf32>
    %cst_18 = arith.constant 1.000000e+00 : f32
    %27 = vector.broadcast %cst_18 : f32 to vector<128x128xf32>
    %28 = arith.addf %27, %26 : vector<128x128xf32>
    %29 = tpu.reciprocal %28 {approx = true} : vector<128x128xf32> -> vector<128x128xf32>
    %c0_19 = arith.constant 0 : index
    %c0_20 = arith.constant 0 : index
    %c0_21 = arith.constant 0 : index
    %30 = vector.load %arg8[%c0_19, %c0_20, %c0_21] : memref<4x128x128xf32, #tpu.memory_space<vmem>>, vector<1x128x128xf32>
    %31 = vector.shape_cast %30 : vector<1x128x128xf32> to vector<128x128xf32>
    %32 = vector.shape_cast %29 : vector<128x128xf32> to vector<1x128x128xf32>
    tpu.vector_store %arg8[%c0_19, %c0_20, %c0_21], %32 {strides = array<i32>} : memref<4x128x128xf32, #tpu.memory_space<vmem>>, vector<1x128x128xf32>,
    %c1 = arith.constant 1 : index
    %c0_22 = arith.constant 0 : index
    %c0_23 = arith.constant 0 : index
    %33 = vector.load %arg2[%c1, %c0_22, %c0_23] : memref<4x128x128xbf16, #tpu.memory_space<vmem>>, vector<1x128x128xbf16>
    %34 = vector.shape_cast %33 : vector<1x128x128xbf16> to vector<128x128xbf16>
    %35 = vector.extract_strided_slice %3 {offsets = [128, 0], sizes = [128, 256], strides = [1, 1]} : vector<512x256xbf16> to vector<128x256xbf16>
    %cst_24 = arith.constant dense<0.000000e+00> : vector<128x256xf32>
    %36 = tpu.matmul %34, %35, %cst_24 {dimension_numbers = #tpu.dot_dimension_numbers<[1], [0], [0], [1], [0, 0, 1, 1], [], []>} : vector<128x128xbf16>, vector<128x256xbf16>, vector<128x256xf32> -> vector<128x256xf32>
    %37 = vector.broadcast %4 : vector<1x256xf32> to vector<128x256xf32>
    %38 = arith.addf %36, %37 : vector<128x256xf32>
    %39 = arith.truncf %38 : vector<128x256xf32> to vector<128x256xbf16>
    %cst_25 = arith.constant dense<0.000000e+00> : vector<128x256xf32>
    %40 = tpu.matmul %34, %39, %cst_25 {dimension_numbers = #tpu.dot_dimension_numbers<[1], [0], [0], [1], [0, 0, 1, 1], [], []>} : vector<128x128xbf16>, vector<128x256xbf16>, vector<128x256xf32> -> vector<128x256xf32>
    %41 = vector.broadcast %5 : vector<1x256xf32> to vector<128x256xf32>
    %42 = arith.addf %40, %41 : vector<128x256xf32>
    %43 = vector.extract_strided_slice %42 {offsets = [0, 0], sizes = [128, 16], strides = [1, 1]} : vector<128x256xf32> to vector<128x16xf32>
    %44 = vector.extract_strided_slice %42 {offsets = [0, 128], sizes = [128, 16], strides = [1, 1]} : vector<128x256xf32> to vector<128x16xf32>
    %c128 = arith.constant 128 : index
    %c0_26 = arith.constant 0 : index
    %45 = vector.load %arg6[%c128, %c0_26] : memref<512x16xf32, #tpu.memory_space<vmem>>, vector<128x16xf32>
    %46 = math.exp %44 : vector<128x16xf32>
    %47 = arith.mulf %45, %46 : vector<128x16xf32>
    %48 = arith.addf %43, %47 : vector<128x16xf32>
    %c128_27 = arith.constant 128 : index
    %c0_28 = arith.constant 0 : index
    %49 = vector.load %arg7[%c128_27, %c0_28] : memref<512x16xf32, #tpu.memory_space<vmem>>, vector<128x16xf32>
    tpu.vector_store %arg7[%c128_27, %c0_28], %48 {strides = array<i32>} : memref<512x16xf32, #tpu.memory_space<vmem>>, vector<128x16xf32>,
    %cst_29 = arith.constant dense<0.000000e+00> : vector<128x128xf32>
    %50 = tpu.matmul %48, %48, %cst_29 {dimension_numbers = #tpu.dot_dimension_numbers<[1], [1], [0], [0], [0, 0, 1, 0], [], []>} : vector<128x16xf32>, vector<128x16xf32>, vector<128x128xf32> -> vector<128x128xf32>
    %cst_30 = arith.constant 0.000000e+00 : f32
    %51 = vector.broadcast %cst_30 : f32 to vector<128x128xf32>
    %52 = arith.subf %51, %50 : vector<128x128xf32>
    %53 = math.exp %52 : vector<128x128xf32>
    %cst_31 = arith.constant 1.000000e+00 : f32
    %54 = vector.broadcast %cst_31 : f32 to vector<128x128xf32>
    %55 = arith.addf %54, %53 : vector<128x128xf32>
    %56 = tpu.reciprocal %55 {approx = true} : vector<128x128xf32> -> vector<128x128xf32>
    %c1_32 = arith.constant 1 : index
    %c0_33 = arith.constant 0 : index
    %c0_34 = arith.constant 0 : index
    %57 = vector.load %arg8[%c1_32, %c0_33, %c0_34] : memref<4x128x128xf32, #tpu.memory_space<vmem>>, vector<1x128x128xf32>
    %58 = vector.shape_cast %57 : vector<1x128x128xf32> to vector<128x128xf32>
    %59 = vector.shape_cast %56 : vector<128x128xf32> to vector<1x128x128xf32>
    tpu.vector_store %arg8[%c1_32, %c0_33, %c0_34], %59 {strides = array<i32>} : memref<4x128x128xf32, #tpu.memory_space<vmem>>, vector<1x128x128xf32>,
    %c2 = arith.constant 2 : index
    %c0_35 = arith.constant 0 : index
    %c0_36 = arith.constant 0 : index
    %60 = vector.load %arg2[%c2, %c0_35, %c0_36] : memref<4x128x128xbf16, #tpu.memory_space<vmem>>, vector<1x128x128xbf16>
    %61 = vector.shape_cast %60 : vector<1x128x128xbf16> to vector<128x128xbf16>
    %62 = vector.extract_strided_slice %3 {offsets = [256, 0], sizes = [128, 256], strides = [1, 1]} : vector<512x256xbf16> to vector<128x256xbf16>
    %cst_37 = arith.constant dense<0.000000e+00> : vector<128x256xf32>
    %63 = tpu.matmul %61, %62, %cst_37 {dimension_numbers = #tpu.dot_dimension_numbers<[1], [0], [0], [1], [0, 0, 1, 1], [], []>} : vector<128x128xbf16>, vector<128x256xbf16>, vector<128x256xf32> -> vector<128x256xf32>
    %64 = vector.broadcast %4 : vector<1x256xf32> to vector<128x256xf32>
    %65 = arith.addf %63, %64 : vector<128x256xf32>
    %66 = arith.truncf %65 : vector<128x256xf32> to vector<128x256xbf16>
    %cst_38 = arith.constant dense<0.000000e+00> : vector<128x256xf32>
    %67 = tpu.matmul %61, %66, %cst_38 {dimension_numbers = #tpu.dot_dimension_numbers<[1], [0], [0], [1], [0, 0, 1, 1], [], []>} : vector<128x128xbf16>, vector<128x256xbf16>, vector<128x256xf32> -> vector<128x256xf32>
    %68 = vector.broadcast %5 : vector<1x256xf32> to vector<128x256xf32>
    %69 = arith.addf %67, %68 : vector<128x256xf32>
    %70 = vector.extract_strided_slice %69 {offsets = [0, 0], sizes = [128, 16], strides = [1, 1]} : vector<128x256xf32> to vector<128x16xf32>
    %71 = vector.extract_strided_slice %69 {offsets = [0, 128], sizes = [128, 16], strides = [1, 1]} : vector<128x256xf32> to vector<128x16xf32>
    %c256 = arith.constant 256 : index
    %c0_39 = arith.constant 0 : index
    %72 = vector.load %arg6[%c256, %c0_39] : memref<512x16xf32, #tpu.memory_space<vmem>>, vector<128x16xf32>
    %73 = math.exp %71 : vector<128x16xf32>
    %74 = arith.mulf %72, %73 : vector<128x16xf32>
    %75 = arith.addf %70, %74 : vector<128x16xf32>
    %c256_40 = arith.constant 256 : index
    %c0_41 = arith.constant 0 : index
    %76 = vector.load %arg7[%c256_40, %c0_41] : memref<512x16xf32, #tpu.memory_space<vmem>>, vector<128x16xf32>
    tpu.vector_store %arg7[%c256_40, %c0_41], %75 {strides = array<i32>} : memref<512x16xf32, #tpu.memory_space<vmem>>, vector<128x16xf32>,
    %cst_42 = arith.constant dense<0.000000e+00> : vector<128x128xf32>
    %77 = tpu.matmul %75, %75, %cst_42 {dimension_numbers = #tpu.dot_dimension_numbers<[1], [1], [0], [0], [0, 0, 1, 0], [], []>} : vector<128x16xf32>, vector<128x16xf32>, vector<128x128xf32> -> vector<128x128xf32>
    %cst_43 = arith.constant 0.000000e+00 : f32
    %78 = vector.broadcast %cst_43 : f32 to vector<128x128xf32>
    %79 = arith.subf %78, %77 : vector<128x128xf32>
    %80 = math.exp %79 : vector<128x128xf32>
    %cst_44 = arith.constant 1.000000e+00 : f32
    %81 = vector.broadcast %cst_44 : f32 to vector<128x128xf32>
    %82 = arith.addf %81, %80 : vector<128x128xf32>
    %83 = tpu.reciprocal %82 {approx = true} : vector<128x128xf32> -> vector<128x128xf32>
    %c2_45 = arith.constant 2 : index
    %c0_46 = arith.constant 0 : index
    %c0_47 = arith.constant 0 : index
    %84 = vector.load %arg8[%c2_45, %c0_46, %c0_47] : memref<4x128x128xf32, #tpu.memory_space<vmem>>, vector<1x128x128xf32>
    %85 = vector.shape_cast %84 : vector<1x128x128xf32> to vector<128x128xf32>
    %86 = vector.shape_cast %83 : vector<128x128xf32> to vector<1x128x128xf32>
    tpu.vector_store %arg8[%c2_45, %c0_46, %c0_47], %86 {strides = array<i32>} : memref<4x128x128xf32, #tpu.memory_space<vmem>>, vector<1x128x128xf32>,
    %c3 = arith.constant 3 : index
    %c0_48 = arith.constant 0 : index
    %c0_49 = arith.constant 0 : index
    %87 = vector.load %arg2[%c3, %c0_48, %c0_49] : memref<4x128x128xbf16, #tpu.memory_space<vmem>>, vector<1x128x128xbf16>
    %88 = vector.shape_cast %87 : vector<1x128x128xbf16> to vector<128x128xbf16>
    %89 = vector.extract_strided_slice %3 {offsets = [384, 0], sizes = [128, 256], strides = [1, 1]} : vector<512x256xbf16> to vector<128x256xbf16>
    %cst_50 = arith.constant dense<0.000000e+00> : vector<128x256xf32>
    %90 = tpu.matmul %88, %89, %cst_50 {dimension_numbers = #tpu.dot_dimension_numbers<[1], [0], [0], [1], [0, 0, 1, 1], [], []>} : vector<128x128xbf16>, vector<128x256xbf16>, vector<128x256xf32> -> vector<128x256xf32>
    %91 = vector.broadcast %4 : vector<1x256xf32> to vector<128x256xf32>
    %92 = arith.addf %90, %91 : vector<128x256xf32>
    %93 = arith.truncf %92 : vector<128x256xf32> to vector<128x256xbf16>
    %cst_51 = arith.constant dense<0.000000e+00> : vector<128x256xf32>
    %94 = tpu.matmul %88, %93, %cst_51 {dimension_numbers = #tpu.dot_dimension_numbers<[1], [0], [0], [1], [0, 0, 1, 1], [], []>} : vector<128x128xbf16>, vector<128x256xbf16>, vector<128x256xf32> -> vector<128x256xf32>
    %95 = vector.broadcast %5 : vector<1x256xf32> to vector<128x256xf32>
    %96 = arith.addf %94, %95 : vector<128x256xf32>
    %97 = vector.extract_strided_slice %96 {offsets = [0, 0], sizes = [128, 16], strides = [1, 1]} : vector<128x256xf32> to vector<128x16xf32>
    %98 = vector.extract_strided_slice %96 {offsets = [0, 128], sizes = [128, 16], strides = [1, 1]} : vector<128x256xf32> to vector<128x16xf32>
    %c384 = arith.constant 384 : index
    %c0_52 = arith.constant 0 : index
    %99 = vector.load %arg6[%c384, %c0_52] : memref<512x16xf32, #tpu.memory_space<vmem>>, vector<128x16xf32>
    %100 = math.exp %98 : vector<128x16xf32>
    %101 = arith.mulf %99, %100 : vector<128x16xf32>
    %102 = arith.addf %97, %101 : vector<128x16xf32>
    %c384_53 = arith.constant 384 : index
    %c0_54 = arith.constant 0 : index
    %103 = vector.load %arg7[%c384_53, %c0_54] : memref<512x16xf32, #tpu.memory_space<vmem>>, vector<128x16xf32>
    tpu.vector_store %arg7[%c384_53, %c0_54], %102 {strides = array<i32>} : memref<512x16xf32, #tpu.memory_space<vmem>>, vector<128x16xf32>,
    %cst_55 = arith.constant dense<0.000000e+00> : vector<128x128xf32>
    %104 = tpu.matmul %102, %102, %cst_55 {dimension_numbers = #tpu.dot_dimension_numbers<[1], [1], [0], [0], [0, 0, 1, 0], [], []>} : vector<128x16xf32>, vector<128x16xf32>, vector<128x128xf32> -> vector<128x128xf32>
    %cst_56 = arith.constant 0.000000e+00 : f32
    %105 = vector.broadcast %cst_56 : f32 to vector<128x128xf32>
    %106 = arith.subf %105, %104 : vector<128x128xf32>
    %107 = math.exp %106 : vector<128x128xf32>
    %cst_57 = arith.constant 1.000000e+00 : f32
    %108 = vector.broadcast %cst_57 : f32 to vector<128x128xf32>
    %109 = arith.addf %108, %107 : vector<128x128xf32>
    %110 = tpu.reciprocal %109 {approx = true} : vector<128x128xf32> -> vector<128x128xf32>
    %c3_58 = arith.constant 3 : index
    %c0_59 = arith.constant 0 : index
    %c0_60 = arith.constant 0 : index
    %111 = vector.load %arg8[%c3_58, %c0_59, %c0_60] : memref<4x128x128xf32, #tpu.memory_space<vmem>>, vector<1x128x128xf32>
    %112 = vector.shape_cast %111 : vector<1x128x128xf32> to vector<128x128xf32>
    %113 = vector.shape_cast %110 : vector<128x128xf32> to vector<1x128x128xf32>
    tpu.vector_store %arg8[%c3_58, %c0_59, %c0_60], %113 {strides = array<i32>} : memref<4x128x128xf32, #tpu.memory_space<vmem>>, vector<1x128x128xf32>,
    return
  }
  func.func @transform_0(%arg0: i32) -> (i32, i32) {
    %c0_i32 = arith.constant 0 : i32
    %c0_i32_0 = arith.constant 0 : i32
    return %arg0, %c0_i32 : i32, i32
  }
  func.func @transform_1(%arg0: i32) -> (i32, i32, i32) {
    %c0_i32 = arith.constant 0 : i32
    %c0_i32_0 = arith.constant 0 : i32
    %c0_i32_1 = arith.constant 0 : i32
    return %arg0, %c0_i32, %c0_i32_0 : i32, i32, i32
  }
  func.func @transform_2(%arg0: i32) -> (i32, i32) {
    %c0_i32 = arith.constant 0 : i32
    %c0_i32_0 = arith.constant 0 : i32
    %c0_i32_1 = arith.constant 0 : i32
    return %c0_i32, %c0_i32_0 : i32, i32
  }
  func.func @transform_3(%arg0: i32) -> (i32, i32) {
    %c0_i32 = arith.constant 0 : i32
    %c0_i32_0 = arith.constant 0 : i32
    %c0_i32_1 = arith.constant 0 : i32
    return %c0_i32, %c0_i32_0 : i32, i32
  }
  func.func @transform_4(%arg0: i32) -> (i32, i32) {
    %c0_i32 = arith.constant 0 : i32
    %c0_i32_0 = arith.constant 0 : i32
    %c0_i32_1 = arith.constant 0 : i32
    return %c0_i32, %c0_i32_0 : i32, i32
  }
  func.func @transform_5(%arg0: i32) -> (i32, i32) {
    %c0_i32 = arith.constant 0 : i32
    %c0_i32_0 = arith.constant 0 : i32
    return %arg0, %c0_i32 : i32, i32
  }
  func.func @transform_6(%arg0: i32) -> (i32, i32) {
    %c0_i32 = arith.constant 0 : i32
    %c0_i32_0 = arith.constant 0 : i32
    return %arg0, %c0_i32 : i32, i32
  }
  func.func @transform_7(%arg0: i32) -> (i32, i32, i32) {
    %c0_i32 = arith.constant 0 : i32
    %c0_i32_0 = arith.constant 0 : i32
    %c0_i32_1 = arith.constant 0 : i32
    return %arg0, %c0_i32, %c0_i32_0 : i32, i32, i32
  }
}

</mosaic_0001>

<bundles_post_ra>
// kernel: vgae_forward.1
= control target key start
LH: loop header
LB: loop body
LE: loop exit
PB: predicated region body
PF: predicated region fallthrough
CT: control target
= control target key end

     0   :  { %13 = vsyncpa [#allocation3], 0  ;;  %s7442_s0 = inlined_call_operand.vmem [shape: bf16[1024,32], index: 0, kind: input, shape index: {}]   ;;  %s7443_s1 = inlined_call_operand.vmem [shape: bf16[8,128,128], index: 1, kind: input, shape index: {}]   ;;  %s7444_s2 = inlined_call_operand.vmem [shape: bf16[32,256], index: 2, kind: input, shape index: {}]   ;;  %s7445_s3 = inlined_call_operand.vmem [shape: f32[1,256], index: 3, kind: input, shape index: {}]   ;;  %s7446_s4 = inlined_call_operand.vmem [shape: f32[1,256], index: 4, kind: input, shape index: {}]   ;;  %s7447_s5 = inlined_call_operand.vmem [shape: f32[1024,16], index: 5, kind: input, shape index: {}]   ;;  %s7448_s6 = inlined_call_operand.vmem [shape: f32[1024,16], index: 6, kind: output, shape index: {0}]   ;;  %s7449_s7 = inlined_call_operand.hbm [shape: f32[8,128,128], index: 7, kind: output, shape index: {1}]  }
   0x1   :  { %15 = vsyncpa [#allocation3 + $0x1], 0  ;;  %s5545_s24 = smov 0   ;;  %s5547_s25 = smov 0  }
   0x2   :  { %s5549_s26 = smov 0   ;;  %s5551_s27 = smov 0  }
   0x3 LB: > { %s5566_s28 = sadd.s32 4294967295, %s5499_s27   ;;  %s4034_s29 = sadd.s32 4294967294, %s5499_s27   ;;  %s5499_s27 = sphi %s5551_s27, %s7574_s27   ;;  %s5495_s26 = sphi %s5549_s26, %s7573_s26   ;;  %s5491_s25 = sphi %s5547_s25, %s7572_s25   ;;  %s5487_s24 = sphi %s5545_s24, %s7571_s24  }
   0x4   : > { %s5570_s30 = sadd.s32 1, %s5499_s27   ;;  %s195_s8 = sadd.s32 1, %s5495_s26 }
   0x5   : > { %s192_s9 = ssub.s32 %s5499_s27, %s5570_s30  ;;  %p205_p0 = scmp.ne.s32.totalorder %s5495_s26, %s5491_s25 }
   0x6   : > { %p193_p1 = scmp.eq.s32.totalorder %s192_s9, 0  ;;  %p206_p2 = scmp.eq.s32.totalorder %s5566_s28, 1 }
   0x7   : > { %p211_p3 = scmp.ne.s32.totalorder %s5491_s25, %s5487_s24  ;;  %p212_p4 = scmp.eq.s32.totalorder %s4034_s29, 1 }
   0x8   : > { %s5581_s10 = scalar_select %p193_p1, %s5495_s26, %s195_s8  }
   0x9   : > { %p5583_p5 = por %p206_p2, %p205_p0  ;;  %p5587_p6 = por %p212_p4, %p211_p3 }
   0xa   : > { %p4037_p7 = scmp.ge.s32.totalorder %s5499_s27, 1  ;;  %p267_p8 = scmp.lt.s32.totalorder %s5499_s27, 3 }
   0xc   : > { %p268_p9 = pnand %p4037_p7, %p267_p8 }
   0xe   : > { %271 = sbr.rel (%p268_p9) target bundleno = 2736 (0xab0), region = 44 }
  0x15   : > { %v4983_v0 = vld [vmem:[%s7444_s2 + $0x4] ss:$8 sps:$4 sm:$0xff]   ;;  %s4039_s15 = sshll.u32 %s5566_s28, 6  ;;  %v4985_v1 = vld [vmem:[%s7444_s2] ss:$8 sps:$4 sm:$0xff]   ;;  %v7450_v2 = vmov 0  }
  0x16   : > { %719 = vmatprep.mubr.bf16.mxu0 %v7450_v2  ;;  %p316_p10 = scmp.lt.s32.totalorder %s4039_s15, 127  ;;  %1213 = vmatprep.mubr.bf16.mxu1 %v7450_v2  ;;  %v4986_v3 = vld [vmem:[%s7444_s2 + $0x14] ss:$8 sps:$4 sm:$0xff]   ;;  %v4988_v4 = vld [vmem:[%s7444_s2 + $0x10] ss:$8 sps:$4 sm:$0xff]   ;;  %vm590_vm0 = vcmask 261120  }
  0x17   : > { %687 = vmatprep.subr.bf16.mxu0 %v4983_v0  ;;  %s4041_s9 = sshll.u32 %s5566_s28, 2  ;;  %vm1514_vm1 = vcmask 130048   ;;  %s312_s16 = sand.u32 1, %s5491_s25  }
  0x18   : > { %688 = vmatpush1.bf16.msra.mxu0 %v4985_v1  ;;  %s7576_s15 = smov (!%p316_p10, %s4039_s15), 127  ;;  %p322_p11 = scmp.lt.s32.totalorder %s4041_s9, 7  ;;  %vm5908_vm2 = vmpackc.low %vm1514_vm1, %vm1514_vm1 }
  0x19   : > { %689 = vmatprep.subr.bf16.mxu0 %v4986_v3  ;;  %s4040_s22 = sshll.u32 %s7576_s15, 2  ;;  %s4038_s18 = sshll.u32 %s312_s16, 9 }
  0x1a   : > { %s5614_s8 = scalar_lea.vmem %s7442_s0, %s4040_s22  ;;  %s7578_s9 = smov (!%p322_p11, %s4041_s9), 7 }
  0x1b   : > { %v4989_v5 = vld [vmem:[%s5614_s8] sm:$0xff]   ;;  %v4990_v6 = vld [vmem:[%s5614_s8 + $0x8] sm:$0xff]   ;;  %v4991_v7 = vld [vmem:[%s5614_s8 + $0x10] sm:$0xff]   ;;  %s4378_s13 = sshll.u32 %s7578_s9, 6  ;;  %s4045_s22 = sshll.u32 %s7576_s15, 3 }
  0x1c   : > { %690 = vmatpush1.bf16.msra.mxu0 %v4988_v4  ;;  %v4992_v8 = vld [vmem:[%s5614_s8 + $0x18] sm:$0xff]   ;;  %v4993_v9 = vld [vmem:[%s5614_s8 + $0x20] sm:$0xff]   ;;  %v4994_v10 = vld [vmem:[%s5614_s8 + $0x28] sm:$0xff]   ;;  %s5644_s17 = scalar_lea.vmem %s7443_s1, %s4378_s13  ;;  %s5882_s9 = scalar_lea.vmem %s7447_s5, %s4045_s22 }
  0x1d   : > { %v4995_v11 = vld [vmem:[%s5614_s8 + $0x30] sm:$0xff]   ;;  %v4996_v12 = vld [vmem:[%s5614_s8 + $0x38] sm:$0xff]   ;;  %v5647_v61 = vld [vmem:[%s5644_s17] sm:$0xff]   ;;  %s5896_s14 = scalar_lea.vmem %s7448_s6, %s4045_s22  ;;  %s6164_s19 = scalar_lea.vmem [#allocation2], %s4038_s18 }
  0x1e   : > { %v5652_v62 = vld [vmem:[%s5644_s17 + $0x8] sm:$0xff]   ;;  %v5657_v63 = vld [vmem:[%s5644_s17 + $0x10] sm:$0xff]   ;;  %v5662_v0 = vld [vmem:[%s5644_s17 + $0x18] sm:$0xff]   ;;  %s7401_s23 = scalar_lea.sflag [#allocation3], %s312_s16  ;;  %s5502_s29 = smov [#allocation2]  }
  0x1f   : > { %4084 = vmatmul.mubr.msk.bf16.vlgmr.msra.gmra.mrb[0].mxu0 %vm590_vm0, %v4989_v5  ;;  %v5667_v1 = vld [vmem:[%s5644_s17 + $0x20] sm:$0xff]   ;;  %v5672_v3 = vld [vmem:[%s5644_s17 + $0x28] sm:$0xff]   ;;  %v5677_v4 = vld [vmem:[%s5644_s17 + $0x30] sm:$0xff]  }
  0x20   : > { %729 = vmatprep.mubr.bf16.mxu0 %v7450_v2  ;;  %v5682_v5 = vld [vmem:[%s5644_s17 + $0x38] sm:$0xff]  }
  0x27   : > { %4085 = vmatmul.mubr.msk.bf16.gmra.mrb[4].mxu0 %vm590_vm0, %v4990_v6  ;;  %v1123_v6 = vlaneseq }
  0x28   : > { %739 = vmatprep.mubr.bf16.mxu0 %v7450_v2 }
  0x2f   : > { %4086 = vmatmul.mubr.msk.bf16.gmra.mrb[8].mxu0 %vm590_vm0, %v4991_v7  ;;  %v5005_v7 = vld [vmem:[%s5614_s8 + $0x40] sm:$0xff]  }
  0x30   : > { %749 = vmatprep.mubr.bf16.mxu0 %v7450_v2 }
  0x37   : > { %4087 = vmatmul.mubr.msk.bf16.gmra.mrb[12].mxu0 %vm590_vm0, %v4992_v8  ;;  %v5688_v8 = vshrl.u32 %v1123_v6, 7 }
  0x38   : > { %759 = vmatprep.mubr.bf16.mxu0 %v7450_v2 }
  0x3f   : > { %4088 = vmatmul.mubr.msk.bf16.gmra.mrb[16].mxu0 %vm590_vm0, %v4993_v9  ;;  %v1125_v9 = vsub.s32 0, %v5688_v8 }
  0x40   : > { %769 = vmatprep.mubr.bf16.mxu0 %v7450_v2 }
  0x47   : > { %4089 = vmatmul.mubr.msk.bf16.gmra.mrb[20].mxu0 %vm590_vm0, %v4994_v10  ;;  %v1104_v10 = vld [vmem:[%s7445_s3] sm:$0x3] }
  0x48   : > { %779 = vmatprep.mubr.bf16.mxu0 %v7450_v2 }
  0x4f   : > { %4090 = vmatmul.mubr.msk.bf16.gmra.mrb[24].mxu0 %vm590_vm0, %v4995_v11  ;;  %v1129_v11 = vsub.s32 1, %v5688_v8 }
  0x50   : > { %789 = vmatprep.mubr.bf16.mxu0 %v7450_v2 }
  0x57   : > { %4091 = vmatmul.mubr.msk.bf16.gmra.mrb[28].mxu0 %vm590_vm0, %v4996_v12  ;;  %v5006_v12 = vld [vmem:[%s5614_s8 + $0x48] sm:$0xff]  }
  0x58   : > { %799 = vmatprep.mubr.bf16.mxu0 %v7450_v2 }
  0x5f   : > { %4092 = vmatmul.mubr.msk.bf16.gmra.mrb[32].mxu0 %vm590_vm0, %v5005_v7  ;;  %v5011_v7 = vld [vmem:[%s5614_s8 + $0x70] sm:$0xff]  }
  0x60   : > { %809 = vmatprep.mubr.bf16.mxu0 %v7450_v2 }
  0x67   : > { %4093 = vmatmul.mubr.msk.bf16.gmra.mrb[36].mxu0 %vm590_vm0, %v5006_v12 }
  0x68   : > { %819 = vmatprep.mubr.bf16.mxu0 %v7450_v2 }
  0xf2   : > { %v721_v13 = vpop.f32.mrb[0].mxu0 }
  0xf3   : > { %v723_v14 = vpop.f32.mrb[1].mxu0 }
  0xf4   : > { %v725_v15 = vpop.f32.mrb[2].mxu0 }
  0xf5   : > { %v1040_v16 = vpack.c.bf16 %v725_v15, %v721_v13  ;;  %v727_v17 = vpop.f32.mrb[3].mxu0  ;;  %v5700_v13 = vrot.slane %v1104_v10, %v1125_v9  ;;  %v5705_v15 = vrot.slane %v1104_v10, %v1129_v11 }
  0xf6   : > { %v1041_v18 = vpack.c.bf16 %v727_v17, %v723_v14 }
  0xf7   : > { %7481 = vst [vmem:[#allocation5_spill] sm:$0xff] %v5700_v13  ;;  %7482 = vst [vmem:[#allocation6_spill] sm:$0xff] %v5705_v15 }
  0xf8   : > { %1181 = vmatprep.subr.bf16.mxu1 %v1041_v18  ;;  %v5007_v18 = vld [vmem:[%s5614_s8 + $0x50] sm:$0xff]  }
  0xf9   : > { %1182 = vmatpush1.bf16.msra.mxu1 %v1040_v16  ;;  %4094 = vmatmul.mubr.msk.bf16.gmra.mrb[40].mxu0 %vm590_vm0, %v5007_v18 }
  0xfa   : > { %v731_v19 = vpop.f32.mrb[4].mxu0  ;;  %829 = vmatprep.mubr.bf16.mxu0 %v7450_v2 }
  0xfb   : > { %v733_v20 = vpop.f32.mrb[5].mxu0 }
  0xfc   : > { %v735_v21 = vpop.f32.mrb[6].mxu0 }
  0xfd   : > { %v1042_v22 = vpack.c.bf16 %v735_v21, %v731_v19  ;;  %v737_v23 = vpop.f32.mrb[7].mxu0 }
  0xfe   : > { %v1043_v24 = vpack.c.bf16 %v737_v23, %v733_v20 }
 0x100   : > { %1183 = vmatprep.subr.bf16.mxu1 %v1043_v24 }
 0x101   : > { %1184 = vmatpush1.bf16.msra.mxu1 %v1042_v22 }
 0x102   : > { %v741_v25 = vpop.f32.mrb[8].mxu0 }
 0x103   : > { %v743_v26 = vpop.f32.mrb[9].mxu0 }
 0x104   : > { %v745_v27 = vpop.f32.mrb[10].mxu0 }
 0x105   : > { %v1044_v28 = vpack.c.bf16 %v745_v27, %v741_v25  ;;  %v747_v29 = vpop.f32.mrb[11].mxu0 }
 0x106   : > { %v1045_v30 = vpack.c.bf16 %v747_v29, %v743_v26  ;;  %v5008_v29 = vld [vmem:[%s5614_s8 + $0x58] sm:$0xff]  }
 0x107   : > { %4095 = vmatmul.mubr.msk.bf16.gmra.mrb[44].mxu0 %vm590_vm0, %v5008_v29 }
 0x108   : > { %1185 = vmatprep.subr.bf16.mxu1 %v1045_v30  ;;  %839 = vmatprep.mubr.bf16.mxu0 %v7450_v2 }
 0x109   : > { %1186 = vmatpush1.bf16.msra.mxu1 %v1044_v28 }
 0x10a   : > { %v751_v31 = vpop.f32.mrb[12].mxu0 }
 0x10b   : > { %v753_v32 = vpop.f32.mrb[13].mxu0 }
 0x10c   : > { %v755_v33 = vpop.f32.mrb[14].mxu0 }
 0x10d   : > { %v1046_v34 = vpack.c.bf16 %v755_v33, %v751_v31  ;;  %v757_v35 = vpop.f32.mrb[15].mxu0 }
 0x10e   : > { %v1047_v36 = vpack.c.bf16 %v757_v35, %v753_v32 }
 0x110   : > { %1187 = vmatprep.subr.bf16.mxu1 %v1047_v36 }
 0x111   : > { %1188 = vmatpush1.bf16.msra.mxu1 %v1046_v34 }
 0x112   : > { %v761_v37 = vpop.f32.mrb[16].mxu0 }
 0x113   : > { %v763_v38 = vpop.f32.mrb[17].mxu0 }
 0x114   : > { %v765_v39 = vpop.f32.mrb[18].mxu0 }
 0x115   : > { %v1048_v40 = vpack.c.bf16 %v765_v39, %v761_v37  ;;  %v767_v41 = vpop.f32.mrb[19].mxu0 }
 0x116   : > { %v1049_v42 = vpack.c.bf16 %v767_v41, %v763_v38 }
 0x118   : > { %1189 = vmatprep.subr.bf16.mxu1 %v1049_v42 }
 0x119   : > { %1190 = vmatpush1.bf16.msra.mxu1 %v1048_v40  ;;  %v5009_v40 = vld [vmem:[%s5614_s8 + $0x60] sm:$0xff]  }
 0x11a   : > { %v771_v43 = vpop.f32.mrb[20].mxu0  ;;  %4096 = vmatmul.mubr.msk.bf16.gmra.mrb[48].mxu0 %vm590_vm0, %v5009_v40 }
 0x11b   : > { %v773_v44 = vpop.f32.mrb[21].mxu0  ;;  %849 = vmatprep.mubr.bf16.mxu0 %v7450_v2 }
 0x11c   : > { %v775_v45 = vpop.f32.mrb[22].mxu0 }
 0x11d   : > { %v1050_v46 = vpack.c.bf16 %v775_v45, %v771_v43  ;;  %v777_v47 = vpop.f32.mrb[23].mxu0 }
 0x11e   : > { %v1051_v48 = vpack.c.bf16 %v777_v47, %v773_v44 }
 0x120   : > { %1191 = vmatprep.subr.bf16.mxu1 %v1051_v48 }
 0x121   : > { %1192 = vmatpush1.bf16.msra.mxu1 %v1050_v46 }
 0x122   : > { %v781_v49 = vpop.f32.mrb[24].mxu0 }
 0x123   : > { %v783_v50 = vpop.f32.mrb[25].mxu0 }
 0x124   : > { %v785_v51 = vpop.f32.mrb[26].mxu0 }
 0x125   : > { %v1052_v52 = vpack.c.bf16 %v785_v51, %v781_v49  ;;  %v787_v53 = vpop.f32.mrb[27].mxu0  ;;  %v5010_v51 = vld [vmem:[%s5614_s8 + $0x68] sm:$0xff]  }
 0x126   : > { %v1053_v54 = vpack.c.bf16 %v787_v53, %v783_v50  ;;  %4097 = vmatmul.mubr.msk.bf16.gmra.mrb[52].mxu0 %vm590_vm0, %v5010_v51 }
 0x127   : > { %859 = vmatprep.mubr.bf16.mxu0 %v7450_v2 }
 0x128   : > { %1193 = vmatprep.subr.bf16.mxu1 %v1053_v54 }
 0x129   : > { %1194 = vmatpush1.bf16.msra.mxu1 %v1052_v52 }
 0x12a   : > { %v791_v55 = vpop.f32.mrb[28].mxu0 }
 0x12b   : > { %v793_v56 = vpop.f32.mrb[29].mxu0 }
 0x12c   : > { %v795_v57 = vpop.f32.mrb[30].mxu0 }
 0x12d   : > { %v1054_v58 = vpack.c.bf16 %v795_v57, %v791_v55  ;;  %v797_v59 = vpop.f32.mrb[31].mxu0 }
 0x12e   : > { %v1055_v60 = vpack.c.bf16 %v797_v59, %v793_v56  ;;  %4098 = vmatmul.mubr.msk.bf16.gmra.mrb[56].mxu0 %vm590_vm0, %v5011_v7 }
 0x12f   : > { %869 = vmatprep.mubr.bf16.mxu0 %v7450_v2 }
 0x130   : > { %1195 = vmatprep.subr.bf16.mxu1 %v1055_v60 }
 0x131   : > { %1196 = vmatpush1.bf16.msra.mxu1 %v1054_v58 }
 0x134   : > { %1214 = vmatmul.mubr.bf16.vlgmr.msra.gmra.mrb[0].mxu1 %v5647_v61 }
 0x135   : > { %1223 = vmatprep.mubr.bf16.mxu1 %v7450_v2 }
 0x13c   : > { %1224 = vmatmul.mubr.bf16.gmra.mrb[4].mxu1 %v5652_v62 }
 0x13d   : > { %1233 = vmatprep.mubr.bf16.mxu1 %v7450_v2 }
 0x144   : > { %1234 = vmatmul.mubr.bf16.gmra.mrb[8].mxu1 %v5657_v63 }
 0x145   : > { %1243 = vmatprep.mubr.bf16.mxu1 %v7450_v2 }
 0x14c   : > { %1244 = vmatmul.mubr.bf16.gmra.mrb[12].mxu1 %v5662_v0 }
 0x14d   : > { %1253 = vmatprep.mubr.bf16.mxu1 %v7450_v2 }
 0x154   : > { %1254 = vmatmul.mubr.bf16.gmra.mrb[16].mxu1 %v5667_v1 }
 0x155   : > { %1263 = vmatprep.mubr.bf16.mxu1 %v7450_v2 }
 0x15c   : > { %1264 = vmatmul.mubr.bf16.gmra.mrb[20].mxu1 %v5672_v3 }
 0x15d   : > { %1273 = vmatprep.mubr.bf16.mxu1 %v7450_v2 }
 0x164   : > { %1274 = vmatmul.mubr.bf16.gmra.mrb[24].mxu1 %v5677_v4 }
 0x165   : > { %1283 = vmatprep.mubr.bf16.mxu1 %v7450_v2 }
 0x16c   : > { %1284 = vmatmul.mubr.bf16.gmra.mrb[28].mxu1 %v5682_v5 }
 0x16d   : > { %1353 = vmatprep.mubr.bf16.mxu1 %v7450_v2 }
 0x207   : > { %v1215_v14 = vpop.f32.mrb[0].mxu1 }
 0x208   : > { %v1217_v16 = vpop.f32.mrb[1].mxu1  ;;  %v1216_v19 = vadd.f32 %v1215_v14, %v5700_v13 }
 0x209   : > { %v1219_v17 = vpop.f32.mrb[2].mxu1  ;;  %v1218_v22 = vadd.f32 %v1217_v16, %v5705_v15 }
 0x20a   : > { %v1220_v20 = vadd.f32 %v1219_v17, %v5700_v13  ;;  %v1221_v21 = vpop.f32.mrb[3].mxu1 }
 0x20b   : > { %v1222_v23 = vadd.f32 %v1221_v21, %v5705_v15 }
 0x20c   : > { %v1294_v24 = vpack.c.bf16 %v1220_v20, %v1216_v19 }
 0x20d   : > { %v1295_v25 = vpack.c.bf16 %v1222_v23, %v1218_v22  ;;  %v5012_v23 = vld [vmem:[%s5614_s8 + $0x78] sm:$0xff]  }
 0x20e   : > { %4099 = vmatmul.mubr.msk.bf16.gmra.mrb[60].mxu0 %vm590_vm0, %v5012_v23 }
 0x20f   : > { %v1225_v26 = vpop.f32.mrb[4].mxu1  ;;  %1321 = vmatprep.subr.bf16.mxu1 %v1295_v25  ;;  %879 = vmatprep.mubr.bf16.mxu0 %v7450_v2 }
 0x210   : > { %v1227_v27 = vpop.f32.mrb[5].mxu1  ;;  %1322 = vmatpush1.bf16.msra.mxu1 %v1294_v24  ;;  %v1226_v30 = vadd.f32 %v1225_v26, %v5700_v13 }
 0x211   : > { %v1229_v28 = vpop.f32.mrb[6].mxu1  ;;  %v1228_v33 = vadd.f32 %v1227_v27, %v5705_v15 }
 0x212   : > { %v1230_v31 = vadd.f32 %v1229_v28, %v5700_v13  ;;  %v1231_v32 = vpop.f32.mrb[7].mxu1 }
 0x213   : > { %v1232_v34 = vadd.f32 %v1231_v32, %v5705_v15 }
 0x214   : > { %v1296_v35 = vpack.c.bf16 %v1230_v31, %v1226_v30 }
 0x215   : > { %v1297_v36 = vpack.c.bf16 %v1232_v34, %v1228_v33 }
 0x217   : > { %v1235_v37 = vpop.f32.mrb[8].mxu1  ;;  %1323 = vmatprep.subr.bf16.mxu1 %v1297_v36 }
 0x218   : > { %v1237_v38 = vpop.f32.mrb[9].mxu1  ;;  %1324 = vmatpush1.bf16.msra.mxu1 %v1296_v35  ;;  %v1236_v41 = vadd.f32 %v1235_v37, %v5700_v13 }
 0x219   : > { %v1239_v39 = vpop.f32.mrb[10].mxu1  ;;  %v1238_v44 = vadd.f32 %v1237_v38, %v5705_v15 }
 0x21a   : > { %v1240_v42 = vadd.f32 %v1239_v39, %v5700_v13  ;;  %v1241_v43 = vpop.f32.mrb[11].mxu1 }
 0x21b   : > { %v1242_v45 = vadd.f32 %v1241_v43, %v5705_v15 }
 0x21c   : > { %v1298_v46 = vpack.c.bf16 %v1240_v42, %v1236_v41 }
 0x21d   : > { %v1299_v47 = vpack.c.bf16 %v1242_v45, %v1238_v44 }
 0x21f   : > { %v1245_v48 = vpop.f32.mrb[12].mxu1  ;;  %1325 = vmatprep.subr.bf16.mxu1 %v1299_v47 }
 0x220   : > { %v1247_v49 = vpop.f32.mrb[13].mxu1  ;;  %1326 = vmatpush1.bf16.msra.mxu1 %v1298_v46  ;;  %v1246_v52 = vadd.f32 %v1245_v48, %v5700_v13 }
 0x221   : > { %v1249_v50 = vpop.f32.mrb[14].mxu1  ;;  %v1248_v55 = vadd.f32 %v1247_v49, %v5705_v15 }
 0x222   : > { %v1250_v53 = vadd.f32 %v1249_v50, %v5700_v13  ;;  %v1251_v54 = vpop.f32.mrb[15].mxu1 }
 0x223   : > { %v1252_v56 = vadd.f32 %v1251_v54, %v5705_v15 }
 0x224   : > { %v1300_v57 = vpack.c.bf16 %v1250_v53, %v1246_v52 }
 0x225   : > { %v1301_v58 = vpack.c.bf16 %v1252_v56, %v1248_v55 }
 0x227   : > { %v1255_v59 = vpop.f32.mrb[16].mxu1  ;;  %1327 = vmatprep.subr.bf16.mxu1 %v1301_v58 }
 0x228   : > { %v1257_v60 = vpop.f32.mrb[17].mxu1  ;;  %1328 = vmatpush1.bf16.msra.mxu1 %v1300_v57  ;;  %v1256_v10 = vadd.f32 %v1255_v59, %v5700_v13 }
 0x229   : > { %v1259_v6 = vpop.f32.mrb[18].mxu1  ;;  %v1258_v16 = vadd.f32 %v1257_v60, %v5705_v15 }
 0x22a   : > { %v1260_v12 = vadd.f32 %v1259_v6, %v5700_v13  ;;  %v1261_v14 = vpop.f32.mrb[19].mxu1 }
 0x22b   : > { %v1262_v17 = vadd.f32 %v1261_v14, %v5705_v15 }
 0x22c   : > { %v1302_v18 = vpack.c.bf16 %v1260_v12, %v1256_v10 }
 0x22d   : > { %v1303_v19 = vpack.c.bf16 %v1262_v17, %v1258_v16 }
 0x22f   : > { %v1265_v20 = vpop.f32.mrb[20].mxu1  ;;  %1329 = vmatprep.subr.bf16.mxu1 %v1303_v19 }
 0x230   : > { %v1267_v21 = vpop.f32.mrb[21].mxu1  ;;  %1330 = vmatpush1.bf16.msra.mxu1 %v1302_v18  ;;  %v1266_v24 = vadd.f32 %v1265_v20, %v5700_v13 }
 0x231   : > { %v1269_v22 = vpop.f32.mrb[22].mxu1  ;;  %v1268_v27 = vadd.f32 %v1267_v21, %v5705_v15 }
 0x232   : > { %v1270_v25 = vadd.f32 %v1269_v22, %v5700_v13  ;;  %v1271_v26 = vpop.f32.mrb[23].mxu1 }
 0x233   : > { %v1272_v28 = vadd.f32 %v1271_v26, %v5705_v15 }
 0x234   : > { %v1304_v29 = vpack.c.bf16 %v1270_v25, %v1266_v24 }
 0x235   : > { %v1305_v30 = vpack.c.bf16 %v1272_v28, %v1268_v27 }
 0x237   : > { %v1275_v31 = vpop.f32.mrb[24].mxu1  ;;  %1331 = vmatprep.subr.bf16.mxu1 %v1305_v30 }
 0x238   : > { %v1277_v32 = vpop.f32.mrb[25].mxu1  ;;  %1332 = vmatpush1.bf16.msra.mxu1 %v1304_v29  ;;  %v1276_v34 = vadd.f32 %v1275_v31, %v5700_v13 }
 0x239   : > { %v1279_v33 = vpop.f32.mrb[26].mxu1  ;;  %v1278_v37 = vadd.f32 %v1277_v32, %v5705_v15 }
 0x23a   : > { %v1280_v35 = vadd.f32 %v1279_v33, %v5700_v13  ;;  %v1281_v36 = vpop.f32.mrb[27].mxu1 }
 0x23b   : > { %v1282_v38 = vadd.f32 %v1281_v36, %v5705_v15 }
 0x23c   : > { %v1306_v39 = vpack.c.bf16 %v1280_v35, %v1276_v34 }
 0x23d   : > { %v1307_v40 = vpack.c.bf16 %v1282_v38, %v1278_v37 }
 0x23f   : > { %v1285_v41 = vpop.f32.mrb[28].mxu1  ;;  %1333 = vmatprep.subr.bf16.mxu1 %v1307_v40 }
 0x240   : > { %v1287_v42 = vpop.f32.mrb[29].mxu1  ;;  %1334 = vmatpush1.bf16.msra.mxu1 %v1306_v39  ;;  %v1286_v44 = vadd.f32 %v1285_v41, %v5700_v13  ;;  %v1105_v41 = vld [vmem:[%s7446_s4] sm:$0x3] }
 0x241   : > { %v1289_v43 = vpop.f32.mrb[30].mxu1  ;;  %v1288_v47 = vadd.f32 %v1287_v42, %v5705_v15  ;;  %v5873_v42 = vrot.slane %v1105_v41, %v1129_v11 }
 0x242   : > { %v1290_v45 = vadd.f32 %v1289_v43, %v5700_v13  ;;  %v1291_v46 = vpop.f32.mrb[31].mxu1  ;;  %v1446_v13 = vld [vmem:[%s5882_s9 + $0x60] sm:$0xff] }
 0x243   : > { %v1292_v48 = vadd.f32 %v1291_v46, %v5705_v15  ;;  %7484 = vst [vmem:[#allocation8_spill] sm:$0xff] %v5873_v42 }
 0x244   : > { %v1308_v49 = vpack.c.bf16 %v1290_v45, %v1286_v44 }
 0x245   : > { %v1309_v50 = vpack.c.bf16 %v1292_v48, %v1288_v47 }
 0x247   : > { %1335 = vmatprep.subr.bf16.mxu1 %v1309_v50 }
 0x248   : > { %1336 = vmatpush1.bf16.msra.mxu1 %v1308_v49 }
 0x24b   : > { %1354 = vmatmul.mubr.bf16.vlgmr.msra.gmra.mrb[32].mxu1 %v5647_v61  ;;  %v5772_v61 = vpop.f32.mrb[32].mxu0 }
 0x24c   : > { %1363 = vmatprep.mubr.bf16.mxu1 %v7450_v2 }
 0x253   : > { %1364 = vmatmul.mubr.bf16.gmra.mrb[36].mxu1 %v5652_v62  ;;  %v5774_v62 = vpop.f32.mrb[33].mxu0 }
 0x254   : > { %1373 = vmatprep.mubr.bf16.mxu1 %v7450_v2 }
 0x25b   : > { %1374 = vmatmul.mubr.bf16.gmra.mrb[40].mxu1 %v5657_v63  ;;  %v5776_v63 = vpop.f32.mrb[34].mxu0 }
 0x25c   : > { %1383 = vmatprep.mubr.bf16.mxu1 %v7450_v2 }
 0x263   : > { %1384 = vmatmul.mubr.bf16.gmra.mrb[44].mxu1 %v5662_v0  ;;  %v5778_v0 = vpop.f32.mrb[35].mxu0 }
 0x264   : > { %1393 = vmatprep.mubr.bf16.mxu1 %v7450_v2  ;;  %v5784_v51 = vpop.f32.mrb[36].mxu0 }
 0x26b   : > { %1394 = vmatmul.mubr.bf16.gmra.mrb[48].mxu1 %v5667_v1 }
 0x26c   : > { %1403 = vmatprep.mubr.bf16.mxu1 %v7450_v2 }
 0x273   : > { %1404 = vmatmul.mubr.bf16.gmra.mrb[52].mxu1 %v5672_v3 }
 0x274   : > { %1413 = vmatprep.mubr.bf16.mxu1 %v7450_v2 }
 0x27b   : > { %1414 = vmatmul.mubr.bf16.gmra.mrb[56].mxu1 %v5677_v4  ;;  %v5786_v4 = vpop.f32.mrb[37].mxu0 }
 0x27c   : > { %1423 = vmatprep.mubr.bf16.mxu1 %v7450_v2  ;;  %v5788_v52 = vpop.f32.mrb[38].mxu0 }
 0x283   : > { %1424 = vmatmul.mubr.bf16.gmra.mrb[60].mxu1 %v5682_v5  ;;  %v5790_v5 = vpop.f32.mrb[39].mxu0 }
 0x284   : > { %v5796_v55 = vpop.f32.mrb[40].mxu0 }
 0x285   : > { %v5798_v56 = vpop.f32.mrb[41].mxu0 }
 0x286   : > { %v5800_v57 = vpop.f32.mrb[42].mxu0 }
 0x287   : > { %v5802_v58 = vpop.f32.mrb[43].mxu0 }
 0x288   : > { %v5808_v6 = vpop.f32.mrb[44].mxu0 }
 0x289   : > { %v5810_v7 = vpop.f32.mrb[45].mxu0 }
 0x28a   : > { %v5812_v10 = vpop.f32.mrb[46].mxu0 }
 0x28b   : > { %v5816_v14 = vpop.f32.mrb[47].mxu0 }
 0x28c   : > { %v5820_v17 = vpop.f32.mrb[48].mxu0 }
 0x28d   : > { %v5822_v18 = vpop.f32.mrb[49].mxu0 }
 0x28e   : > { %v5824_v19 = vpop.f32.mrb[50].mxu0 }
 0x28f   : > { %v5828_v21 = vpop.f32.mrb[51].mxu0 }
 0x290   : > { %v5832_v23 = vpop.f32.mrb[52].mxu0 }
 0x291   : > { %v5834_v24 = vpop.f32.mrb[53].mxu0 }
 0x292   : > { %v5836_v25 = vpop.f32.mrb[54].mxu0 }
 0x293   : > { %v5840_v27 = vpop.f32.mrb[55].mxu0 }
 0x294   : > { %v5844_v29 = vpop.f32.mrb[56].mxu0 }
 0x295   : > { %v5846_v30 = vpop.f32.mrb[57].mxu0 }
 0x296   : > { %v5848_v31 = vpop.f32.mrb[58].mxu0 }
 0x297   : > { %v5852_v33 = vpop.f32.mrb[59].mxu0 }
 0x2e1   : > { %v5856_v35 = vpop.f32.mrb[60].mxu0 }
 0x2e2   : > { %7483 = vst [vmem:[#allocation7_spill] sm:$0xff] %v5856_v35  ;;  %v5858_v36 = vpop.f32.mrb[61].mxu0 }
 0x2e3   : > { %v5860_v37 = vpop.f32.mrb[62].mxu0 }
 0x2e4   : > { %v5864_v39 = vpop.f32.mrb[63].mxu0 }
 0x31e   : > { %v1355_v43 = vpop.f32.mrb[32].mxu1 }
 0x31f   : > { %v1357_v44 = vpop.f32.mrb[33].mxu1 }
 0x320   : > { %v1358_v45 = vadd.f32 %v1357_v44, %v5873_v42  ;;  %v1359_v46 = vpop.f32.mrb[34].mxu1 }
 0x321   : > { %v1361_v47 = vpop.f32.mrb[35].mxu1 }
 0x322   : > { %v1450_v48 = vmul.f32 1.442695, %v1358_v45  ;;  %v1362_v49 = vadd.f32 %v1361_v47, %v5873_v42  ;;  %v5887_v47 = vrot.slane %v1105_v41, %v1125_v9 }
 0x324   : > { %5053 = vpow2.f32 %v1450_v48  ;;  %v1452_v50 = vmul.f32 1.442695, %v1362_v49  ;;  %v1434_v49 = vld [vmem:[%s5882_s9] sm:$0xff]  ;;  %v1356_v26 = vadd.f32 %v1355_v43, %v5887_v47  ;;  %v1360_v8 = vadd.f32 %v1359_v46, %v5887_v47 }
 0x326   : > { %5055 = vpow2.f32 %v1452_v50  ;;  %v1365_v2 = vpop.f32.mrb[36].mxu1  ;;  %v1435_v50 = vld [vmem:[%s5882_s9 + $0x8] sm:$0xff] }
 0x327   : > { %v1367_v38 = vpop.f32.mrb[37].mxu1 }
 0x328   : > { %v1368_v40 = vadd.f32 %v1367_v38, %v5873_v42  ;;  %v1369_v32 = vpop.f32.mrb[38].mxu1 }
 0x329   : > { %v1371_v11 = vpop.f32.mrb[39].mxu1 }
 0x32a   : > { %v1454_v44 = vmul.f32 1.442695, %v1368_v40  ;;  %v1372_v45 = vadd.f32 %v1371_v11, %v5873_v42 }
 0x32c   : > { %5057 = vpow2.f32 %v1454_v44  ;;  %v1456_v48 = vmul.f32 1.442695, %v1372_v45 }
 0x32e   : > { %v5054_v38 = vpop.eup %5053  ;;  %5059 = vpow2.f32 %v1456_v48  ;;  %v1375_v34 = vpop.f32.mrb[40].mxu1  ;;  %v1436_v48 = vld [vmem:[%s5882_s9 + $0x10] sm:$0xff] }
 0x32f   : > { %v1377_v28 = vpop.f32.mrb[41].mxu1  ;;  %v1482_v20 = vmul.f32 %v5054_v38, %v1434_v49 }
 0x330   : > { %v5056_v22 = vpop.eup %5055  ;;  %v1378_v40 = vadd.f32 %v1377_v28, %v5873_v42  ;;  %v1379_v11 = vpop.f32.mrb[42].mxu1 }
 0x331   : > { %v1483_v9 = vmul.f32 %v5056_v22, %v1435_v50  ;;  %v1381_v41 = vpop.f32.mrb[43].mxu1  ;;  %v1498_v43 = vadd.f32 %v1482_v20, %v1356_v26  ;;  %v1437_v26 = vld [vmem:[%s5882_s9 + $0x18] sm:$0xff]  ;;  %v1366_v50 = vadd.f32 %v1365_v2, %v5887_v47 }
 0x332   : > { %v1458_v44 = vmul.f32 1.442695, %v1378_v40  ;;  %v1382_v45 = vadd.f32 %v1381_v41, %v5873_v42 }
 0x333   : > { %1515 = vst.msk [vmem:[%s5896_s14] sm:$0xff] %vm1514_vm1, %v1498_v43  ;;  %4541 = vmatprep.mubr.msk.f32.mxu1 %vm1514_vm1, %v1498_v43  ;;  %v5903_v28 = vadd.f32 %v1483_v9, %v1360_v8 }
 0x334   : > { %5061 = vpow2.f32 %v1458_v44  ;;  %v1460_v49 = vmul.f32 1.442695, %v1382_v45 }
 0x335   : > { %1516 = vst.msk [vmem:[%s5896_s14 + $0x8] sm:$0xff] %vm1514_vm1, %v5903_v28  ;;  %v4733_v20 = vpack.c.bf16 %v5903_v28, %v1498_v43  ;;  %v1370_v43 = vadd.f32 %v1369_v32, %v5887_v47 }
 0x336   : > { %v5058_v22 = vpop.eup %5057  ;;  %5063 = vpow2.f32 %v1460_v49  ;;  %v1385_v38 = vpop.f32.mrb[44].mxu1 }
 0x337   : > { %v1484_v40 = vmul.f32 %v5058_v22, %v1436_v48  ;;  %v1387_v8 = vpop.f32.mrb[45].mxu1  ;;  %4735 = vmatprep.subr.msk.bf16.mxu1 %vm5908_vm2, %v4733_v20 }
 0x338   : > { %v5060_v9 = vpop.eup %5059  ;;  %v1388_v41 = vadd.f32 %v1387_v8, %v5873_v42  ;;  %v1389_v44 = vpop.f32.mrb[46].mxu1  ;;  %4738 = vmatpush3.bf16.xpose.msk.msra.mxu1 %vm5908_vm2, %v4733_v20  ;;  %v1438_v8 = vld [vmem:[%s5882_s9 + $0x20] sm:$0xff] }
 0x339   : > { %v1485_v45 = vmul.f32 %v5060_v9, %v1437_v26  ;;  %v1391_v49 = vpop.f32.mrb[47].mxu1  ;;  %v5924_v2 = vadd.f32 %v1484_v40, %v1366_v50  ;;  %v1439_v26 = vld [vmem:[%s5882_s9 + $0x28] sm:$0xff]  ;;  %v1376_v40 = vadd.f32 %v1375_v34, %v5887_v47 }
 0x33a   : > { %v1462_v48 = vmul.f32 1.442695, %v1388_v41  ;;  %v1392_v22 = vadd.f32 %v1391_v49, %v5873_v42 }
 0x33b   : > { %v5927_v12 = vadd.f32 %v1485_v45, %v1370_v43  ;;  %1517 = vst.msk [vmem:[%s5896_s14 + $0x10] sm:$0xff] %vm1514_vm1, %v5924_v2 }
 0x33c   : > { %5065 = vpow2.f32 %v1462_v48  ;;  %v1464_v16 = vmul.f32 1.442695, %v1392_v22 }
 0x33d   : > { %1518 = vst.msk [vmem:[%s5896_s14 + $0x18] sm:$0xff] %vm1514_vm1, %v5927_v12  ;;  %v4739_v32 = vpack.c.bf16 %v5927_v12, %v5924_v2 }
 0x33e   : > { %v5062_v20 = vpop.eup %5061  ;;  %5067 = vpow2.f32 %v1464_v16  ;;  %v1395_v50 = vpop.f32.mrb[48].mxu1  ;;  %v1380_v16 = vadd.f32 %v1379_v11, %v5887_v47 }
 0x33f   : > { %v1486_v9 = vmul.f32 %v5062_v20, %v1438_v8  ;;  %v1397_v41 = vpop.f32.mrb[49].mxu1  ;;  %4741 = vmatprep.subr.msk.bf16.mxu1 %vm5908_vm2, %v4739_v32 }
 0x340   : > { %v5064_v43 = vpop.eup %5063  ;;  %v1398_v45 = vadd.f32 %v1397_v41, %v5873_v42  ;;  %v1399_v49 = vpop.f32.mrb[50].mxu1  ;;  %4744 = vmatpush3.bf16.xpose.msk.msra.mxu1 %vm5908_vm2, %v4739_v32  ;;  %v1440_v41 = vld [vmem:[%s5882_s9 + $0x30] sm:$0xff] }
 0x341   : > { %v1487_v48 = vmul.f32 %v5064_v43, %v1439_v26  ;;  %v1401_v22 = vpop.f32.mrb[51].mxu1  ;;  %v5946_v34 = vadd.f32 %v1486_v9, %v1376_v40  ;;  %v1441_v26 = vld [vmem:[%s5882_s9 + $0x38] sm:$0xff]  ;;  %v1386_v9 = vadd.f32 %v1385_v38, %v5887_v47 }
 0x342   : > { %v1466_v8 = vmul.f32 1.442695, %v1398_v45  ;;  %v1402_v20 = vadd.f32 %v1401_v22, %v5873_v42 }
 0x343   : > { %v5949_v59 = vadd.f32 %v1487_v48, %v1380_v16  ;;  %1519 = vst.msk [vmem:[%s5896_s14 + $0x20] sm:$0xff] %vm1514_vm1, %v5946_v34 }
 0x344   : > { %5069 = vpow2.f32 %v1466_v8  ;;  %v1468_v60 = vmul.f32 1.442695, %v1402_v20 }
 0x345   : > { %1520 = vst.msk [vmem:[%s5896_s14 + $0x28] sm:$0xff] %vm1514_vm1, %v5949_v59  ;;  %v4745_v11 = vpack.c.bf16 %v5949_v59, %v5946_v34 }
 0x346   : > { %v5066_v32 = vpop.eup %5065  ;;  %5071 = vpow2.f32 %v1468_v60  ;;  %v1405_v40 = vpop.f32.mrb[52].mxu1  ;;  %v1390_v60 = vadd.f32 %v1389_v44, %v5887_v47 }
 0x347   : > { %v1488_v43 = vmul.f32 %v5066_v32, %v1440_v41  ;;  %v1407_v45 = vpop.f32.mrb[53].mxu1  ;;  %4747 = vmatprep.subr.msk.bf16.mxu1 %vm5908_vm2, %v4745_v11 }
 0x348   : > { %v5068_v16 = vpop.eup %5067  ;;  %v1408_v48 = vadd.f32 %v1407_v45, %v5873_v42  ;;  %v1409_v22 = vpop.f32.mrb[54].mxu1  ;;  %4750 = vmatpush3.bf16.xpose.msk.msra.mxu1 %vm5908_vm2, %v4745_v11  ;;  %v1442_v45 = vld [vmem:[%s5882_s9 + $0x40] sm:$0xff] }
 0x349   : > { %v1489_v8 = vmul.f32 %v5068_v16, %v1441_v26  ;;  %v1411_v20 = vpop.f32.mrb[55].mxu1  ;;  %v5968_v38 = vadd.f32 %v1488_v43, %v1386_v9  ;;  %v1443_v26 = vld [vmem:[%s5882_s9 + $0x48] sm:$0xff]  ;;  %v1396_v43 = vadd.f32 %v1395_v50, %v5887_v47 }
 0x34a   : > { %v1470_v41 = vmul.f32 1.442695, %v1408_v48  ;;  %v1412_v32 = vadd.f32 %v1411_v20, %v5873_v42 }
 0x34b   : > { %v5971_v53 = vadd.f32 %v1489_v8, %v1390_v60  ;;  %1521 = vst.msk [vmem:[%s5896_s14 + $0x30] sm:$0xff] %vm1514_vm1, %v5968_v38 }
 0x34c   : > { %5073 = vpow2.f32 %v1470_v41  ;;  %v1472_v54 = vmul.f32 1.442695, %v1412_v32 }
 0x34d   : > { %1522 = vst.msk [vmem:[%s5896_s14 + $0x38] sm:$0xff] %vm1514_vm1, %v5971_v53  ;;  %v4751_v44 = vpack.c.bf16 %v5971_v53, %v5968_v38 }
 0x34e   : > { %v5070_v11 = vpop.eup %5069  ;;  %5075 = vpow2.f32 %v1472_v54  ;;  %v1415_v9 = vpop.f32.mrb[56].mxu1  ;;  %v1400_v54 = vadd.f32 %v1399_v49, %v5887_v47 }
 0x34f   : > { %v1490_v16 = vmul.f32 %v5070_v11, %v1442_v45  ;;  %v1417_v48 = vpop.f32.mrb[57].mxu1  ;;  %4753 = vmatprep.subr.msk.bf16.mxu1 %vm5908_vm2, %v4751_v44 }
 0x350   : > { %v5072_v60 = vpop.eup %5071  ;;  %v1418_v8 = vadd.f32 %v1417_v48, %v5873_v42  ;;  %v1419_v20 = vpop.f32.mrb[58].mxu1  ;;  %4756 = vmatpush3.bf16.xpose.msk.msra.mxu1 %vm5908_vm2, %v4751_v44  ;;  %v1444_v48 = vld [vmem:[%s5882_s9 + $0x50] sm:$0xff] }
 0x351   : > { %v1491_v41 = vmul.f32 %v5072_v60, %v1443_v26  ;;  %v1421_v32 = vpop.f32.mrb[59].mxu1  ;;  %v5990_v50 = vadd.f32 %v1490_v16, %v1396_v43  ;;  %v1445_v26 = vld [vmem:[%s5882_s9 + $0x58] sm:$0xff]  ;;  %v1406_v16 = vadd.f32 %v1405_v40, %v5887_v47 }
 0x352   : > { %v1474_v45 = vmul.f32 1.442695, %v1418_v8  ;;  %v1422_v11 = vadd.f32 %v1421_v32, %v5873_v42 }
 0x353   : > { %v5993_v1 = vadd.f32 %v1491_v41, %v1400_v54  ;;  %1523 = vst.msk [vmem:[%s5896_s14 + $0x40] sm:$0xff] %vm1514_vm1, %v5990_v50 }
 0x354   : > { %5077 = vpow2.f32 %v1474_v45  ;;  %v1476_v3 = vmul.f32 1.442695, %v1422_v11 }
 0x355   : > { %1524 = vst.msk [vmem:[%s5896_s14 + $0x48] sm:$0xff] %vm1514_vm1, %v5993_v1  ;;  %v4757_v49 = vpack.c.bf16 %v5993_v1, %v5990_v50 }
 0x356   : > { %v5074_v44 = vpop.eup %5073  ;;  %5079 = vpow2.f32 %v1476_v3  ;;  %v1425_v43 = vpop.f32.mrb[60].mxu1  ;;  %v1410_v3 = vadd.f32 %v1409_v22, %v5887_v47  ;;  %v1447_v22 = vld [vmem:[%s5882_s9 + $0x68] sm:$0xff] }
 0x357   : > { %v1492_v60 = vmul.f32 %v5074_v44, %v1444_v48  ;;  %v1427_v8 = vpop.f32.mrb[61].mxu1  ;;  %4759 = vmatprep.subr.msk.bf16.mxu1 %vm5908_vm2, %v4757_v49 }
 0x358   : > { %v5076_v54 = vpop.eup %5075  ;;  %v1428_v41 = vadd.f32 %v1427_v8, %v5873_v42  ;;  %v1429_v32 = vpop.f32.mrb[62].mxu1  ;;  %4762 = vmatpush3.bf16.xpose.msk.msra.mxu1 %vm5908_vm2, %v4757_v49 }
 0x359   : > { %v1493_v45 = vmul.f32 %v5076_v54, %v1445_v26  ;;  %v1431_v11 = vpop.f32.mrb[63].mxu1  ;;  %v1508_v40 = vadd.f32 %v1492_v60, %v1406_v16  ;;  %v1416_v26 = vadd.f32 %v1415_v9, %v5887_v47  ;;  %v1449_v9 = vld [vmem:[%s5882_s9 + $0x78] sm:$0xff] }
 0x35a   : > { %v1478_v15 = vmul.f32 1.442695, %v1428_v41  ;;  %v1432_v48 = vadd.f32 %v1431_v11, %v5873_v42  ;;  %v1426_v11 = vadd.f32 %v1425_v43, %v5887_v47  ;;  %v7487_v43 = vpack.c.bf16 %v5778_v0, %v5774_v62 }
 0x35b   : > { %v1509_v44 = vadd.f32 %v1493_v45, %v1410_v3  ;;  %1525 = vst.msk [vmem:[%s5896_s14 + $0x50] sm:$0xff] %vm1514_vm1, %v1508_v40  ;;  %v1448_v45 = vld [vmem:[%s5882_s9 + $0x70] sm:$0xff]  ;;  %v7490_v62 = vpack.c.bf16 %v5788_v52, %v5784_v51  ;;  %v7491_v0 = vpack.c.bf16 %v5802_v58, %v5798_v56  ;;  %v7494_v51 = vpack.c.bf16 %v5812_v10, %v5808_v6 }
 0x35c   : > { %5081 = vpow2.f32 %v1478_v15  ;;  %v1480_v8 = vmul.f32 1.442695, %v1432_v48  ;;  %v1420_v15 = vadd.f32 %v1419_v20, %v5887_v47  ;;  %v7496_v52 = vpack.c.bf16 %v5824_v19, %v5820_v17  ;;  %v7502_v58 = vld [vmem:[#allocation7_spill] sm:$0xff]  ;;  %v6144_v17 = vld [vmem:[%s5644_s17 + $0x68] sm:$0xff]   ;;  %v6154_v19 = vld [vmem:[%s5644_s17 + $0x78] sm:$0xff]  }
 0x35d   : > { %1526 = vst.msk [vmem:[%s5896_s14 + $0x58] sm:$0xff] %vm1514_vm1, %v1509_v44  ;;  %v4763_v49 = vpack.c.bf16 %v1509_v44, %v1508_v40  ;;  %v7501_v56 = vpack.c.bf16 %v5864_v39, %v5858_v36  ;;  %v7504_v6 = vmov 0   ;;  %v6129_v10 = vld [vmem:[%s5644_s17 + $0x50] sm:$0xff]  }
 0x35e   : > { %v5078_v35 = vpop.eup %5077  ;;  %5083 = vpow2.f32 %v1480_v8  ;;  %v1430_v8 = vadd.f32 %v1429_v32, %v5887_v47  ;;  %v7488_v32 = vpack.c.bf16 %v5776_v63, %v5772_v61  ;;  %v7492_v61 = vpack.c.bf16 %v5800_v57, %v5796_v55  ;;  %v6115_v57 = vld [vmem:[%s5644_s17 + $0x40] sm:$0xff]  }
 0x35f   : > { %v1494_v16 = vmul.f32 %v5078_v35, %v1446_v13  ;;  %4765 = vmatprep.subr.msk.bf16.mxu1 %vm5908_vm2, %v4763_v49  ;;  %v7493_v63 = vpack.c.bf16 %v5816_v14, %v5810_v7  ;;  %v7500_v55 = vpack.c.bf16 %v5848_v31, %v5844_v29  ;;  %v6124_v7 = vld [vmem:[%s5644_s17 + $0x48] sm:$0xff]   ;;  %v6139_v14 = vld [vmem:[%s5644_s17 + $0x60] sm:$0xff]  }
 0x360   : > { %v5080_v60 = vpop.eup %5079  ;;  %4768 = vmatpush3.bf16.xpose.msk.msra.mxu1 %vm5908_vm2, %v4763_v49 }
 0x361   : > { %v1495_v54 = vmul.f32 %v5080_v60, %v1447_v22  ;;  %v1510_v41 = vadd.f32 %v1494_v16, %v1416_v26  ;;  %v7489_v60 = vpack.c.bf16 %v5790_v5, %v5786_v4  ;;  %v7495_v4 = vpack.c.bf16 %v5828_v21, %v5822_v18  ;;  %v6149_v18 = vld [vmem:[%s5644_s17 + $0x70] sm:$0xff]  }
 0x362   : > { %v7497_v5 = vpack.c.bf16 %v5840_v27, %v5834_v24 }
 0x363   : > { %v1511_v3 = vadd.f32 %v1495_v54, %v1420_v15  ;;  %1527 = vst.msk [vmem:[%s5896_s14 + $0x60] sm:$0xff] %vm1514_vm1, %v1510_v41 }
 0x365   : > { %1528 = vst.msk [vmem:[%s5896_s14 + $0x68] sm:$0xff] %vm1514_vm1, %v1511_v3  ;;  %v4769_v13 = vpack.c.bf16 %v1511_v3, %v1510_v41 }
 0x366   : > { %v5082_v35 = vpop.eup %5081 }
 0x367   : > { %v1496_v48 = vmul.f32 %v5082_v35, %v1448_v45  ;;  %4771 = vmatprep.subr.msk.bf16.mxu1 %vm5908_vm2, %v4769_v13 }
 0x368   : > { %v5084_v20 = vpop.eup %5083  ;;  %4774 = vmatpush3.bf16.xpose.msk.msra.mxu1 %vm5908_vm2, %v4769_v13 }
 0x369   : > { %v1497_v49 = vmul.f32 %v5084_v20, %v1449_v9  ;;  %v1512_v22 = vadd.f32 %v1496_v48, %v1426_v11 }
 0x36b   : > { %v1513_v26 = vadd.f32 %v1497_v49, %v1430_v8  ;;  %1529 = vst.msk [vmem:[%s5896_s14 + $0x70] sm:$0xff] %vm1514_vm1, %v1512_v22 }
 0x36d   : > { %1530 = vst.msk [vmem:[%s5896_s14 + $0x78] sm:$0xff] %vm1514_vm1, %v1513_v26  ;;  %v4775_v16 = vpack.c.bf16 %v1513_v26, %v1512_v22 }
 0x36f   : > { %4777 = vmatprep.subr.msk.bf16.mxu1 %vm5908_vm2, %v4775_v16 }
 0x370   : > { %4780 = vmatpush3.bf16.xpose.msk.msra.mxu1 %vm5908_vm2, %v4775_v16 }
 0x371   : > { %1885 = vmatprep.subr.bf16.mxu1 %v7487_v43 }
 0x377   : > { %4542 = vmatmul.mubr.msk.f32.vlgmr.msra.gmra.mrb[64].mxu1 %vm1514_vm1, %v5903_v28 }
 0x378   : > { %4544 = vmatprep.mubr.msk.f32.mxu1 %vm1514_vm1, %v5924_v2  ;;  %1886 = vmatpush1.bf16.msra.mxu1 %v7488_v32 }
 0x379   : > { %1887 = vmatprep.subr.bf16.mxu1 %v7489_v60 }
 0x37b   : > { %4545 = vmatmul.mubr.msk.f32.gmra.mrb[66].mxu1 %vm1514_vm1, %v5927_v12  ;;  %v6134_v12 = vld [vmem:[%s5644_s17 + $0x58] sm:$0xff]  }
 0x37c   : > { %4547 = vmatprep.mubr.msk.f32.mxu1 %vm1514_vm1, %v5946_v34  ;;  %1888 = vmatpush1.bf16.msra.mxu1 %v7490_v62 }
 0x37d   : > { %1889 = vmatprep.subr.bf16.mxu1 %v7491_v0 }
 0x37f   : > { %4548 = vmatmul.mubr.msk.f32.gmra.mrb[68].mxu1 %vm1514_vm1, %v5949_v59  ;;  %v7503_v59 = vpack.c.bf16 %v5860_v37, %v7502_v58 }
 0x380   : > { %4550 = vmatprep.mubr.msk.f32.mxu1 %vm1514_vm1, %v5968_v38  ;;  %1890 = vmatpush1.bf16.msra.mxu1 %v7492_v61 }
 0x381   : > { %1891 = vmatprep.subr.bf16.mxu1 %v7493_v63 }
 0x383   : > { %4551 = vmatmul.mubr.msk.f32.gmra.mrb[70].mxu1 %vm1514_vm1, %v5971_v53  ;;  %v7498_v53 = vpack.c.bf16 %v5836_v25, %v5832_v23 }
 0x384   : > { %4553 = vmatprep.mubr.msk.f32.mxu1 %vm1514_vm1, %v5990_v50  ;;  %1892 = vmatpush1.bf16.msra.mxu1 %v7494_v51 }
 0x385   : > { %1893 = vmatprep.subr.bf16.mxu1 %v7495_v4 }
 0x387   : > { %4554 = vmatmul.mubr.msk.f32.gmra.mrb[72].mxu1 %vm1514_vm1, %v5993_v1  ;;  %v7499_v1 = vpack.c.bf16 %v5852_v33, %v5846_v30 }
 0x388   : > { %4556 = vmatprep.mubr.msk.f32.mxu1 %vm1514_vm1, %v1508_v40  ;;  %1894 = vmatpush1.bf16.msra.mxu1 %v7496_v52 }
 0x389   : > { %1895 = vmatprep.subr.bf16.mxu1 %v7497_v5 }
 0x38b   : > { %4557 = vmatmul.mubr.msk.f32.gmra.mrb[74].mxu1 %vm1514_vm1, %v1509_v44 }
 0x38c   : > { %4559 = vmatprep.mubr.msk.f32.mxu1 %vm1514_vm1, %v1510_v41  ;;  %1896 = vmatpush1.bf16.msra.mxu1 %v7498_v53 }
 0x38d   : > { %1897 = vmatprep.subr.bf16.mxu1 %v7499_v1 }
 0x38f   : > { %4560 = vmatmul.mubr.msk.f32.gmra.mrb[76].mxu1 %vm1514_vm1, %v1511_v3 }
 0x390   : > { %4562 = vmatprep.mubr.msk.f32.mxu1 %vm1514_vm1, %v1512_v22  ;;  %1898 = vmatpush1.bf16.msra.mxu1 %v7500_v55  ;;  %v5021_v55 = vld [vmem:[%s5614_s8 + $0x80] sm:$0xff]  }
 0x391   : > { %1899 = vmatprep.subr.bf16.mxu1 %v7501_v56  ;;  %4100 = vmatmul.mubr.msk.bf16.gmra.mrb[64].mxu0 %vm590_vm0, %v5021_v55 }
 0x392   : > { %889 = vmatprep.mubr.bf16.mxu0 %v7504_v6 }
 0x393   : > { %4563 = vmatmul.mubr.msk.f32.gmra.mrb[78].mxu1 %vm1514_vm1, %v1513_v26 }
 0x394   : > { %1900 = vmatpush1.bf16.msra.mxu1 %v7503_v59  ;;  %1917 = vmatprep.mubr.bf16.mxu1 %v7504_v6 }
 0x397   : > { %1918 = vmatmul.mubr.bf16.vlgmr.msra.gmra.mrb[80].mxu1 %v6115_v57 }
 0x398   : > { %1927 = vmatprep.mubr.bf16.mxu1 %v7504_v6 }
 0x39f   : > { %1928 = vmatmul.mubr.bf16.gmra.mrb[84].mxu1 %v6124_v7 }
 0x3a0   : > { %1937 = vmatprep.mubr.bf16.mxu1 %v7504_v6 }
 0x3a7   : > { %1938 = vmatmul.mubr.bf16.gmra.mrb[88].mxu1 %v6129_v10 }
 0x3a8   : > { %1947 = vmatprep.mubr.bf16.mxu1 %v7504_v6 }
 0x3af   : > { %1948 = vmatmul.mubr.bf16.gmra.mrb[92].mxu1 %v6134_v12 }
 0x3b0   : > { %1957 = vmatprep.mubr.bf16.mxu1 %v7504_v6 }
 0x3b7   : > { %1958 = vmatmul.mubr.bf16.gmra.mrb[96].mxu1 %v6139_v14 }
 0x3b8   : > { %1967 = vmatprep.mubr.bf16.mxu1 %v7504_v6 }
 0x3bf   : > { %1968 = vmatmul.mubr.bf16.gmra.mrb[100].mxu1 %v6144_v17 }
 0x3c0   : > { %1977 = vmatprep.mubr.bf16.mxu1 %v7504_v6 }
 0x3c7   : > { %1978 = vmatmul.mubr.bf16.gmra.mrb[104].mxu1 %v6149_v18 }
 0x3c8   : > { %1987 = vmatprep.mubr.bf16.mxu1 %v7504_v6 }
 0x3cf   : > { %1988 = vmatmul.mubr.bf16.gmra.mrb[108].mxu1 %v6154_v19 }
 0x3d0   : > { %2046 = vmatprep.mubr.bf16.mxu1 %v7504_v6 }
 0x44a   : > { %v4543_v21 = vpop.f32.mrb[64].mxu1 }
 0x44b   : > { %v1725_v23 = vsub.f32 0.0, %v4543_v21  ;;  %v1645_v24 = vpop.f32.mrb[65].mxu1 }
 0x44c   : > { %v1724_v25 = vsub.f32 0.0, %v1645_v24 }
 0x44d   : > { %v1742_v27 = vmul.f32 1.442695, %v1725_v23 }
 0x44e   : > { %v1740_v29 = vmul.f32 1.442695, %v1724_v25  ;;  %v4546_v30 = vpop.f32.mrb[66].mxu1 }
 0x44f   : > { %5085 = vpow2.f32 %v1742_v27  ;;  %v1727_v31 = vsub.f32 0.0, %v4546_v30  ;;  %v1655_v33 = vpop.f32.mrb[67].mxu1 }
 0x450   : > { %5087 = vpow2.f32 %v1740_v29  ;;  %v1726_v36 = vsub.f32 0.0, %v1655_v33 }
 0x451   : > { %v1746_v37 = vmul.f32 1.442695, %v1727_v31 }
 0x452   : > { %v1744_v39 = vmul.f32 1.442695, %v1726_v36  ;;  %v4549_v28 = vpop.f32.mrb[68].mxu1 }
 0x453   : > { %5089 = vpow2.f32 %v1746_v37  ;;  %v1729_v2 = vsub.f32 0.0, %v4549_v28  ;;  %v1665_v34 = vpop.f32.mrb[69].mxu1  ;;  %v5022_v28 = vld [vmem:[%s5614_s8 + $0x88] sm:$0xff]  }
 0x454   : > { %5091 = vpow2.f32 %v1744_v39  ;;  %v1728_v38 = vsub.f32 0.0, %v1665_v34  ;;  %4101 = vmatmul.mubr.msk.bf16.gmra.mrb[68].mxu0 %vm590_vm0, %v5022_v28 }
 0x455   : > { %v1750_v50 = vmul.f32 1.442695, %v1729_v2  ;;  %899 = vmatprep.mubr.bf16.mxu0 %v7504_v6 }
 0x456   : > { %v1748_v40 = vmul.f32 1.442695, %v1728_v38  ;;  %v4552_v44 = vpop.f32.mrb[70].mxu1 }
 0x457   : > { %5093 = vpow2.f32 %v1750_v50  ;;  %v1731_v15 = vsub.f32 0.0, %v4552_v44  ;;  %v1675_v54 = vpop.f32.mrb[71].mxu1 }
 0x458   : > { %5095 = vpow2.f32 %v1748_v40  ;;  %v1730_v41 = vsub.f32 0.0, %v1675_v54 }
 0x459   : > { %v5086_v3 = vpop.eup %5085  ;;  %v1754_v45 = vmul.f32 1.442695, %v1731_v15 }
 0x45a   : > { %v5088_v13 = vpop.eup %5087  ;;  %v1773_v35 = vadd.f32 1.0, %v5086_v3  ;;  %v1752_v9 = vmul.f32 1.442695, %v1730_v41  ;;  %v4555_v11 = vpop.f32.mrb[72].mxu1 }
 0x45b   : > { %v1772_v48 = vadd.f32 1.0, %v5088_v13  ;;  %5097 = vpow2.f32 %v1754_v45  ;;  %v1733_v20 = vsub.f32 0.0, %v4555_v11  ;;  %v1685_v8 = vpop.f32.mrb[73].mxu1 }
 0x45c   : > { %5099 = vrcp.f32 %v1773_v35  ;;  %v1732_v49 = vsub.f32 0.0, %v1685_v8 }
 0x45d   : > { %v5090_v22 = vpop.eup %5089  ;;  %5101 = vrcp.f32 %v1772_v48  ;;  %v1758_v26 = vmul.f32 1.442695, %v1733_v20 }
 0x45e   : > { %v5092_v16 = vpop.eup %5091  ;;  %v1775_v43 = vadd.f32 1.0, %v5090_v22  ;;  %5103 = vpow2.f32 %v1752_v9  ;;  %v1756_v32 = vmul.f32 1.442695, %v1732_v49  ;;  %v4558_v60 = vpop.f32.mrb[74].mxu1  ;;  %v7505_v9 = vld [vmem:[#allocation5_spill] sm:$0xff]  ;;  %v7506_v22 = vld [vmem:[#allocation6_spill] sm:$0xff] }
 0x45f   : > { %v1774_v62 = vadd.f32 1.0, %v5092_v16  ;;  %5105 = vpow2.f32 %v1758_v26  ;;  %v1735_v0 = vsub.f32 0.0, %v4558_v60  ;;  %v1695_v61 = vpop.f32.mrb[75].mxu1 }
 0x460   : > { %5107 = vrcp.f32 %v1775_v43  ;;  %v1734_v63 = vsub.f32 0.0, %v1695_v61 }
 0x461   : > { %v5094_v51 = vpop.eup %5093  ;;  %5109 = vrcp.f32 %v1774_v62  ;;  %v1762_v4 = vmul.f32 1.442695, %v1735_v0  ;;  %v5023_v0 = vld [vmem:[%s5614_s8 + $0x90] sm:$0xff]  }
 0x462   : > { %v5096_v52 = vpop.eup %5095  ;;  %v1777_v5 = vadd.f32 1.0, %v5094_v51  ;;  %5111 = vpow2.f32 %v1756_v32  ;;  %v1760_v53 = vmul.f32 1.442695, %v1734_v63  ;;  %v4561_v1 = vpop.f32.mrb[76].mxu1  ;;  %4102 = vmatmul.mubr.msk.bf16.gmra.mrb[72].mxu0 %vm590_vm0, %v5023_v0 }
 0x463   : > { %v1776_v56 = vadd.f32 1.0, %v5096_v52  ;;  %5113 = vpow2.f32 %v1762_v4  ;;  %v1737_v58 = vsub.f32 0.0, %v4561_v1  ;;  %v1705_v59 = vpop.f32.mrb[77].mxu1  ;;  %909 = vmatprep.mubr.bf16.mxu0 %v7504_v6 }
 0x464   : > { %5115 = vrcp.f32 %v1777_v5  ;;  %v1736_v21 = vsub.f32 0.0, %v1705_v59 }
 0x465   : > { %v5098_v23 = vpop.eup %5097  ;;  %5117 = vrcp.f32 %v1776_v56  ;;  %v1766_v24 = vmul.f32 1.442695, %v1737_v58 }
 0x466   : > { %v5100_v25 = vpop.eup %5099  ;;  %v1779_v27 = vadd.f32 1.0, %v5098_v23  ;;  %5119 = vpow2.f32 %v1760_v53  ;;  %v1764_v29 = vmul.f32 1.442695, %v1736_v21  ;;  %v4564_v30 = vpop.f32.mrb[78].mxu1 }
 0x467   : > { %v5102_v31 = vpop.eup %5101  ;;  %1805 = vst [vmem:[%s6164_s19 + $0x8] sm:$0xff] %v5100_v25  ;;  %5121 = vpow2.f32 %v1766_v24  ;;  %v1739_v33 = vsub.f32 0.0, %v4564_v30  ;;  %v1715_v36 = vpop.f32.mrb[79].mxu1 }
 0x468   : > { %v5104_v37 = vpop.eup %5103  ;;  %1804 = vst [vmem:[%s6164_s19] sm:$0xff] %v5102_v31  ;;  %5123 = vrcp.f32 %v1779_v27  ;;  %v1738_v39 = vsub.f32 0.0, %v1715_v36  ;;  %v5024_v36 = vld [vmem:[%s5614_s8 + $0x98] sm:$0xff]  }
 0x469   : > { %v5106_v2 = vpop.eup %5105  ;;  %v1778_v34 = vadd.f32 1.0, %v5104_v37  ;;  %5125 = vpow2.f32 %v1764_v29  ;;  %v1770_v38 = vmul.f32 1.442695, %v1739_v33 }
 0x46a   : > { %v5108_v50 = vpop.eup %5107  ;;  %v1781_v40 = vadd.f32 1.0, %v5106_v2  ;;  %v1768_v44 = vmul.f32 1.442695, %v1738_v39  ;;  %v1919_v15 = vpop.f32.mrb[80].mxu1  ;;  %4103 = vmatmul.mubr.msk.bf16.gmra.mrb[76].mxu0 %vm590_vm0, %v5024_v36 }
 0x46b   : > { %v5110_v54 = vpop.eup %5109  ;;  %1807 = vst [vmem:[%s6164_s19 + $0x18] sm:$0xff] %v5108_v50  ;;  %5127 = vrcp.f32 %v1778_v34  ;;  %v1921_v41 = vpop.f32.mrb[81].mxu1  ;;  %v1920_v11 = vadd.f32 %v1919_v15, %v7505_v9  ;;  %919 = vmatprep.mubr.bf16.mxu0 %v7504_v6 }
 0x46c   : > { %v5112_v3 = vpop.eup %5111  ;;  %1806 = vst [vmem:[%s6164_s19 + $0x10] sm:$0xff] %v5110_v54  ;;  %5129 = vrcp.f32 %v1781_v40  ;;  %v1923_v45 = vpop.f32.mrb[82].mxu1  ;;  %v1922_v26 = vadd.f32 %v1921_v41, %v7506_v22 }
 0x46d   : > { %v5114_v13 = vpop.eup %5113  ;;  %v1780_v35 = vadd.f32 1.0, %v5112_v3  ;;  %5131 = vpow2.f32 %v1770_v38  ;;  %v1924_v48 = vadd.f32 %v1923_v45, %v7505_v9  ;;  %v1925_v20 = vpop.f32.mrb[83].mxu1 }
 0x46e   : > { %v5116_v8 = vpop.eup %5115  ;;  %v1783_v49 = vadd.f32 1.0, %v5114_v13  ;;  %5133 = vpow2.f32 %v1768_v44  ;;  %v1926_v16 = vadd.f32 %v1925_v20, %v7506_v22 }
 0x46f   : > { %v5118_v43 = vpop.eup %5117  ;;  %1809 = vst [vmem:[%s6164_s19 + $0x28] sm:$0xff] %v5116_v8  ;;  %5135 = vrcp.f32 %v1780_v35  ;;  %v1998_v32 = vpack.c.bf16 %v1924_v48, %v1920_v11  ;;  %v5025_v11 = vld [vmem:[%s5614_s8 + $0xa0] sm:$0xff]  }
 0x470   : > { %v5120_v60 = vpop.eup %5119  ;;  %1808 = vst [vmem:[%s6164_s19 + $0x20] sm:$0xff] %v5118_v43  ;;  %5137 = vrcp.f32 %v1783_v49  ;;  %v1999_v62 = vpack.c.bf16 %v1926_v16, %v1922_v26 }
 0x471   : > { %v5122_v61 = vpop.eup %5121  ;;  %v1782_v63 = vadd.f32 1.0, %v5120_v60 }
 0x472   : > { %v5124_v51 = vpop.eup %5123  ;;  %v1785_v4 = vadd.f32 1.0, %v5122_v61  ;;  %v1929_v52 = vpop.f32.mrb[84].mxu1  ;;  %2014 = vmatprep.subr.bf16.mxu1 %v1999_v62  ;;  %4104 = vmatmul.mubr.msk.bf16.gmra.mrb[80].mxu0 %vm590_vm0, %v5025_v11 }
 0x473   : > { %v5126_v5 = vpop.eup %5125  ;;  %1811 = vst [vmem:[%s6164_s19 + $0x38] sm:$0xff] %v5124_v51  ;;  %5139 = vrcp.f32 %v1782_v63  ;;  %v1931_v53 = vpop.f32.mrb[85].mxu1  ;;  %2015 = vmatpush1.bf16.msra.mxu1 %v1998_v32  ;;  %v1930_v58 = vadd.f32 %v1929_v52, %v7505_v9  ;;  %929 = vmatprep.mubr.bf16.mxu0 %v7504_v6  ;;  %v5026_v63 = vld [vmem:[%s5614_s8 + $0xa8] sm:$0xff]  }
 0x474   : > { %5141 = vrcp.f32 %v1785_v4  ;;  %v1784_v1 = vadd.f32 1.0, %v5126_v5  ;;  %v1933_v55 = vpop.f32.mrb[86].mxu1  ;;  %v1932_v24 = vadd.f32 %v1931_v53, %v7506_v22 }
 0x475   : > { %v5128_v56 = vpop.eup %5127  ;;  %v1934_v59 = vadd.f32 %v1933_v55, %v7505_v9  ;;  %v1935_v21 = vpop.f32.mrb[87].mxu1 }
 0x476   : > { %v5130_v23 = vpop.eup %5129  ;;  %1810 = vst [vmem:[%s6164_s19 + $0x30] sm:$0xff] %v5128_v56  ;;  %5143 = vrcp.f32 %v1784_v1  ;;  %v1936_v25 = vadd.f32 %v1935_v21, %v7506_v22  ;;  %v5027_v21 = vld [vmem:[%s5614_s8 + $0xb0] sm:$0xff]  }
 0x477   : > { %v5132_v27 = vpop.eup %5131  ;;  %1813 = vst [vmem:[%s6164_s19 + $0x48] sm:$0xff] %v5130_v23  ;;  %v2000_v29 = vpack.c.bf16 %v1934_v59, %v1930_v58 }
 0x478   : > { %v5134_v30 = vpop.eup %5133  ;;  %v1787_v31 = vadd.f32 1.0, %v5132_v27  ;;  %v2001_v33 = vpack.c.bf16 %v1936_v25, %v1932_v24 }
 0x479   : > { %v5136_v37 = vpop.eup %5135  ;;  %v1786_v39 = vadd.f32 1.0, %v5134_v30 }
 0x47a   : > { %v5138_v28 = vpop.eup %5137  ;;  %1812 = vst [vmem:[%s6164_s19 + $0x40] sm:$0xff] %v5136_v37  ;;  %5145 = vrcp.f32 %v1787_v31  ;;  %v1939_v2 = vpop.f32.mrb[88].mxu1  ;;  %2016 = vmatprep.subr.bf16.mxu1 %v2001_v33  ;;  %4105 = vmatmul.mubr.msk.bf16.gmra.mrb[84].mxu0 %vm590_vm0, %v5026_v63 }
 0x47b   : > { %1815 = vst [vmem:[%s6164_s19 + $0x58] sm:$0xff] %v5138_v28  ;;  %5147 = vrcp.f32 %v1786_v39  ;;  %v1941_v34 = vpop.f32.mrb[89].mxu1  ;;  %2017 = vmatpush1.bf16.msra.mxu1 %v2000_v29  ;;  %v1940_v40 = vadd.f32 %v1939_v2, %v7505_v9  ;;  %939 = vmatprep.mubr.bf16.mxu0 %v7504_v6  ;;  %v5028_v39 = vld [vmem:[%s5614_s8 + $0xb8] sm:$0xff]  }
 0x47c   : > { %v1943_v38 = vpop.f32.mrb[90].mxu1  ;;  %v1942_v41 = vadd.f32 %v1941_v34, %v7506_v22 }
 0x47d   : > { %v5140_v50 = vpop.eup %5139  ;;  %v1944_v44 = vadd.f32 %v1943_v38, %v7505_v9  ;;  %v1945_v15 = vpop.f32.mrb[91].mxu1 }
 0x47e   : > { %v5142_v54 = vpop.eup %5141  ;;  %1814 = vst [vmem:[%s6164_s19 + $0x50] sm:$0xff] %v5140_v50  ;;  %v1946_v3 = vadd.f32 %v1945_v15, %v7506_v22 }
 0x47f   : > { %1817 = vst [vmem:[%s6164_s19 + $0x68] sm:$0xff] %v5142_v54  ;;  %v2002_v45 = vpack.c.bf16 %v1944_v44, %v1940_v40 }
 0x480   : > { %v5144_v13 = vpop.eup %5143  ;;  %v2003_v35 = vpack.c.bf16 %v1946_v3, %v1942_v41  ;;  %v5029_v3 = vld [vmem:[%s5614_s8 + $0xc0] sm:$0xff]  }
 0x481   : > { %1816 = vst [vmem:[%s6164_s19 + $0x60] sm:$0xff] %v5144_v13 }
 0x482   : > { %v1949_v48 = vpop.f32.mrb[92].mxu1  ;;  %2018 = vmatprep.subr.bf16.mxu1 %v2003_v35  ;;  %4106 = vmatmul.mubr.msk.bf16.gmra.mrb[88].mxu0 %vm590_vm0, %v5027_v21 }
 0x483   : > { %v1951_v20 = vpop.f32.mrb[93].mxu1  ;;  %2019 = vmatpush1.bf16.msra.mxu1 %v2002_v45  ;;  %v1950_v16 = vadd.f32 %v1949_v48, %v7505_v9  ;;  %949 = vmatprep.mubr.bf16.mxu0 %v7504_v6 }
 0x484   : > { %v5146_v8 = vpop.eup %5145  ;;  %v1953_v49 = vpop.f32.mrb[94].mxu1  ;;  %v1952_v60 = vadd.f32 %v1951_v20, %v7506_v22 }
 0x485   : > { %v5148_v26 = vpop.eup %5147  ;;  %1819 = vst [vmem:[%s6164_s19 + $0x78] sm:$0xff] %v5146_v8  ;;  %v1954_v43 = vadd.f32 %v1953_v49, %v7505_v9  ;;  %v1955_v32 = vpop.f32.mrb[95].mxu1 }
 0x486   : > { %1818 = vst [vmem:[%s6164_s19 + $0x70] sm:$0xff] %v5148_v26  ;;  %v1956_v62 = vadd.f32 %v1955_v32, %v7506_v22  ;;  %v5031_v32 = vld [vmem:[%s5614_s8 + $0xd0] sm:$0xff]  }
 0x487   : > { %v2004_v0 = vpack.c.bf16 %v1954_v43, %v1950_v16  ;;  %v5030_v43 = vld [vmem:[%s5614_s8 + $0xc8] sm:$0xff]  }
 0x488   : > { %v2005_v61 = vpack.c.bf16 %v1956_v62, %v1952_v60  ;;  %v5032_v60 = vld [vmem:[%s5614_s8 + $0xd8] sm:$0xff]  }
 0x48a   : > { %v1959_v51 = vpop.f32.mrb[96].mxu1  ;;  %2020 = vmatprep.subr.bf16.mxu1 %v2005_v61  ;;  %4107 = vmatmul.mubr.msk.bf16.gmra.mrb[92].mxu0 %vm590_vm0, %v5028_v39 }
 0x48b   : > { %v1961_v4 = vpop.f32.mrb[97].mxu1  ;;  %2021 = vmatpush1.bf16.msra.mxu1 %v2004_v0  ;;  %v1960_v5 = vadd.f32 %v1959_v51, %v7505_v9  ;;  %959 = vmatprep.mubr.bf16.mxu0 %v7504_v6 }
 0x48c   : > { %v1963_v52 = vpop.f32.mrb[98].mxu1  ;;  %v1962_v55 = vadd.f32 %v1961_v4, %v7506_v22 }
 0x48d   : > { %v1964_v53 = vadd.f32 %v1963_v52, %v7505_v9  ;;  %v1965_v1 = vpop.f32.mrb[99].mxu1 }
 0x48e   : > { %v1966_v56 = vadd.f32 %v1965_v1, %v7506_v22 }
 0x48f   : > { %v2006_v58 = vpack.c.bf16 %v1964_v53, %v1960_v5 }
 0x490   : > { %v2007_v59 = vpack.c.bf16 %v1966_v56, %v1962_v55 }
 0x492   : > { %v1969_v23 = vpop.f32.mrb[100].mxu1  ;;  %2022 = vmatprep.subr.bf16.mxu1 %v2007_v59  ;;  %4108 = vmatmul.mubr.msk.bf16.gmra.mrb[96].mxu0 %vm590_vm0, %v5029_v3 }
 0x493   : > { %v1971_v24 = vpop.f32.mrb[101].mxu1  ;;  %2023 = vmatpush1.bf16.msra.mxu1 %v2006_v58  ;;  %v1970_v27 = vadd.f32 %v1969_v23, %v7505_v9  ;;  %969 = vmatprep.mubr.bf16.mxu0 %v7504_v6 }
 0x494   : > { %v1973_v25 = vpop.f32.mrb[102].mxu1  ;;  %v1972_v31 = vadd.f32 %v1971_v24, %v7506_v22 }
 0x495   : > { %v1974_v29 = vadd.f32 %v1973_v25, %v7505_v9  ;;  %v1975_v30 = vpop.f32.mrb[103].mxu1 }
 0x496   : > { %v1976_v33 = vadd.f32 %v1975_v30, %v7506_v22 }
 0x497   : > { %v2008_v36 = vpack.c.bf16 %v1974_v29, %v1970_v27 }
 0x498   : > { %v2009_v37 = vpack.c.bf16 %v1976_v33, %v1972_v31 }
 0x49a   : > { %v1979_v28 = vpop.f32.mrb[104].mxu1  ;;  %2024 = vmatprep.subr.bf16.mxu1 %v2009_v37  ;;  %4109 = vmatmul.mubr.msk.bf16.gmra.mrb[100].mxu0 %vm590_vm0, %v5030_v43 }
 0x49b   : > { %v1981_v2 = vpop.f32.mrb[105].mxu1  ;;  %2025 = vmatpush1.bf16.msra.mxu1 %v2008_v36  ;;  %v1980_v38 = vadd.f32 %v1979_v28, %v7505_v9  ;;  %979 = vmatprep.mubr.bf16.mxu0 %v7504_v6 }
 0x49c   : > { %v1983_v34 = vpop.f32.mrb[106].mxu1  ;;  %v1982_v44 = vadd.f32 %v1981_v2, %v7506_v22 }
 0x49d   : > { %v1984_v50 = vadd.f32 %v1983_v34, %v7505_v9  ;;  %v1985_v40 = vpop.f32.mrb[107].mxu1 }
 0x49e   : > { %v1986_v15 = vadd.f32 %v1985_v40, %v7506_v22  ;;  %v2127_v40 = vld [vmem:[%s5882_s9 + $0x80] sm:$0xff] }
 0x49f   : > { %v2010_v54 = vpack.c.bf16 %v1984_v50, %v1980_v38 }
 0x4a0   : > { %v2011_v41 = vpack.c.bf16 %v1986_v15, %v1982_v44 }
 0x4a2   : > { %v1989_v45 = vpop.f32.mrb[108].mxu1  ;;  %2026 = vmatprep.subr.bf16.mxu1 %v2011_v41  ;;  %4110 = vmatmul.mubr.msk.bf16.gmra.mrb[104].mxu0 %vm590_vm0, %v5031_v32 }
 0x4a3   : > { %v1991_v13 = vpop.f32.mrb[109].mxu1  ;;  %2027 = vmatpush1.bf16.msra.mxu1 %v2010_v54  ;;  %v1990_v11 = vadd.f32 %v1989_v45, %v7505_v9  ;;  %989 = vmatprep.mubr.bf16.mxu0 %v7504_v6 }
 0x4a4   : > { %v1993_v35 = vpop.f32.mrb[110].mxu1  ;;  %v1992_v8 = vadd.f32 %v1991_v13, %v7506_v22 }
 0x4a5   : > { %v1994_v48 = vadd.f32 %v1993_v35, %v7505_v9  ;;  %v1995_v20 = vpop.f32.mrb[111].mxu1 }
 0x4a6   : > { %v1996_v49 = vadd.f32 %v1995_v20, %v7506_v22 }
 0x4a7   : > { %v2012_v26 = vpack.c.bf16 %v1994_v48, %v1990_v11 }
 0x4a8   : > { %v2013_v16 = vpack.c.bf16 %v1996_v49, %v1992_v8 }
 0x4aa   : > { %2028 = vmatprep.subr.bf16.mxu1 %v2013_v16  ;;  %4111 = vmatmul.mubr.msk.bf16.gmra.mrb[108].mxu0 %vm590_vm0, %v5032_v60 }
 0x4ab   : > { %2029 = vmatpush1.bf16.msra.mxu1 %v2012_v26  ;;  %999 = vmatprep.mubr.bf16.mxu0 %v7504_v6 }
 0x4ae   : > { %2047 = vmatmul.mubr.bf16.vlgmr.msra.gmra.mrb[112].mxu1 %v6115_v57  ;;  %v5033_v57 = vld [vmem:[%s5614_s8 + $0xe0] sm:$0xff]  }
 0x4af   : > { %2056 = vmatprep.mubr.bf16.mxu1 %v7504_v6 }
 0x4b2   : > { %4112 = vmatmul.mubr.msk.bf16.gmra.mrb[112].mxu0 %vm590_vm0, %v5033_v57 }
 0x4b3   : > { %1009 = vmatprep.mubr.bf16.mxu0 %v7504_v6 }
 0x4b6   : > { %2057 = vmatmul.mubr.bf16.gmra.mrb[116].mxu1 %v6124_v7  ;;  %v5034_v7 = vld [vmem:[%s5614_s8 + $0xe8] sm:$0xff]  }
 0x4b7   : > { %2066 = vmatprep.mubr.bf16.mxu1 %v7504_v6 }
 0x4ba   : > { %4113 = vmatmul.mubr.msk.bf16.gmra.mrb[116].mxu0 %vm590_vm0, %v5034_v7 }
 0x4bb   : > { %1019 = vmatprep.mubr.bf16.mxu0 %v7504_v6 }
 0x4be   : > { %2067 = vmatmul.mubr.bf16.gmra.mrb[120].mxu1 %v6129_v10  ;;  %v5035_v10 = vld [vmem:[%s5614_s8 + $0xf0] sm:$0xff]  }
 0x4bf   : > { %2076 = vmatprep.mubr.bf16.mxu1 %v7504_v6 }
 0x4c2   : > { %4114 = vmatmul.mubr.msk.bf16.gmra.mrb[120].mxu0 %vm590_vm0, %v5035_v10 }
 0x4c3   : > { %1029 = vmatprep.mubr.bf16.mxu0 %v7504_v6 }
 0x4c6   : > { %2077 = vmatmul.mubr.bf16.gmra.mrb[124].mxu1 %v6134_v12  ;;  %v5036_v12 = vld [vmem:[%s5614_s8 + $0xf8] sm:$0xff]   ;;  %s4380_s8 = sshll.u32 %s5566_s28, 13 }
 0x4c7   : > { %2086 = vmatprep.mubr.bf16.mxu1 %v7504_v6  ;;  %s7392_s22 = scalar_lea.hbm %s7449_s7, %s4380_s8 }
 0x4ca   : > { %4115 = vmatmul.mubr.msk.bf16.gmra.mrb[124].mxu0 %vm590_vm0, %v5036_v12 }
 0x4ce   : > { %2087 = vmatmul.mubr.bf16.gmra.mrb[128].mxu1 %v6139_v14  ;;  %v6274_v14 = vpop.f32.mrb[64].mxu0 }
 0x4cf   : > { %2096 = vmatprep.mubr.bf16.mxu1 %v7504_v6 }
 0x4d6   : > { %2097 = vmatmul.mubr.bf16.gmra.mrb[132].mxu1 %v6144_v17  ;;  %v6276_v17 = vpop.f32.mrb[65].mxu0 }
 0x4d7   : > { %2106 = vmatprep.mubr.bf16.mxu1 %v7504_v6 }
 0x4de   : > { %2107 = vmatmul.mubr.bf16.gmra.mrb[136].mxu1 %v6149_v18  ;;  %v6278_v18 = vpop.f32.mrb[66].mxu0 }
 0x4df   : > { %2116 = vmatprep.mubr.bf16.mxu1 %v7504_v6 }
 0x4e6   : > { %2117 = vmatmul.mubr.bf16.gmra.mrb[140].mxu1 %v6154_v19  ;;  %v6280_v19 = vpop.f32.mrb[67].mxu0 }
 0x4e7   : > { %2739 = vmatprep.mubr.bf16.mxu1 %v7504_v6 }
 0x527   : > { %v6286_v61 = vpop.f32.mrb[68].mxu0 }
 0x528   : > { %v6288_v63 = vpop.f32.mrb[69].mxu0 }
 0x529   : > { %v6290_v51 = vpop.f32.mrb[70].mxu0 }
 0x52a   : > { %v6292_v4 = vpop.f32.mrb[71].mxu0 }
 0x535   : > { %v6298_v53 = vpop.f32.mrb[72].mxu0 }
 0x536   : > { %v6300_v1 = vpop.f32.mrb[73].mxu0 }
 0x537   : > { %v6302_v55 = vpop.f32.mrb[74].mxu0 }
 0x538   : > { %v6304_v56 = vpop.f32.mrb[75].mxu0 }
 0x53d   : > { %v6310_v21 = vpop.f32.mrb[76].mxu0 }
 0x53e   : > { %v6312_v23 = vpop.f32.mrb[77].mxu0 }
 0x53f   : > { %v6314_v24 = vpop.f32.mrb[78].mxu0 }
 0x540   : > { %v6316_v25 = vpop.f32.mrb[79].mxu0 }
 0x545   : > { %v6322_v30 = vpop.f32.mrb[80].mxu0 }
 0x546   : > { %v6324_v31 = vpop.f32.mrb[81].mxu0 }
 0x547   : > { %v6326_v33 = vpop.f32.mrb[82].mxu0 }
 0x548   : > { %v6328_v36 = vpop.f32.mrb[83].mxu0 }
 0x54d   : > { %v6334_v28 = vpop.f32.mrb[84].mxu0 }
 0x54e   : > { %v6336_v2 = vpop.f32.mrb[85].mxu0 }
 0x54f   : > { %v6338_v34 = vpop.f32.mrb[86].mxu0 }
 0x550   : > { %v6340_v38 = vpop.f32.mrb[87].mxu0 }
 0x555   : > { %v6346_v44 = vpop.f32.mrb[88].mxu0 }
 0x556   : > { %v6348_v15 = vpop.f32.mrb[89].mxu0 }
 0x557   : > { %v6350_v54 = vpop.f32.mrb[90].mxu0 }
 0x558   : > { %v6352_v41 = vpop.f32.mrb[91].mxu0 }
 0x55d   : > { %v6358_v13 = vpop.f32.mrb[92].mxu0 }
 0x55e   : > { %7507 = vst [vmem:[#allocation7_spill] sm:$0xff] %v6358_v13  ;;  %v6360_v35 = vpop.f32.mrb[93].mxu0 }
 0x55f   : > { %v6362_v11 = vpop.f32.mrb[94].mxu0 }
 0x560   : > { %7508 = vst [vmem:[#allocation9_spill] sm:$0xff] %v6362_v11  ;;  %v6366_v20 = vpop.f32.mrb[95].mxu0 }
 0x581   : > { %v2048_v49 = vpop.f32.mrb[112].mxu1 }
 0x582   : > { %v2050_v26 = vpop.f32.mrb[113].mxu1 }
 0x583   : > { %v2051_v16 = vadd.f32 %v2050_v26, %v5873_v42  ;;  %v2052_v43 = vpop.f32.mrb[114].mxu1 }
 0x584   : > { %v2054_v32 = vpop.f32.mrb[115].mxu1 }
 0x585   : > { %v2143_v60 = vmul.f32 1.442695, %v2051_v16  ;;  %v2055_v57 = vadd.f32 %v2054_v32, %v5873_v42  ;;  %v2128_v16 = vld [vmem:[%s5882_s9 + $0x88] sm:$0xff] }
 0x587   : > { %5149 = vpow2.f32 %v2143_v60  ;;  %v2145_v7 = vmul.f32 1.442695, %v2055_v57  ;;  %v2049_v60 = vadd.f32 %v2048_v49, %v5887_v47 }
 0x589   : > { %5151 = vpow2.f32 %v2145_v7  ;;  %v2058_v10 = vpop.f32.mrb[116].mxu1 }
 0x58a   : > { %v2060_v12 = vpop.f32.mrb[117].mxu1 }
 0x58b   : > { %v2061_v48 = vadd.f32 %v2060_v12, %v5873_v42  ;;  %v2062_v3 = vpop.f32.mrb[118].mxu1 }
 0x58c   : > { %v2064_v8 = vpop.f32.mrb[119].mxu1 }
 0x58d   : > { %v2147_v45 = vmul.f32 1.442695, %v2061_v48  ;;  %v2065_v50 = vadd.f32 %v2064_v8, %v5873_v42 }
 0x58f   : > { %5153 = vpow2.f32 %v2147_v45  ;;  %v2149_v26 = vmul.f32 1.442695, %v2065_v50  ;;  %v2053_v45 = vadd.f32 %v2052_v43, %v5887_v47 }
 0x591   : > { %v5150_v37 = vpop.eup %5149  ;;  %5155 = vpow2.f32 %v2149_v26  ;;  %v2068_v32 = vpop.f32.mrb[120].mxu1 }
 0x592   : > { %v2070_v57 = vpop.f32.mrb[121].mxu1  ;;  %v2175_v7 = vmul.f32 %v5150_v37, %v2127_v40  ;;  %v2129_v37 = vld [vmem:[%s5882_s9 + $0x90] sm:$0xff] }
 0x593   : > { %v5152_v12 = vpop.eup %5151  ;;  %v2071_v39 = vadd.f32 %v2070_v57, %v5873_v42  ;;  %v2072_v48 = vpop.f32.mrb[122].mxu1  ;;  %v2130_v57 = vld [vmem:[%s5882_s9 + $0x98] sm:$0xff] }
 0x594   : > { %v2176_v50 = vmul.f32 %v5152_v12, %v2128_v16  ;;  %v2074_v8 = vpop.f32.mrb[123].mxu1  ;;  %v2191_v27 = vadd.f32 %v2175_v7, %v2049_v60  ;;  %v2059_v60 = vadd.f32 %v2058_v10, %v5887_v47 }
 0x595   : > { %v2151_v29 = vmul.f32 1.442695, %v2071_v39  ;;  %v2075_v26 = vadd.f32 %v2074_v8, %v5873_v42 }
 0x596   : > { %2207 = vst.msk [vmem:[%s5896_s14 + $0x80] sm:$0xff] %vm1514_vm1, %v2191_v27  ;;  %4597 = vmatprep.mubr.msk.f32.mxu0 %vm1514_vm1, %v2191_v27  ;;  %v6383_v49 = vadd.f32 %v2176_v50, %v2053_v45 }
 0x597   : > { %5157 = vpow2.f32 %v2151_v29  ;;  %v2153_v40 = vmul.f32 1.442695, %v2075_v26 }
 0x598   : > { %2208 = vst.msk [vmem:[%s5896_s14 + $0x88] sm:$0xff] %vm1514_vm1, %v6383_v49  ;;  %v4781_v43 = vpack.c.bf16 %v6383_v49, %v2191_v27  ;;  %v2063_v27 = vadd.f32 %v2062_v3, %v5887_v47 }
 0x599   : > { %v5154_v16 = vpop.eup %5153  ;;  %5159 = vpow2.f32 %v2153_v40  ;;  %v2078_v39 = vpop.f32.mrb[124].mxu1 }
 0x59a   : > { %v2177_v7 = vmul.f32 %v5154_v16, %v2129_v37  ;;  %v2080_v12 = vpop.f32.mrb[125].mxu1  ;;  %4783 = vmatprep.subr.msk.bf16.mxu0 %vm5908_vm2, %v4781_v43 }
 0x59b   : > { %v5156_v29 = vpop.eup %5155  ;;  %v2081_v45 = vadd.f32 %v2080_v12, %v5873_v42  ;;  %v2082_v50 = vpop.f32.mrb[126].mxu1  ;;  %4786 = vmatpush3.bf16.xpose.msk.msra.mxu0 %vm5908_vm2, %v4781_v43  ;;  %v2131_v12 = vld [vmem:[%s5882_s9 + $0xa0] sm:$0xff] }
 0x59c   : > { %v2178_v8 = vmul.f32 %v5156_v29, %v2130_v57  ;;  %v2084_v26 = vpop.f32.mrb[127].mxu1  ;;  %v6398_v10 = vadd.f32 %v2177_v7, %v2059_v60  ;;  %v2132_v57 = vld [vmem:[%s5882_s9 + $0xa8] sm:$0xff]  ;;  %v2069_v7 = vadd.f32 %v2068_v32, %v5887_v47 }
 0x59d   : > { %v2155_v37 = vmul.f32 1.442695, %v2081_v45  ;;  %v2085_v40 = vadd.f32 %v2084_v26, %v5873_v42 }
 0x59e   : > { %v6401_v16 = vadd.f32 %v2178_v8, %v2063_v27  ;;  %2209 = vst.msk [vmem:[%s5896_s14 + $0x90] sm:$0xff] %vm1514_vm1, %v6398_v10 }
 0x59f   : > { %5161 = vpow2.f32 %v2155_v37  ;;  %v2157_v58 = vmul.f32 1.442695, %v2085_v40 }
 0x5a0   : > { %2210 = vst.msk [vmem:[%s5896_s14 + $0x98] sm:$0xff] %vm1514_vm1, %v6401_v16  ;;  %v4787_v3 = vpack.c.bf16 %v6401_v16, %v6398_v10 }
 0x5a1   : > { %v5158_v43 = vpop.eup %5157  ;;  %5163 = vpow2.f32 %v2157_v58  ;;  %v2088_v60 = vpop.f32.mrb[128].mxu1  ;;  %v2073_v58 = vadd.f32 %v2072_v48, %v5887_v47 }
 0x5a2   : > { %v2179_v29 = vmul.f32 %v5158_v43, %v2131_v12  ;;  %v2090_v45 = vpop.f32.mrb[129].mxu1  ;;  %4789 = vmatprep.subr.msk.bf16.mxu0 %vm5908_vm2, %v4787_v3 }
 0x5a3   : > { %v5160_v27 = vpop.eup %5159  ;;  %v2091_v8 = vadd.f32 %v2090_v45, %v5873_v42  ;;  %v2092_v26 = vpop.f32.mrb[130].mxu1  ;;  %4792 = vmatpush3.bf16.xpose.msk.msra.mxu0 %vm5908_vm2, %v4787_v3  ;;  %v2133_v45 = vld [vmem:[%s5882_s9 + $0xb0] sm:$0xff] }
 0x5a4   : > { %v2180_v37 = vmul.f32 %v5160_v27, %v2132_v57  ;;  %v2094_v40 = vpop.f32.mrb[131].mxu1  ;;  %v6420_v32 = vadd.f32 %v2179_v29, %v2069_v7  ;;  %v2134_v57 = vld [vmem:[%s5882_s9 + $0xb8] sm:$0xff]  ;;  %v2079_v29 = vadd.f32 %v2078_v39, %v5887_v47 }
 0x5a5   : > { %v2159_v12 = vmul.f32 1.442695, %v2091_v8  ;;  %v2095_v43 = vadd.f32 %v2094_v40, %v5873_v42 }
 0x5a6   : > { %v6423_v59 = vadd.f32 %v2180_v37, %v2073_v58  ;;  %2211 = vst.msk [vmem:[%s5896_s14 + $0xa0] sm:$0xff] %vm1514_vm1, %v6420_v32 }
 0x5a7   : > { %5165 = vpow2.f32 %v2159_v12  ;;  %v2161_v52 = vmul.f32 1.442695, %v2095_v43 }
 0x5a8   : > { %2212 = vst.msk [vmem:[%s5896_s14 + $0xa8] sm:$0xff] %vm1514_vm1, %v6423_v59  ;;  %v4793_v48 = vpack.c.bf16 %v6423_v59, %v6420_v32 }
 0x5a9   : > { %v5162_v3 = vpop.eup %5161  ;;  %5167 = vpow2.f32 %v2161_v52  ;;  %v2098_v7 = vpop.f32.mrb[132].mxu1  ;;  %v2083_v52 = vadd.f32 %v2082_v50, %v5887_v47 }
 0x5aa   : > { %v2181_v27 = vmul.f32 %v5162_v3, %v2133_v45  ;;  %v2100_v8 = vpop.f32.mrb[133].mxu1  ;;  %4795 = vmatprep.subr.msk.bf16.mxu0 %vm5908_vm2, %v4793_v48 }
 0x5ab   : > { %v5164_v58 = vpop.eup %5163  ;;  %v2101_v37 = vadd.f32 %v2100_v8, %v5873_v42  ;;  %v6439_v40 = vpop.f32.mrb[134].mxu1  ;;  %4798 = vmatpush3.bf16.xpose.msk.msra.mxu0 %vm5908_vm2, %v4793_v48  ;;  %v2135_v8 = vld [vmem:[%s5882_s9 + $0xc0] sm:$0xff] }
 0x5ac   : > { %v2182_v12 = vmul.f32 %v5164_v58, %v2134_v57  ;;  %v2104_v39 = vpop.f32.mrb[135].mxu1  ;;  %v6444_v43 = vadd.f32 %v2181_v27, %v2079_v29  ;;  %v2136_v57 = vld [vmem:[%s5882_s9 + $0xc8] sm:$0xff]  ;;  %v2089_v27 = vadd.f32 %v2088_v60, %v5887_v47  ;;  %v2093_v60 = vadd.f32 %v2092_v26, %v5887_v47 }
 0x5ad   : > { %v2163_v45 = vmul.f32 1.442695, %v2101_v37  ;;  %v2105_v3 = vadd.f32 %v2104_v39, %v5873_v42 }
 0x5ae   : > { %v6447_v5 = vadd.f32 %v2182_v12, %v2083_v52  ;;  %2213 = vst.msk [vmem:[%s5896_s14 + $0xb0] sm:$0xff] %vm1514_vm1, %v6444_v43  ;;  %v6464_v52 = vpop.f32.mrb[96].mxu0 }
 0x5af   : > { %5169 = vpow2.f32 %v2163_v45  ;;  %v2165_v62 = vmul.f32 1.442695, %v2105_v3  ;;  %7509 = vst [vmem:[#allocation10_spill] sm:$0xff] %v6464_v52 }
 0x5b0   : > { %2214 = vst.msk [vmem:[%s5896_s14 + $0xb8] sm:$0xff] %vm1514_vm1, %v6447_v5  ;;  %v4799_v50 = vpack.c.bf16 %v6447_v5, %v6444_v43 }
 0x5b1   : > { %v5166_v48 = vpop.eup %5165  ;;  %5171 = vpow2.f32 %v2165_v62  ;;  %v6459_v29 = vpop.f32.mrb[136].mxu1 }
 0x5b2   : > { %v2183_v58 = vmul.f32 %v5166_v48, %v2135_v8  ;;  %v2110_v37 = vpop.f32.mrb[137].mxu1  ;;  %4801 = vmatprep.subr.msk.bf16.mxu0 %vm5908_vm2, %v4799_v50  ;;  %v6471_v62 = vpop.f32.mrb[97].mxu0 }
 0x5b3   : > { %v5168_v12 = vpop.eup %5167  ;;  %v2111_v39 = vadd.f32 %v2110_v37, %v5873_v42  ;;  %v6467_v45 = vpop.f32.mrb[138].mxu1  ;;  %4804 = vmatpush3.bf16.xpose.msk.msra.mxu0 %vm5908_vm2, %v4799_v50  ;;  %7510 = vst [vmem:[#allocation11_spill] sm:$0xff] %v6471_v62 }
 0x5b4   : > { %v2184_v3 = vmul.f32 %v5168_v12, %v2136_v57  ;;  %v2114_v8 = vpop.f32.mrb[139].mxu1  ;;  %v6474_v48 = vadd.f32 %v2183_v58, %v2089_v27  ;;  %v6476_v0 = vpop.f32.mrb[98].mxu0  ;;  %v2137_v27 = vld [vmem:[%s5882_s9 + $0xd0] sm:$0xff] }
 0x5b5   : > { %7511 = vst [vmem:[#allocation12_spill] sm:$0xff] %v6476_v0  ;;  %v2167_v22 = vmul.f32 1.442695, %v2111_v39  ;;  %v2115_v37 = vadd.f32 %v2114_v8, %v5873_v42  ;;  %v6481_v6 = vpop.f32.mrb[99].mxu0  ;;  %v2138_v8 = vld [vmem:[%s5882_s9 + $0xd8] sm:$0xff] }
 0x5b6   : > { %7512 = vst [vmem:[#allocation13_spill] sm:$0xff] %v6481_v6  ;;  %v6483_v50 = vadd.f32 %v2184_v3, %v2093_v60  ;;  %2215 = vst.msk [vmem:[%s5896_s14 + $0xc0] sm:$0xff] %vm1514_vm1, %v6474_v48  ;;  %v6490_v57 = vpop.f32.mrb[100].mxu0 }
 0x5b7   : > { %7513 = vst [vmem:[#allocation14_spill] sm:$0xff] %v6490_v57  ;;  %5173 = vpow2.f32 %v2167_v22  ;;  %v2169_v58 = vmul.f32 1.442695, %v2115_v37  ;;  %v6493_v12 = vpop.f32.mrb[101].mxu0  ;;  %v2099_v22 = vadd.f32 %v2098_v7, %v5887_v47 }
 0x5b8   : > { %7514 = vst [vmem:[#allocation15_spill] sm:$0xff] %v6493_v12  ;;  %2216 = vst.msk [vmem:[%s5896_s14 + $0xc8] sm:$0xff] %vm1514_vm1, %v6483_v50  ;;  %v4805_v39 = vpack.c.bf16 %v6483_v50, %v6474_v48  ;;  %v6500_v60 = vpop.f32.mrb[102].mxu0 }
 0x5b9   : > { %7515 = vst [vmem:[#allocation16_spill] sm:$0xff] %v6500_v60  ;;  %v5170_v3 = vpop.eup %5169  ;;  %5175 = vpow2.f32 %v2169_v58  ;;  %v2118_v9 = vpop.f32.mrb[140].mxu1 }
 0x5ba   : > { %v6505_v52 = vpop.f32.mrb[103].mxu0  ;;  %v2185_v37 = vmul.f32 %v5170_v3, %v2137_v27  ;;  %v2120_v0 = vpop.f32.mrb[141].mxu1  ;;  %4807 = vmatprep.subr.msk.bf16.mxu0 %vm5908_vm2, %v4805_v39  ;;  %v2103_v27 = vadd.f32 %v6439_v40, %v5887_v47 }
 0x5bb   : > { %7516 = vst [vmem:[#allocation17_spill] sm:$0xff] %v6505_v52  ;;  %v6512_v6 = vpop.f32.mrb[104].mxu0  ;;  %v5172_v58 = vpop.eup %5171  ;;  %v2121_v13 = vadd.f32 %v2120_v0, %v5873_v42  ;;  %4810 = vmatpush3.bf16.xpose.msk.msra.mxu0 %vm5908_vm2, %v4805_v39 }
 0x5bc   : > { %7517 = vst [vmem:[#allocation18_spill] sm:$0xff] %v6512_v6  ;;  %v2122_v11 = vpop.f32.mrb[142].mxu1  ;;  %v6517_v7 = vpop.f32.mrb[105].mxu0  ;;  %v2186_v3 = vmul.f32 %v5172_v58, %v2138_v8  ;;  %v6521_v62 = vadd.f32 %v2185_v37, %v2099_v22  ;;  %v2139_v22 = vld [vmem:[%s5882_s9 + $0xe0] sm:$0xff] }
 0x5bd   : > { %v2124_v26 = vpop.f32.mrb[143].mxu1  ;;  %v6523_v57 = vpop.f32.mrb[106].mxu0  ;;  %v2171_v60 = vmul.f32 1.442695, %v2121_v13 }
 0x5be   : > { %v2125_v0 = vadd.f32 %v2124_v26, %v5873_v42  ;;  %v6528_v39 = vpop.f32.mrb[107].mxu0  ;;  %v6530_v52 = vadd.f32 %v2186_v3, %v2103_v27  ;;  %2217 = vst.msk [vmem:[%s5896_s14 + $0xd0] sm:$0xff] %vm1514_vm1, %v6521_v62  ;;  %v2140_v3 = vld [vmem:[%s5882_s9 + $0xe8] sm:$0xff]  ;;  %v2123_v42 = vadd.f32 %v2122_v11, %v5887_v47 }
 0x5bf   : > { %v6537_v8 = vpop.f32.mrb[108].mxu0  ;;  %5177 = vpow2.f32 %v2171_v60  ;;  %v2109_v60 = vadd.f32 %v6459_v29, %v5887_v47  ;;  %v2113_v29 = vadd.f32 %v6467_v45, %v5887_v47  ;;  %v2141_v45 = vld [vmem:[%s5882_s9 + $0xf0] sm:$0xff] }
 0x5c0   : > { %7518 = vst [vmem:[#allocation19_spill] sm:$0xff] %v6537_v8  ;;  %v2173_v13 = vmul.f32 1.442695, %v2125_v0  ;;  %v6540_v37 = vpop.f32.mrb[109].mxu0  ;;  %2218 = vst.msk [vmem:[%s5896_s14 + $0xd8] sm:$0xff] %vm1514_vm1, %v6530_v52  ;;  %v4811_v26 = vpack.c.bf16 %v6530_v52, %v6521_v62 }
 0x5c1   : > { %7519 = vst [vmem:[#allocation20_spill] sm:$0xff] %v6540_v37  ;;  %v6547_v58 = vpop.f32.mrb[110].mxu0  ;;  %v5174_v27 = vpop.eup %5173 }
 0x5c2   : > { %7520 = vst [vmem:[#allocation21_spill] sm:$0xff] %v6547_v58  ;;  %5179 = vpow2.f32 %v2173_v13  ;;  %v6552_v40 = vpop.f32.mrb[111].mxu0  ;;  %v2187_v0 = vmul.f32 %v5174_v27, %v2139_v22  ;;  %4813 = vmatprep.subr.msk.bf16.mxu0 %vm5908_vm2, %v4811_v26 }
 0x5c3   : > { %v6560_v6 = vpop.f32.mrb[112].mxu0  ;;  %v5176_v13 = vpop.eup %5175  ;;  %4816 = vmatpush3.bf16.xpose.msk.msra.mxu0 %vm5908_vm2, %v4811_v26 }
 0x5c4   : > { %7521 = vst [vmem:[#allocation22_spill] sm:$0xff] %v6560_v6  ;;  %v6564_v12 = vpop.f32.mrb[113].mxu0  ;;  %v2188_v22 = vmul.f32 %v5176_v13, %v2140_v3  ;;  %v6568_v27 = vadd.f32 %v2187_v0, %v2109_v60  ;;  %v2142_v0 = vld [vmem:[%s5882_s9 + $0xf8] sm:$0xff]  ;;  %v2119_v13 = vadd.f32 %v2118_v9, %v5887_v47  ;;  %v7524_v9 = vpack.c.bf16 %v6280_v19, %v6276_v17 }
 0x5c5   : > { %7522 = vst [vmem:[#allocation23_spill] sm:$0xff] %v6564_v12  ;;  %v6570_v8 = vpop.f32.mrb[114].mxu0 }
 0x5c6   : > { %7523 = vst [vmem:[#allocation24_spill] sm:$0xff] %v6570_v8  ;;  %v6574_v58 = vpop.f32.mrb[115].mxu0  ;;  %v6576_v37 = vadd.f32 %v2188_v22, %v2113_v29  ;;  %2219 = vst.msk [vmem:[%s5896_s14 + $0xe0] sm:$0xff] %vm1514_vm1, %v6568_v27 }
 0x5c7   : > { %v6609_v11 = vpop.f32.mrb[116].mxu0 }
 0x5c8   : > { %2220 = vst.msk [vmem:[%s5896_s14 + $0xe8] sm:$0xff] %vm1514_vm1, %v6576_v37  ;;  %v4817_v3 = vpack.c.bf16 %v6576_v37, %v6568_v27 }
 0x5c9   : > { %v5178_v60 = vpop.eup %5177 }
 0x5ca   : > { %v2189_v29 = vmul.f32 %v5178_v60, %v2141_v45  ;;  %4819 = vmatprep.subr.msk.bf16.mxu0 %vm5908_vm2, %v4817_v3 }
 0x5cb   : > { %4822 = vmatpush3.bf16.xpose.msk.msra.mxu0 %vm5908_vm2, %v4817_v3 }
 0x5cc   : > { %v5180_v22 = vpop.eup %5179  ;;  %v2205_v6 = vadd.f32 %v2189_v29, %v2119_v13 }
 0x5cd   : > { %v2190_v26 = vmul.f32 %v5180_v22, %v2142_v0 }
 0x5ce   : > { %2221 = vst.msk [vmem:[%s5896_s14 + $0xf0] sm:$0xff] %vm1514_vm1, %v2205_v6 }
 0x5cf   : > { %v2206_v8 = vadd.f32 %v2190_v26, %v2123_v42  ;;  %v7525_v42 = vpack.c.bf16 %v6278_v18, %v6274_v14  ;;  %v6616_v26 = vpop.f32.mrb[117].mxu0  ;;  %v7527_v18 = vpack.c.bf16 %v6290_v51, %v6286_v61  ;;  %v7530_v61 = vpack.c.bf16 %v6316_v25, %v6312_v23 }
 0x5d0   : > { %v6621_v17 = vpop.f32.mrb[118].mxu0 }
 0x5d1   : > { %2222 = vst.msk [vmem:[%s5896_s14 + $0xf8] sm:$0xff] %vm1514_vm1, %v2206_v8  ;;  %v4823_v12 = vpack.c.bf16 %v2206_v8, %v2205_v6  ;;  %v1098_v19 = vpack.c.bf16 %v6621_v17, %v6609_v11  ;;  %v6879_v11 = vld [vmem:[%s5644_s17 + $0xd0] sm:$0xff]   ;;  %v6889_v17 = vld [vmem:[%s5644_s17 + $0xe0] sm:$0xff]  }
 0x5d3   : > { %4825 = vmatprep.subr.msk.bf16.mxu0 %vm5908_vm2, %v4823_v12 }
 0x5d4   : > { %4828 = vmatpush3.bf16.xpose.msk.msra.mxu0 %vm5908_vm2, %v4823_v12  ;;  %v7526_v12 = vpack.c.bf16 %v6292_v4, %v6288_v63  ;;  %v7528_v63 = vpack.c.bf16 %v6304_v56, %v6300_v1 }
 0x5d5   : > { %2578 = vmatprep.subr.bf16.mxu0 %v7524_v9 }
 0x5db   : > { %4598 = vmatmul.mubr.msk.f32.vlgmr.msra.gmra.mrb[128].mxu0 %vm1514_vm1, %v6383_v49  ;;  %v6625_v49 = vpop.f32.mrb[119].mxu0 }
 0x5dc   : > { %4600 = vmatprep.mubr.msk.f32.mxu0 %vm1514_vm1, %v6398_v10  ;;  %2579 = vmatpush1.bf16.msra.mxu0 %v7525_v42  ;;  %v1099_v14 = vpack.c.bf16 %v6625_v49, %v6616_v26  ;;  %v6641_v4 = vpop.f32.mrb[120].mxu0  ;;  %v7529_v10 = vpack.c.bf16 %v6302_v55, %v6298_v53  ;;  %v7531_v55 = vpack.c.bf16 %v6314_v24, %v6310_v21  ;;  %v6884_v26 = vld [vmem:[%s5644_s17 + $0xd8] sm:$0xff]   ;;  %v6899_v49 = vld [vmem:[%s5644_s17 + $0xf0] sm:$0xff]  }
 0x5dd   : > { %2580 = vmatprep.subr.bf16.mxu0 %v7526_v12  ;;  %v7534_v24 = vpack.c.bf16 %v6340_v38, %v6336_v2  ;;  %v7536_v2 = vpack.c.bf16 %v6352_v41, %v6348_v15  ;;  %v7537_v38 = vpack.c.bf16 %v6350_v54, %v6346_v44  ;;  %v7539_v15 = vld [vmem:[#allocation9_spill] sm:$0xff]  ;;  %v7540_v41 = vld [vmem:[#allocation7_spill] sm:$0xff]  ;;  %v6733_v54 = vld [vmem:[%s5644_s17 + $0x98] sm:$0xff]  }
 0x5de   : > { %v6728_v44 = vld [vmem:[%s5644_s17 + $0x90] sm:$0xff]  }
 0x5df   : > { %4601 = vmatmul.mubr.msk.f32.gmra.mrb[130].mxu0 %vm1514_vm1, %v6401_v16  ;;  %v6648_v16 = vpop.f32.mrb[121].mxu0 }
 0x5e0   : > { %4603 = vmatprep.mubr.msk.f32.mxu0 %vm1514_vm1, %v6420_v32  ;;  %2581 = vmatpush1.bf16.msra.mxu0 %v7527_v18  ;;  %v6653_v51 = vpop.f32.mrb[122].mxu0  ;;  %v7541_v32 = vpack.c.bf16 %v7539_v15, %v7540_v41 }
 0x5e1   : > { %2582 = vmatprep.subr.bf16.mxu0 %v7528_v63  ;;  %v1100_v1 = vpack.c.bf16 %v6653_v51, %v6641_v4  ;;  %v6657_v56 = vpop.f32.mrb[123].mxu0  ;;  %v7570_v51 = vld [vmem:[#allocation8_spill] sm:$0xff] }
 0x5e2   : > { %v1101_v53 = vpack.c.bf16 %v6657_v56, %v6648_v16  ;;  %v6673_v23 = vpop.f32.mrb[124].mxu0 }
 0x5e3   : > { %4604 = vmatmul.mubr.msk.f32.gmra.mrb[132].mxu0 %vm1514_vm1, %v6423_v59  ;;  %v7532_v59 = vpack.c.bf16 %v6328_v36, %v6324_v31  ;;  %v6680_v21 = vpop.f32.mrb[125].mxu0 }
 0x5e4   : > { %4606 = vmatprep.mubr.msk.f32.mxu0 %vm1514_vm1, %v6444_v43  ;;  %2583 = vmatpush1.bf16.msra.mxu0 %v7529_v10  ;;  %v6685_v25 = vpop.f32.mrb[126].mxu0  ;;  %v7542_v43 = vmov 0  }
 0x5e5   : > { %2584 = vmatprep.subr.bf16.mxu0 %v7530_v61  ;;  %v1102_v31 = vpack.c.bf16 %v6685_v25, %v6673_v23  ;;  %v6689_v36 = vpop.f32.mrb[127].mxu0 }
 0x5e7   : > { %4607 = vmatmul.mubr.msk.f32.gmra.mrb[134].mxu0 %vm1514_vm1, %v6447_v5  ;;  %v7533_v5 = vpack.c.bf16 %v6326_v33, %v6322_v30  ;;  %v1103_v30 = vpack.c.bf16 %v6689_v36, %v6680_v21  ;;  %v7535_v33 = vpack.c.bf16 %v6338_v34, %v6334_v28  ;;  %v7538_v28 = vpack.c.bf16 %v6366_v20, %v6360_v35  ;;  %v6714_v34 = vld [vmem:[%s5644_s17 + $0x80] sm:$0xff]   ;;  %v6743_v20 = vld [vmem:[%s5644_s17 + $0xa8] sm:$0xff]  }
 0x5e8   : > { %2585 = vmatpush1.bf16.msra.mxu0 %v7531_v55  ;;  %4609 = vmatprep.mubr.msk.f32.mxu0 %vm1514_vm1, %v6474_v48  ;;  %v6738_v35 = vld [vmem:[%s5644_s17 + $0xa0] sm:$0xff]  }
 0x5e9   : > { %2586 = vmatprep.subr.bf16.mxu0 %v7532_v59 }
 0x5eb   : > { %4610 = vmatmul.mubr.msk.f32.gmra.mrb[136].mxu0 %vm1514_vm1, %v6483_v50 }
 0x5ec   : > { %2587 = vmatpush1.bf16.msra.mxu0 %v7533_v5  ;;  %4612 = vmatprep.mubr.msk.f32.mxu0 %vm1514_vm1, %v6521_v62  ;;  %v6753_v62 = vld [vmem:[%s5644_s17 + $0xb8] sm:$0xff]  }
 0x5ed   : > { %2588 = vmatprep.subr.bf16.mxu0 %v7534_v24 }
 0x5ef   : > { %4613 = vmatmul.mubr.msk.f32.gmra.mrb[138].mxu0 %vm1514_vm1, %v6530_v52  ;;  %v6748_v52 = vld [vmem:[%s5644_s17 + $0xb0] sm:$0xff]  }
 0x5f0   : > { %2589 = vmatpush1.bf16.msra.mxu0 %v7535_v33  ;;  %4615 = vmatprep.mubr.msk.f32.mxu0 %vm1514_vm1, %v6568_v27 }
 0x5f1   : > { %2590 = vmatprep.subr.bf16.mxu0 %v7536_v2 }
 0x5f3   : > { %4616 = vmatmul.mubr.msk.f32.gmra.mrb[140].mxu0 %vm1514_vm1, %v6576_v37 }
 0x5f4   : > { %2591 = vmatpush1.bf16.msra.mxu0 %v7537_v38  ;;  %4618 = vmatprep.mubr.msk.f32.mxu0 %vm1514_vm1, %v2205_v6  ;;  %v6723_v6 = vld [vmem:[%s5644_s17 + $0x88] sm:$0xff]  }
 0x5f5   : > { %2592 = vmatprep.subr.bf16.mxu0 %v7538_v28 }
 0x5f7   : > { %4619 = vmatmul.mubr.msk.f32.gmra.mrb[142].mxu0 %vm1514_vm1, %v2206_v8 }
 0x5f8   : > { %2593 = vmatpush1.bf16.msra.mxu0 %v7541_v32  ;;  %2610 = vmatprep.mubr.bf16.mxu0 %v7542_v43 }
 0x5fb   : > { %2611 = vmatmul.mubr.bf16.vlgmr.msra.gmra.mrb[144].mxu0 %v6714_v34 }
 0x5fc   : > { %2620 = vmatprep.mubr.bf16.mxu0 %v7542_v43 }
 0x603   : > { %2621 = vmatmul.mubr.bf16.gmra.mrb[148].mxu0 %v6723_v6 }
 0x604   : > { %2630 = vmatprep.mubr.bf16.mxu0 %v7542_v43 }
 0x60b   : > { %2631 = vmatmul.mubr.bf16.gmra.mrb[152].mxu0 %v6728_v44 }
 0x60c   : > { %2640 = vmatprep.mubr.bf16.mxu0 %v7542_v43 }
 0x613   : > { %2641 = vmatmul.mubr.bf16.gmra.mrb[156].mxu0 %v6733_v54 }
 0x614   : > { %2650 = vmatprep.mubr.bf16.mxu0 %v7542_v43 }
 0x61b   : > { %2651 = vmatmul.mubr.bf16.gmra.mrb[160].mxu0 %v6738_v35 }
 0x61c   : > { %2660 = vmatprep.mubr.bf16.mxu0 %v7542_v43 }
 0x623   : > { %2661 = vmatmul.mubr.bf16.gmra.mrb[164].mxu0 %v6743_v20 }
 0x624   : > { %2670 = vmatprep.mubr.bf16.mxu0 %v7542_v43 }
 0x62b   : > { %2671 = vmatmul.mubr.bf16.gmra.mrb[168].mxu0 %v6748_v52 }
 0x62c   : > { %2680 = vmatprep.mubr.bf16.mxu0 %v7542_v43 }
 0x633   : > { %2681 = vmatmul.mubr.bf16.gmra.mrb[172].mxu0 %v6753_v62 }
 0x6ae   : > { %v4599_v48 = vpop.f32.mrb[128].mxu0 }
 0x6af   : > { %v2417_v50 = vsub.f32 0.0, %v4599_v48  ;;  %v2337_v8 = vpop.f32.mrb[129].mxu0 }
 0x6b0   : > { %v2416_v37 = vsub.f32 0.0, %v2337_v8 }
 0x6b1   : > { %v2434_v27 = vmul.f32 1.442695, %v2417_v50 }
 0x6b2   : > { %v2432_v45 = vmul.f32 1.442695, %v2416_v37  ;;  %v4602_v3 = vpop.f32.mrb[130].mxu0 }
 0x6b3   : > { %5181 = vpow2.f32 %v2434_v27  ;;  %v2419_v60 = vsub.f32 0.0, %v4602_v3  ;;  %v2347_v0 = vpop.f32.mrb[131].mxu0 }
 0x6b4   : > { %5183 = vpow2.f32 %v2432_v45  ;;  %v2418_v13 = vsub.f32 0.0, %v2347_v0 }
 0x6b5   : > { %v2438_v29 = vmul.f32 1.442695, %v2419_v60 }
 0x6b6   : > { %v2436_v22 = vmul.f32 1.442695, %v2418_v13  ;;  %v4605_v9 = vpop.f32.mrb[132].mxu0 }
 0x6b7   : > { %5185 = vpow2.f32 %v2438_v29  ;;  %v2421_v42 = vsub.f32 0.0, %v4605_v9  ;;  %v2357_v12 = vpop.f32.mrb[133].mxu0 }
 0x6b8   : > { %5187 = vpow2.f32 %v2436_v22  ;;  %v2420_v18 = vsub.f32 0.0, %v2357_v12 }
 0x6b9   : > { %v2442_v63 = vmul.f32 1.442695, %v2421_v42 }
 0x6ba   : > { %v2440_v10 = vmul.f32 1.442695, %v2420_v18  ;;  %v4608_v61 = vpop.f32.mrb[134].mxu0 }
 0x6bb   : > { %5189 = vpow2.f32 %v2442_v63  ;;  %v2423_v55 = vsub.f32 0.0, %v4608_v61  ;;  %v2367_v59 = vpop.f32.mrb[135].mxu0 }
 0x6bc   : > { %5191 = vpow2.f32 %v2440_v10  ;;  %v2422_v5 = vsub.f32 0.0, %v2367_v59 }
 0x6bd   : > { %v5182_v24 = vpop.eup %5181  ;;  %v2446_v33 = vmul.f32 1.442695, %v2423_v55 }
 0x6be   : > { %v5184_v2 = vpop.eup %5183  ;;  %v2465_v38 = vadd.f32 1.0, %v5182_v24  ;;  %v2444_v28 = vmul.f32 1.442695, %v2422_v5  ;;  %v4611_v15 = vpop.f32.mrb[136].mxu0 }
 0x6bf   : > { %v2464_v41 = vadd.f32 1.0, %v5184_v2  ;;  %5193 = vpow2.f32 %v2446_v33  ;;  %v2425_v32 = vsub.f32 0.0, %v4611_v15  ;;  %v2377_v48 = vpop.f32.mrb[137].mxu0 }
 0x6c0   : > { %5195 = vrcp.f32 %v2465_v38  ;;  %v2424_v50 = vsub.f32 0.0, %v2377_v48 }
 0x6c1   : > { %v5186_v8 = vpop.eup %5185  ;;  %5197 = vrcp.f32 %v2464_v41  ;;  %v2450_v37 = vmul.f32 1.442695, %v2425_v32 }
 0x6c2   : > { %v5188_v27 = vpop.eup %5187  ;;  %v2467_v45 = vadd.f32 1.0, %v5186_v8  ;;  %5199 = vpow2.f32 %v2444_v28  ;;  %v2448_v3 = vmul.f32 1.442695, %v2424_v50  ;;  %v4614_v60 = vpop.f32.mrb[138].mxu0 }
 0x6c3   : > { %v2466_v0 = vadd.f32 1.0, %v5188_v27  ;;  %5201 = vpow2.f32 %v2450_v37  ;;  %v2427_v13 = vsub.f32 0.0, %v4614_v60  ;;  %v2387_v29 = vpop.f32.mrb[139].mxu0 }
 0x6c4   : > { %5203 = vrcp.f32 %v2467_v45  ;;  %v2426_v22 = vsub.f32 0.0, %v2387_v29 }
 0x6c5   : > { %v5190_v9 = vpop.eup %5189  ;;  %5205 = vrcp.f32 %v2466_v0  ;;  %v2454_v42 = vmul.f32 1.442695, %v2427_v13 }
 0x6c6   : > { %v5192_v12 = vpop.eup %5191  ;;  %v2469_v18 = vadd.f32 1.0, %v5190_v9  ;;  %5207 = vpow2.f32 %v2448_v3  ;;  %v2452_v63 = vmul.f32 1.442695, %v2426_v22  ;;  %v4617_v10 = vpop.f32.mrb[140].mxu0 }
 0x6c7   : > { %v2468_v61 = vadd.f32 1.0, %v5192_v12  ;;  %5209 = vpow2.f32 %v2454_v42  ;;  %v2429_v55 = vsub.f32 0.0, %v4617_v10  ;;  %v2397_v59 = vpop.f32.mrb[141].mxu0 }
 0x6c8   : > { %5211 = vrcp.f32 %v2469_v18  ;;  %v2428_v5 = vsub.f32 0.0, %v2397_v59 }
 0x6c9   : > { %v5194_v24 = vpop.eup %5193  ;;  %5213 = vrcp.f32 %v2468_v61  ;;  %v2458_v33 = vmul.f32 1.442695, %v2429_v55 }
 0x6ca   : > { %v5196_v2 = vpop.eup %5195  ;;  %v2471_v38 = vadd.f32 1.0, %v5194_v24  ;;  %5215 = vpow2.f32 %v2452_v63  ;;  %v2456_v28 = vmul.f32 1.442695, %v2428_v5  ;;  %v4620_v15 = vpop.f32.mrb[142].mxu0  ;;  %v7543_v63 = vld [vmem:[#allocation5_spill] sm:$0xff]  ;;  %v7544_v24 = vld [vmem:[#allocation6_spill] sm:$0xff] }
 0x6cb   : > { %v5198_v41 = vpop.eup %5197  ;;  %4213 = vst [vmem:[%s6164_s19 + $0x88] sm:$0xff] %v5196_v2  ;;  %5217 = vpow2.f32 %v2458_v33  ;;  %v2431_v32 = vsub.f32 0.0, %v4620_v15  ;;  %v2407_v48 = vpop.f32.mrb[143].mxu0 }
 0x6cc   : > { %v5200_v50 = vpop.eup %5199  ;;  %4212 = vst [vmem:[%s6164_s19 + $0x80] sm:$0xff] %v5198_v41  ;;  %5219 = vrcp.f32 %v2471_v38  ;;  %v2430_v8 = vsub.f32 0.0, %v2407_v48 }
 0x6cd   : > { %v5202_v37 = vpop.eup %5201  ;;  %v2470_v27 = vadd.f32 1.0, %v5200_v50  ;;  %5221 = vpow2.f32 %v2456_v28  ;;  %v2462_v45 = vmul.f32 1.442695, %v2431_v32 }
 0x6ce   : > { %v5204_v3 = vpop.eup %5203  ;;  %v2473_v60 = vadd.f32 1.0, %v5202_v37  ;;  %v2460_v0 = vmul.f32 1.442695, %v2430_v8  ;;  %v2612_v13 = vpop.f32.mrb[144].mxu0 }
 0x6cf   : > { %v5206_v29 = vpop.eup %5205  ;;  %4215 = vst [vmem:[%s6164_s19 + $0x98] sm:$0xff] %v5204_v3  ;;  %5223 = vrcp.f32 %v2470_v27  ;;  %v2614_v22 = vpop.f32.mrb[145].mxu0  ;;  %v2613_v10 = vadd.f32 %v2612_v13, %v7543_v63 }
 0x6d0   : > { %v5208_v9 = vpop.eup %5207  ;;  %4214 = vst [vmem:[%s6164_s19 + $0x90] sm:$0xff] %v5206_v29  ;;  %5225 = vrcp.f32 %v2473_v60  ;;  %v2616_v42 = vpop.f32.mrb[146].mxu0  ;;  %v2615_v33 = vadd.f32 %v2614_v22, %v7544_v24 }
 0x6d1   : > { %v5210_v12 = vpop.eup %5209  ;;  %v2472_v18 = vadd.f32 1.0, %v5208_v9  ;;  %5227 = vpow2.f32 %v2462_v45  ;;  %v2617_v61 = vadd.f32 %v2616_v42, %v7543_v63  ;;  %v2618_v55 = vpop.f32.mrb[147].mxu0 }
 0x6d2   : > { %v5212_v59 = vpop.eup %5211  ;;  %v2475_v5 = vadd.f32 1.0, %v5210_v12  ;;  %5229 = vpow2.f32 %v2460_v0  ;;  %v2619_v2 = vadd.f32 %v2618_v55, %v7544_v24 }
 0x6d3   : > { %v5214_v38 = vpop.eup %5213  ;;  %4217 = vst [vmem:[%s6164_s19 + $0xa8] sm:$0xff] %v5212_v59  ;;  %5231 = vrcp.f32 %v2472_v18  ;;  %v2691_v28 = vpack.c.bf16 %v2617_v61, %v2613_v10 }
 0x6d4   : > { %v5216_v15 = vpop.eup %5215  ;;  %4216 = vst [vmem:[%s6164_s19 + $0xa0] sm:$0xff] %v5214_v38  ;;  %5233 = vrcp.f32 %v2475_v5  ;;  %v2692_v41 = vpack.c.bf16 %v2619_v2, %v2615_v33 }
 0x6d5   : > { %v5218_v32 = vpop.eup %5217  ;;  %v2474_v48 = vadd.f32 1.0, %v5216_v15 }
 0x6d6   : > { %v5220_v50 = vpop.eup %5219  ;;  %v2477_v8 = vadd.f32 1.0, %v5218_v32  ;;  %v2622_v37 = vpop.f32.mrb[148].mxu0  ;;  %2707 = vmatprep.subr.bf16.mxu1 %v2692_v41 }
 0x6d7   : > { %v5222_v27 = vpop.eup %5221  ;;  %4219 = vst [vmem:[%s6164_s19 + $0xb8] sm:$0xff] %v5220_v50  ;;  %5235 = vrcp.f32 %v2474_v48  ;;  %v2624_v45 = vpop.f32.mrb[149].mxu0  ;;  %2708 = vmatpush1.bf16.msra.mxu1 %v2691_v28  ;;  %v2623_v13 = vadd.f32 %v2622_v37, %v7543_v63 }
 0x6d8   : > { %5237 = vrcp.f32 %v2477_v8  ;;  %v2476_v3 = vadd.f32 1.0, %v5222_v27  ;;  %v2626_v60 = vpop.f32.mrb[150].mxu0  ;;  %v2625_v42 = vadd.f32 %v2624_v45, %v7544_v24 }
 0x6d9   : > { %v5224_v0 = vpop.eup %5223  ;;  %v2627_v29 = vadd.f32 %v2626_v60, %v7543_v63  ;;  %v2628_v22 = vpop.f32.mrb[151].mxu0 }
 0x6da   : > { %v5226_v9 = vpop.eup %5225  ;;  %4218 = vst [vmem:[%s6164_s19 + $0xb0] sm:$0xff] %v5224_v0  ;;  %5239 = vrcp.f32 %v2476_v3  ;;  %v2629_v12 = vadd.f32 %v2628_v22, %v7544_v24 }
 0x6db   : > { %v5228_v18 = vpop.eup %5227  ;;  %4221 = vst [vmem:[%s6164_s19 + $0xc8] sm:$0xff] %v5226_v9  ;;  %v2693_v10 = vpack.c.bf16 %v2627_v29, %v2623_v13 }
 0x6dc   : > { %v5230_v61 = vpop.eup %5229  ;;  %v2479_v55 = vadd.f32 1.0, %v5228_v18  ;;  %v2694_v59 = vpack.c.bf16 %v2629_v12, %v2625_v42 }
 0x6dd   : > { %v5232_v5 = vpop.eup %5231  ;;  %v2478_v33 = vadd.f32 1.0, %v5230_v61 }
 0x6de   : > { %v5234_v2 = vpop.eup %5233  ;;  %4220 = vst [vmem:[%s6164_s19 + $0xc0] sm:$0xff] %v5232_v5  ;;  %5241 = vrcp.f32 %v2479_v55  ;;  %v2632_v38 = vpop.f32.mrb[152].mxu0  ;;  %2709 = vmatprep.subr.bf16.mxu1 %v2694_v59 }
 0x6df   : > { %4223 = vst [vmem:[%s6164_s19 + $0xd8] sm:$0xff] %v5234_v2  ;;  %5243 = vrcp.f32 %v2478_v33  ;;  %v2634_v28 = vpop.f32.mrb[153].mxu0  ;;  %2710 = vmatpush1.bf16.msra.mxu1 %v2693_v10  ;;  %v2633_v32 = vadd.f32 %v2632_v38, %v7543_v63 }
 0x6e0   : > { %v2636_v15 = vpop.f32.mrb[154].mxu0  ;;  %v2635_v37 = vadd.f32 %v2634_v28, %v7544_v24 }
 0x6e1   : > { %v5236_v41 = vpop.eup %5235  ;;  %v2637_v48 = vadd.f32 %v2636_v15, %v7543_v63  ;;  %v2638_v50 = vpop.f32.mrb[155].mxu0 }
 0x6e2   : > { %v5238_v8 = vpop.eup %5237  ;;  %4222 = vst [vmem:[%s6164_s19 + $0xd0] sm:$0xff] %v5236_v41  ;;  %v2639_v27 = vadd.f32 %v2638_v50, %v7544_v24 }
 0x6e3   : > { %4225 = vst [vmem:[%s6164_s19 + $0xe8] sm:$0xff] %v5238_v8  ;;  %v2695_v45 = vpack.c.bf16 %v2637_v48, %v2633_v32 }
 0x6e4   : > { %v5240_v3 = vpop.eup %5239  ;;  %v2696_v60 = vpack.c.bf16 %v2639_v27, %v2635_v37 }
 0x6e5   : > { %4224 = vst [vmem:[%s6164_s19 + $0xe0] sm:$0xff] %v5240_v3 }
 0x6e6   : > { %v2642_v0 = vpop.f32.mrb[156].mxu0  ;;  %2711 = vmatprep.subr.bf16.mxu1 %v2696_v60 }
 0x6e7   : > { %v2644_v13 = vpop.f32.mrb[157].mxu0  ;;  %2712 = vmatpush1.bf16.msra.mxu1 %v2695_v45  ;;  %v2643_v42 = vadd.f32 %v2642_v0, %v7543_v63 }
 0x6e8   : > { %v5242_v29 = vpop.eup %5241  ;;  %v2646_v22 = vpop.f32.mrb[158].mxu0  ;;  %v2645_v10 = vadd.f32 %v2644_v13, %v7544_v24 }
 0x6e9   : > { %v5244_v9 = vpop.eup %5243  ;;  %4227 = vst [vmem:[%s6164_s19 + $0xf8] sm:$0xff] %v5242_v29  ;;  %v2647_v12 = vadd.f32 %v2646_v22, %v7543_v63  ;;  %v2648_v18 = vpop.f32.mrb[159].mxu0 }
 0x6ea   : > { %4226 = vst [vmem:[%s6164_s19 + $0xf0] sm:$0xff] %v5244_v9  ;;  %v2649_v61 = vadd.f32 %v2648_v18, %v7544_v24 }
 0x6eb   : > { %v2697_v55 = vpack.c.bf16 %v2647_v12, %v2643_v42 }
 0x6ec   : > { %v2698_v59 = vpack.c.bf16 %v2649_v61, %v2645_v10 }
 0x6ee   : > { %v2652_v5 = vpop.f32.mrb[160].mxu0  ;;  %2713 = vmatprep.subr.bf16.mxu1 %v2698_v59 }
 0x6ef   : > { %v2654_v33 = vpop.f32.mrb[161].mxu0  ;;  %2714 = vmatpush1.bf16.msra.mxu1 %v2697_v55  ;;  %v2653_v38 = vadd.f32 %v2652_v5, %v7543_v63 }
 0x6f0   : > { %v2656_v2 = vpop.f32.mrb[162].mxu0  ;;  %v2655_v41 = vadd.f32 %v2654_v33, %v7544_v24 }
 0x6f1   : > { %v2657_v28 = vadd.f32 %v2656_v2, %v7543_v63  ;;  %v2658_v15 = vpop.f32.mrb[163].mxu0 }
 0x6f2   : > { %v2659_v32 = vadd.f32 %v2658_v15, %v7544_v24 }
 0x6f3   : > { %v2699_v48 = vpack.c.bf16 %v2657_v28, %v2653_v38 }
 0x6f4   : > { %v2700_v50 = vpack.c.bf16 %v2659_v32, %v2655_v41 }
 0x6f6   : > { %v2662_v8 = vpop.f32.mrb[164].mxu0  ;;  %2715 = vmatprep.subr.bf16.mxu1 %v2700_v50 }
 0x6f7   : > { %v2664_v37 = vpop.f32.mrb[165].mxu0  ;;  %2716 = vmatpush1.bf16.msra.mxu1 %v2699_v48  ;;  %v2663_v45 = vadd.f32 %v2662_v8, %v7543_v63 }
 0x6f8   : > { %v2666_v27 = vpop.f32.mrb[166].mxu0  ;;  %v2665_v0 = vadd.f32 %v2664_v37, %v7544_v24 }
 0x6f9   : > { %v2667_v3 = vadd.f32 %v2666_v27, %v7543_v63  ;;  %v2668_v60 = vpop.f32.mrb[167].mxu0  ;;  %v7545_v27 = vld [vmem:[#allocation13_spill] sm:$0xff] }
 0x6fa   : > { %v2669_v13 = vadd.f32 %v2668_v60, %v7544_v24  ;;  %v7548_v60 = vld [vmem:[#allocation12_spill] sm:$0xff] }
 0x6fb   : > { %v2701_v29 = vpack.c.bf16 %v2667_v3, %v2663_v45  ;;  %v7546_v45 = vld [vmem:[#allocation11_spill] sm:$0xff] }
 0x6fc   : > { %v2702_v22 = vpack.c.bf16 %v2669_v13, %v2665_v0  ;;  %v7547_v3 = vpack.c.bf16 %v7545_v27, %v7546_v45  ;;  %v7549_v0 = vld [vmem:[#allocation10_spill] sm:$0xff] }
 0x6fd   : > { %v7550_v13 = vpack.c.bf16 %v7548_v60, %v7549_v0 }
 0x6fe   : > { %v2672_v9 = vpop.f32.mrb[168].mxu0  ;;  %2717 = vmatprep.subr.bf16.mxu1 %v2702_v22  ;;  %v7552_v22 = vld [vmem:[#allocation15_spill] sm:$0xff] }
 0x6ff   : > { %v2674_v42 = vpop.f32.mrb[169].mxu0  ;;  %2718 = vmatpush1.bf16.msra.mxu1 %v2701_v29  ;;  %v2673_v18 = vadd.f32 %v2672_v9, %v7543_v63  ;;  %v7551_v29 = vld [vmem:[#allocation17_spill] sm:$0xff] }
 0x700   : > { %v2676_v12 = vpop.f32.mrb[170].mxu0  ;;  %v2675_v55 = vadd.f32 %v2674_v42, %v7544_v24  ;;  %v7553_v9 = vpack.c.bf16 %v7551_v29, %v7552_v22  ;;  %v7554_v42 = vld [vmem:[#allocation16_spill] sm:$0xff] }
 0x701   : > { %v2677_v10 = vadd.f32 %v2676_v12, %v7543_v63  ;;  %v2678_v61 = vpop.f32.mrb[171].mxu0  ;;  %v7555_v12 = vld [vmem:[#allocation14_spill] sm:$0xff] }
 0x702   : > { %v2679_v59 = vadd.f32 %v2678_v61, %v7544_v24 }
 0x703   : > { %v2703_v5 = vpack.c.bf16 %v2677_v10, %v2673_v18  ;;  %v7556_v18 = vpack.c.bf16 %v7554_v42, %v7555_v12  ;;  %v7557_v10 = vpack.c.bf16 %v6528_v39, %v6517_v7  ;;  %v7567_v39 = vld [vmem:[#allocation24_spill] sm:$0xff] }
 0x704   : > { %v2704_v33 = vpack.c.bf16 %v2679_v59, %v2675_v55  ;;  %v7560_v55 = vld [vmem:[#allocation20_spill] sm:$0xff] }
 0x705   : > { %v7561_v59 = vpack.c.bf16 %v6552_v40, %v7560_v55  ;;  %v6869_v40 = vld [vmem:[%s5644_s17 + $0xc0] sm:$0xff]  }
 0x706   : > { %v2682_v2 = vpop.f32.mrb[172].mxu0  ;;  %2719 = vmatprep.subr.bf16.mxu1 %v2704_v33  ;;  %v7563_v33 = vld [vmem:[#allocation19_spill] sm:$0xff] }
 0x707   : > { %v2684_v38 = vpop.f32.mrb[173].mxu0  ;;  %2720 = vmatpush1.bf16.msra.mxu1 %v2703_v5  ;;  %v2683_v15 = vadd.f32 %v2682_v2, %v7543_v63  ;;  %v7562_v5 = vld [vmem:[#allocation21_spill] sm:$0xff] }
 0x708   : > { %v2686_v28 = vpop.f32.mrb[174].mxu0  ;;  %v2685_v48 = vadd.f32 %v2684_v38, %v7544_v24  ;;  %v7564_v2 = vpack.c.bf16 %v7562_v5, %v7563_v33  ;;  %v7565_v38 = vld [vmem:[#allocation23_spill] sm:$0xff] }
 0x709   : > { %v2687_v41 = vadd.f32 %v2686_v28, %v7543_v63  ;;  %v2688_v32 = vpop.f32.mrb[175].mxu0  ;;  %v7566_v7 = vpack.c.bf16 %v6574_v58, %v7565_v38  ;;  %v6874_v58 = vld [vmem:[%s5644_s17 + $0xc8] sm:$0xff]  }
 0x70a   : > { %v2689_v50 = vadd.f32 %v2688_v32, %v7544_v24 }
 0x70b   : > { %v2705_v8 = vpack.c.bf16 %v2687_v41, %v2683_v15  ;;  %v2821_v15 = vld [vmem:[%s5882_s9 + $0x108] sm:$0xff] }
 0x70c   : > { %v2706_v37 = vpack.c.bf16 %v2689_v50, %v2685_v48 }
 0x70e   : > { %2721 = vmatprep.subr.bf16.mxu1 %v2706_v37 }
 0x70f   : > { %2722 = vmatpush1.bf16.msra.mxu1 %v2705_v8 }
 0x710   : > { %3271 = vmatprep.subr.bf16.mxu1 %v7547_v3 }
 0x712   : > { %2740 = vmatmul.mubr.bf16.vlgmr.msra.gmra.mrb[144].mxu1 %v6714_v34  ;;  %v7558_v34 = vld [vmem:[#allocation18_spill] sm:$0xff] }
 0x713   : > { %3272 = vmatpush1.bf16.msra.mxu1 %v7550_v13  ;;  %2749 = vmatprep.mubr.bf16.mxu1 %v7542_v43  ;;  %v7559_v61 = vpack.c.bf16 %v6523_v57, %v7558_v34 }
 0x714   : > { %3273 = vmatprep.subr.bf16.mxu1 %v7553_v9  ;;  %v2822_v9 = vld [vmem:[%s5882_s9 + $0x110] sm:$0xff] }
 0x717   : > { %3274 = vmatpush1.bf16.msra.mxu1 %v7556_v18 }
 0x718   : > { %3275 = vmatprep.subr.bf16.mxu1 %v7557_v10  ;;  %v2823_v10 = vld [vmem:[%s5882_s9 + $0x118] sm:$0xff] }
 0x71a   : > { %2750 = vmatmul.mubr.bf16.gmra.mrb[148].mxu1 %v6723_v6  ;;  %v7568_v6 = vld [vmem:[#allocation22_spill] sm:$0xff] }
 0x71b   : > { %3276 = vmatpush1.bf16.msra.mxu1 %v7559_v61  ;;  %2759 = vmatprep.mubr.bf16.mxu1 %v7542_v43  ;;  %v7569_v57 = vpack.c.bf16 %v7567_v39, %v7568_v6 }
 0x71c   : > { %3277 = vmatprep.subr.bf16.mxu1 %v7561_v59 }
 0x71f   : > { %3278 = vmatpush1.bf16.msra.mxu1 %v7564_v2 }
 0x720   : > { %3279 = vmatprep.subr.bf16.mxu1 %v7566_v7 }
 0x722   : > { %2760 = vmatmul.mubr.bf16.gmra.mrb[152].mxu1 %v6728_v44 }
 0x723   : > { %3280 = vmatpush1.bf16.msra.mxu1 %v7569_v57  ;;  %2769 = vmatprep.mubr.bf16.mxu1 %v7542_v43 }
 0x724   : > { %3281 = vmatprep.subr.bf16.mxu1 %v1099_v14  ;;  %v6904_v14 = vld [vmem:[%s5644_s17 + $0xf8] sm:$0xff]  }
 0x727   : > { %3282 = vmatpush1.bf16.msra.mxu1 %v1098_v19  ;;  %v6894_v19 = vld [vmem:[%s5644_s17 + $0xe8] sm:$0xff]   ;;  %s3923_s17 = sshll.u32 %s6164_s19, 4  ;;  %s7394_s17 = int_to_ptr.vmem [resolvable:$true] %s3923_s17 }
 0x728   : > { %3283 = vmatprep.subr.bf16.mxu1 %v1101_v53  ;;  %s5437_s28 = scalar_lea.vmem %s7394_s17, 8192 }
 0x729   : > { %p5438_p12 = scmp.ne.s32.totalorder %s7394_s17, %s5437_s28 }
 0x72a   : > { %2770 = vmatmul.mubr.bf16.gmra.mrb[156].mxu1 %v6733_v54 }
 0x72b   : > { %3284 = vmatpush1.bf16.msra.mxu1 %v1100_v1  ;;  %2779 = vmatprep.mubr.bf16.mxu1 %v7542_v43  ;;  %p5439_p13 = pnand %p5438_p12, %p5583_p5 }
 0x72c   : > { %3285 = vmatprep.subr.bf16.mxu1 %v1103_v30 }
 0x72d   : > { %p5440_p0 = pneg %p5439_p13 }
 0x72f   : > { %3286 = vmatpush1.bf16.msra.mxu1 %v1102_v31 }
 0x732   : > { %2780 = vmatmul.mubr.bf16.gmra.mrb[160].mxu1 %v6738_v35 }
 0x733   : > { %2789 = vmatprep.mubr.bf16.mxu1 %v7542_v43 }
 0x73a   : > { %2790 = vmatmul.mubr.bf16.gmra.mrb[164].mxu1 %v6743_v20 }
 0x73b   : > { %2799 = vmatprep.mubr.bf16.mxu1 %v7542_v43 }
 0x742   : > { %2800 = vmatmul.mubr.bf16.gmra.mrb[168].mxu1 %v6748_v52  ;;  %v2820_v52 = vld [vmem:[%s5882_s9 + $0x100] sm:$0xff] }
 0x743   : > { %2809 = vmatprep.mubr.bf16.mxu1 %v7542_v43 }
 0x74a   : > { %2810 = vmatmul.mubr.bf16.gmra.mrb[172].mxu1 %v6753_v62 }
 0x74b   : > { %3303 = vmatprep.mubr.bf16.mxu1 %v7542_v43 }
 0x752   : > { %3304 = vmatmul.mubr.bf16.vlgmr.msra.gmra.mrb[176].mxu1 %v6869_v40 }
 0x753   : > { %3313 = vmatprep.mubr.bf16.mxu1 %v7542_v43 }
 0x75a   : > { %3314 = vmatmul.mubr.bf16.gmra.mrb[180].mxu1 %v6874_v58 }
 0x75b   : > { %3323 = vmatprep.mubr.bf16.mxu1 %v7542_v43 }
 0x762   : > { %3324 = vmatmul.mubr.bf16.gmra.mrb[184].mxu1 %v6879_v11 }
 0x763   : > { %3333 = vmatprep.mubr.bf16.mxu1 %v7542_v43 }
 0x76a   : > { %3334 = vmatmul.mubr.bf16.gmra.mrb[188].mxu1 %v6884_v26 }
 0x76b   : > { %3343 = vmatprep.mubr.bf16.mxu1 %v7542_v43 }
 0x772   : > { %3344 = vmatmul.mubr.bf16.gmra.mrb[192].mxu1 %v6889_v17 }
 0x773   : > { %3353 = vmatprep.mubr.bf16.mxu1 %v7542_v43 }
 0x77a   : > { %3354 = vmatmul.mubr.bf16.gmra.mrb[196].mxu1 %v6894_v19 }
 0x77b   : > { %3363 = vmatprep.mubr.bf16.mxu1 %v7542_v43 }
 0x782   : > { %3364 = vmatmul.mubr.bf16.gmra.mrb[200].mxu1 %v6899_v49 }
 0x783   : > { %3373 = vmatprep.mubr.bf16.mxu1 %v7542_v43 }
 0x78a   : > { %3374 = vmatmul.mubr.bf16.gmra.mrb[204].mxu1 %v6904_v14 }
 0x7e5   : > { %v2741_v4 = vpop.f32.mrb[144].mxu1 }
 0x7e6   : > { %v2743_v16 = vpop.f32.mrb[145].mxu1  ;;  %v2742_v32 = vadd.f32 %v2741_v4, %v5887_v47 }
 0x7e7   : > { %v2744_v1 = vadd.f32 %v2743_v16, %v7570_v51  ;;  %v2745_v56 = vpop.f32.mrb[146].mxu1 }
 0x7e8   : > { %v2747_v53 = vpop.f32.mrb[147].mxu1  ;;  %v2746_v45 = vadd.f32 %v2745_v56, %v5887_v47 }
 0x7e9   : > { %v2836_v23 = vmul.f32 1.442695, %v2744_v1  ;;  %v2748_v21 = vadd.f32 %v2747_v53, %v7570_v51  ;;  %v2824_v1 = vld [vmem:[%s5882_s9 + $0x120] sm:$0xff] }
 0x7eb   : > { %5245 = vpow2.f32 %v2836_v23  ;;  %v2838_v25 = vmul.f32 1.442695, %v2748_v21  ;;  %v2825_v21 = vld [vmem:[%s5882_s9 + $0x128] sm:$0xff] }
 0x7ed   : > { %5247 = vpow2.f32 %v2838_v25  ;;  %v2751_v31 = vpop.f32.mrb[148].mxu1 }
 0x7ee   : > { %v2753_v36 = vpop.f32.mrb[149].mxu1  ;;  %v2752_v61 = vadd.f32 %v2751_v31, %v5887_v47 }
 0x7ef   : > { %v2754_v30 = vadd.f32 %v2753_v36, %v7570_v51  ;;  %v2755_v44 = vpop.f32.mrb[150].mxu1 }
 0x7f0   : > { %v2757_v54 = vpop.f32.mrb[151].mxu1  ;;  %v2756_v38 = vadd.f32 %v2755_v44, %v5887_v47 }
 0x7f1   : > { %v2840_v35 = vmul.f32 1.442695, %v2754_v30  ;;  %v2758_v20 = vadd.f32 %v2757_v54, %v7570_v51 }
 0x7f3   : > { %5249 = vpow2.f32 %v2840_v35  ;;  %v2842_v62 = vmul.f32 1.442695, %v2758_v20 }
 0x7f5   : > { %v5246_v28 = vpop.eup %5245  ;;  %5251 = vpow2.f32 %v2842_v62  ;;  %v2761_v41 = vpop.f32.mrb[152].mxu1 }
 0x7f6   : > { %v2868_v48 = vmul.f32 %v5246_v28, %v2820_v52  ;;  %v2763_v50 = vpop.f32.mrb[153].mxu1  ;;  %v2762_v31 = vadd.f32 %v2761_v41, %v5887_v47 }
 0x7f7   : > { %v5248_v8 = vpop.eup %5247  ;;  %v2764_v37 = vadd.f32 %v2763_v50, %v7570_v51  ;;  %v2765_v27 = vpop.f32.mrb[154].mxu1 }
 0x7f8   : > { %v2869_v3 = vmul.f32 %v5248_v8, %v2821_v15  ;;  %v2767_v60 = vpop.f32.mrb[155].mxu1  ;;  %v2884_v0 = vadd.f32 %v2868_v48, %v2742_v32  ;;  %v2766_v20 = vadd.f32 %v2765_v27, %v5887_v47  ;;  %v2826_v48 = vld [vmem:[%s5882_s9 + $0x130] sm:$0xff]  ;;  %v2827_v27 = vld [vmem:[%s5882_s9 + $0x138] sm:$0xff] }
 0x7f9   : > { %v2844_v13 = vmul.f32 1.442695, %v2764_v37  ;;  %v2768_v29 = vadd.f32 %v2767_v60, %v7570_v51 }
 0x7fa   : > { %v6917_v22 = vadd.f32 %v2869_v3, %v2746_v45  ;;  %2900 = vst.msk [vmem:[%s5896_s14 + $0x100] sm:$0xff] %vm1514_vm1, %v2884_v0  ;;  %4653 = vmatprep.mubr.msk.f32.mxu0 %vm1514_vm1, %v2884_v0 }
 0x7fb   : > { %5253 = vpow2.f32 %v2844_v13  ;;  %v2846_v42 = vmul.f32 1.442695, %v2768_v29 }
 0x7fc   : > { %2901 = vst.msk [vmem:[%s5896_s14 + $0x108] sm:$0xff] %vm1514_vm1, %v6917_v22  ;;  %v4829_v12 = vpack.c.bf16 %v6917_v22, %v2884_v0 }
 0x7fd   : > { %v5250_v18 = vpop.eup %5249  ;;  %5255 = vpow2.f32 %v2846_v42  ;;  %v2771_v34 = vpop.f32.mrb[156].mxu1 }
 0x7fe   : > { %v2870_v55 = vmul.f32 %v5250_v18, %v2822_v9  ;;  %v2773_v59 = vpop.f32.mrb[157].mxu1  ;;  %4831 = vmatprep.subr.msk.bf16.mxu0 %vm5908_vm2, %v4829_v12  ;;  %v2772_v3 = vadd.f32 %v2771_v34, %v5887_v47 }
 0x7ff   : > { %v5252_v5 = vpop.eup %5251  ;;  %v2774_v33 = vadd.f32 %v2773_v59, %v7570_v51  ;;  %v2775_v2 = vpop.f32.mrb[158].mxu1  ;;  %4834 = vmatpush3.bf16.xpose.msk.msra.mxu0 %vm5908_vm2, %v4829_v12  ;;  %v2828_v59 = vld [vmem:[%s5882_s9 + $0x140] sm:$0xff] }
 0x800   : > { %v2871_v7 = vmul.f32 %v5252_v5, %v2823_v10  ;;  %v2777_v39 = vpop.f32.mrb[159].mxu1  ;;  %v6935_v6 = vadd.f32 %v2870_v55, %v2752_v61  ;;  %v2776_v42 = vadd.f32 %v2775_v2, %v5887_v47 }
 0x801   : > { %v2848_v57 = vmul.f32 1.442695, %v2774_v33  ;;  %v2778_v4 = vadd.f32 %v2777_v39, %v7570_v51 }
 0x802   : > { %v6938_v16 = vadd.f32 %v2871_v7, %v2756_v38  ;;  %2902 = vst.msk [vmem:[%s5896_s14 + $0x110] sm:$0xff] %vm1514_vm1, %v6935_v6  ;;  %v2829_v38 = vld [vmem:[%s5882_s9 + $0x148] sm:$0xff] }
 0x803   : > { %5257 = vpow2.f32 %v2848_v57  ;;  %v2850_v56 = vmul.f32 1.442695, %v2778_v4 }
 0x804   : > { %2903 = vst.msk [vmem:[%s5896_s14 + $0x118] sm:$0xff] %vm1514_vm1, %v6938_v16  ;;  %v4835_v53 = vpack.c.bf16 %v6938_v16, %v6935_v6 }
 0x805   : > { %v5254_v23 = vpop.eup %5253  ;;  %5259 = vpow2.f32 %v2850_v56  ;;  %v2781_v25 = vpop.f32.mrb[160].mxu1 }
 0x806   : > { %v2872_v36 = vmul.f32 %v5254_v23, %v2824_v1  ;;  %v2783_v30 = vpop.f32.mrb[161].mxu1  ;;  %4837 = vmatprep.subr.msk.bf16.mxu0 %vm5908_vm2, %v4835_v53  ;;  %v2782_v39 = vadd.f32 %v2781_v25, %v5887_v47 }
 0x807   : > { %v5256_v44 = vpop.eup %5255  ;;  %v2784_v54 = vadd.f32 %v2783_v30, %v7570_v51  ;;  %v2785_v35 = vpop.f32.mrb[162].mxu1  ;;  %4840 = vmatpush3.bf16.xpose.msk.msra.mxu0 %vm5908_vm2, %v4835_v53 }
 0x808   : > { %v2873_v52 = vmul.f32 %v5256_v44, %v2825_v21  ;;  %v2787_v62 = vpop.f32.mrb[163].mxu1  ;;  %v6957_v28 = vadd.f32 %v2872_v36, %v2762_v31  ;;  %v2786_v23 = vadd.f32 %v2785_v35, %v5887_v47 }
 0x809   : > { %v2852_v15 = vmul.f32 1.442695, %v2784_v54  ;;  %v2788_v41 = vadd.f32 %v2787_v62, %v7570_v51  ;;  %v2830_v54 = vld [vmem:[%s5882_s9 + $0x150] sm:$0xff]  ;;  %v2831_v62 = vld [vmem:[%s5882_s9 + $0x158] sm:$0xff] }
 0x80a   : > { %v6960_v32 = vadd.f32 %v2873_v52, %v2766_v20  ;;  %2904 = vst.msk [vmem:[%s5896_s14 + $0x120] sm:$0xff] %vm1514_vm1, %v6957_v28 }
 0x80b   : > { %5261 = vpow2.f32 %v2852_v15  ;;  %v2854_v50 = vmul.f32 1.442695, %v2788_v41 }
 0x80c   : > { %2905 = vst.msk [vmem:[%s5896_s14 + $0x128] sm:$0xff] %vm1514_vm1, %v6960_v32  ;;  %v4841_v8 = vpack.c.bf16 %v6960_v32, %v6957_v28 }
 0x80d   : > { %v5258_v37 = vpop.eup %5257  ;;  %5263 = vpow2.f32 %v2854_v50  ;;  %v2791_v45 = vpop.f32.mrb[164].mxu1 }
 0x80e   : > { %v2874_v60 = vmul.f32 %v5258_v37, %v2826_v48  ;;  %v2793_v0 = vpop.f32.mrb[165].mxu1  ;;  %4843 = vmatprep.subr.msk.bf16.mxu0 %vm5908_vm2, %v4841_v8  ;;  %v2792_v41 = vadd.f32 %v2791_v45, %v5887_v47 }
 0x80f   : > { %v5260_v13 = vpop.eup %5259  ;;  %v2794_v29 = vadd.f32 %v2793_v0, %v7570_v51  ;;  %v2795_v9 = vpop.f32.mrb[166].mxu1  ;;  %4846 = vmatpush3.bf16.xpose.msk.msra.mxu0 %vm5908_vm2, %v4841_v8 }
 0x810   : > { %v2875_v12 = vmul.f32 %v5260_v13, %v2827_v27  ;;  %v2797_v18 = vpop.f32.mrb[167].mxu1  ;;  %v6979_v10 = vadd.f32 %v2874_v60, %v2772_v3  ;;  %v2796_v3 = vadd.f32 %v2795_v9, %v5887_v47 }
 0x811   : > { %v2856_v34 = vmul.f32 1.442695, %v2794_v29  ;;  %v2798_v61 = vadd.f32 %v2797_v18, %v7570_v51 }
 0x812   : > { %v6982_v55 = vadd.f32 %v2875_v12, %v2776_v42  ;;  %2906 = vst.msk [vmem:[%s5896_s14 + $0x130] sm:$0xff] %vm1514_vm1, %v6979_v10  ;;  %v2832_v12 = vld [vmem:[%s5882_s9 + $0x160] sm:$0xff] }
 0x813   : > { %5265 = vpow2.f32 %v2856_v34  ;;  %v2858_v5 = vmul.f32 1.442695, %v2798_v61  ;;  %v2833_v61 = vld [vmem:[%s5882_s9 + $0x168] sm:$0xff] }
 0x814   : > { %2907 = vst.msk [vmem:[%s5896_s14 + $0x138] sm:$0xff] %vm1514_vm1, %v6982_v55  ;;  %v4847_v33 = vpack.c.bf16 %v6982_v55, %v6979_v10 }
 0x815   : > { %v5262_v2 = vpop.eup %5261  ;;  %5267 = vpow2.f32 %v2858_v5  ;;  %v2801_v7 = vpop.f32.mrb[168].mxu1 }
 0x816   : > { %v2876_v57 = vmul.f32 %v5262_v2, %v2828_v59  ;;  %v2803_v4 = vpop.f32.mrb[169].mxu1  ;;  %4849 = vmatprep.subr.msk.bf16.mxu0 %vm5908_vm2, %v4847_v33  ;;  %v2802_v5 = vadd.f32 %v2801_v7, %v5887_v47 }
 0x817   : > { %v5264_v1 = vpop.eup %5263  ;;  %v2804_v56 = vadd.f32 %v2803_v4, %v7570_v51  ;;  %v2805_v53 = vpop.f32.mrb[170].mxu1  ;;  %4852 = vmatpush3.bf16.xpose.msk.msra.mxu0 %vm5908_vm2, %v4847_v33 }
 0x818   : > { %v2877_v21 = vmul.f32 %v5264_v1, %v2829_v38  ;;  %v2807_v31 = vpop.f32.mrb[171].mxu1  ;;  %v7001_v25 = vadd.f32 %v2876_v57, %v2782_v39  ;;  %v2806_v39 = vadd.f32 %v2805_v53, %v5887_v47 }
 0x819   : > { %v2860_v36 = vmul.f32 1.442695, %v2804_v56  ;;  %v2808_v30 = vadd.f32 %v2807_v31, %v7570_v51 }
 0x81a   : > { %v7004_v44 = vadd.f32 %v2877_v21, %v2786_v23  ;;  %2908 = vst.msk [vmem:[%s5896_s14 + $0x140] sm:$0xff] %vm1514_vm1, %v7001_v25 }
 0x81b   : > { %5269 = vpow2.f32 %v2860_v36  ;;  %v2862_v20 = vmul.f32 1.442695, %v2808_v30  ;;  %v2834_v30 = vld [vmem:[%s5882_s9 + $0x170] sm:$0xff] }
 0x81c   : > { %2909 = vst.msk [vmem:[%s5896_s14 + $0x148] sm:$0xff] %vm1514_vm1, %v7004_v44  ;;  %v4853_v35 = vpack.c.bf16 %v7004_v44, %v7001_v25 }
 0x81d   : > { %v5266_v52 = vpop.eup %5265  ;;  %5271 = vpow2.f32 %v2862_v20  ;;  %v2811_v15 = vpop.f32.mrb[172].mxu1 }
 0x81e   : > { %v2878_v48 = vmul.f32 %v5266_v52, %v2830_v54  ;;  %v2813_v50 = vpop.f32.mrb[173].mxu1  ;;  %4855 = vmatprep.subr.msk.bf16.mxu0 %vm5908_vm2, %v4853_v35  ;;  %v2835_v52 = vld [vmem:[%s5882_s9 + $0x178] sm:$0xff] }
 0x81f   : > { %v5268_v8 = vpop.eup %5267  ;;  %v2814_v37 = vadd.f32 %v2813_v50, %v7570_v51  ;;  %v2815_v27 = vpop.f32.mrb[174].mxu1  ;;  %4858 = vmatpush3.bf16.xpose.msk.msra.mxu0 %vm5908_vm2, %v4853_v35 }
 0x820   : > { %v2879_v60 = vmul.f32 %v5268_v8, %v2831_v62  ;;  %v2817_v0 = vpop.f32.mrb[175].mxu1  ;;  %v7023_v45 = vadd.f32 %v2878_v48, %v2792_v41  ;;  %v2812_v41 = vadd.f32 %v2811_v15, %v5887_v47 }
 0x821   : > { %v2864_v13 = vmul.f32 1.442695, %v2814_v37  ;;  %v2818_v29 = vadd.f32 %v2817_v0, %v7570_v51  ;;  %v2816_v37 = vadd.f32 %v2815_v27, %v5887_v47 }
 0x822   : > { %v7026_v42 = vadd.f32 %v2879_v60, %v2796_v3  ;;  %2910 = vst.msk [vmem:[%s5896_s14 + $0x150] sm:$0xff] %vm1514_vm1, %v7023_v45 }
 0x823   : > { %5273 = vpow2.f32 %v2864_v13  ;;  %v2866_v18 = vmul.f32 1.442695, %v2818_v29 }
 0x824   : > { %2911 = vst.msk [vmem:[%s5896_s14 + $0x158] sm:$0xff] %vm1514_vm1, %v7026_v42  ;;  %v4859_v9 = vpack.c.bf16 %v7026_v42, %v7023_v45 }
 0x825   : > { %v5270_v34 = vpop.eup %5269  ;;  %5275 = vpow2.f32 %v2866_v18  ;;  %v3305_v59 = vpop.f32.mrb[176].mxu1 }
 0x826   : > { %v2880_v33 = vmul.f32 %v5270_v34, %v2832_v12  ;;  %4861 = vmatprep.subr.msk.bf16.mxu0 %vm5908_vm2, %v4859_v9  ;;  %v3307_v2 = vpop.f32.mrb[177].mxu1  ;;  %v3306_v7 = vadd.f32 %v3305_v59, %v7543_v63 }
 0x827   : > { %v5272_v38 = vpop.eup %5271  ;;  %4864 = vmatpush3.bf16.xpose.msk.msra.mxu0 %vm5908_vm2, %v4859_v9  ;;  %v3309_v57 = vpop.f32.mrb[178].mxu1  ;;  %v3308_v21 = vadd.f32 %v3307_v2, %v7544_v24 }
 0x828   : > { %v2881_v4 = vmul.f32 %v5272_v38, %v2833_v61  ;;  %v7044_v1 = vadd.f32 %v2880_v33, %v2802_v5  ;;  %v3310_v56 = vadd.f32 %v3309_v57, %v7543_v63  ;;  %v3311_v23 = vpop.f32.mrb[179].mxu1 }
 0x829   : > { %v3312_v31 = vadd.f32 %v3311_v23, %v7544_v24 }
 0x82a   : > { %v7050_v36 = vadd.f32 %v2881_v4, %v2806_v39  ;;  %2912 = vst.msk [vmem:[%s5896_s14 + $0x160] sm:$0xff] %vm1514_vm1, %v7044_v1  ;;  %v3384_v53 = vpack.c.bf16 %v3310_v56, %v3306_v7 }
 0x82b   : > { %v3385_v54 = vpack.c.bf16 %v3312_v31, %v3308_v21 }
 0x82c   : > { %2913 = vst.msk [vmem:[%s5896_s14 + $0x168] sm:$0xff] %vm1514_vm1, %v7050_v36  ;;  %v4865_v20 = vpack.c.bf16 %v7050_v36, %v7044_v1 }
 0x82d   : > { %v5274_v35 = vpop.eup %5273  ;;  %v3315_v62 = vpop.f32.mrb[180].mxu1 }
 0x82e   : > { %v2882_v48 = vmul.f32 %v5274_v35, %v2834_v30  ;;  %4867 = vmatprep.subr.msk.bf16.mxu0 %vm5908_vm2, %v4865_v20  ;;  %v3317_v50 = vpop.f32.mrb[181].mxu1  ;;  %v3316_v13 = vadd.f32 %v3315_v62, %v7543_v63 }
 0x82f   : > { %v5276_v8 = vpop.eup %5275  ;;  %4870 = vmatpush3.bf16.xpose.msk.msra.mxu0 %vm5908_vm2, %v4865_v20  ;;  %v3319_v3 = vpop.f32.mrb[182].mxu1  ;;  %v3318_v12 = vadd.f32 %v3317_v50, %v7544_v24 }
 0x830   : > { %v2883_v60 = vmul.f32 %v5276_v8, %v2835_v52  ;;  %v7068_v0 = vadd.f32 %v2882_v48, %v2812_v41  ;;  %v3320_v15 = vadd.f32 %v3319_v3, %v7543_v63  ;;  %v3321_v29 = vpop.f32.mrb[183].mxu1 }
 0x831   : > { %v3322_v18 = vadd.f32 %v3321_v29, %v7544_v24 }
 0x832   : > { %v7074_v9 = vadd.f32 %v2883_v60, %v2816_v37  ;;  %2914 = vst.msk [vmem:[%s5896_s14 + $0x170] sm:$0xff] %vm1514_vm1, %v7068_v0  ;;  %v3386_v27 = vpack.c.bf16 %v3320_v15, %v3316_v13 }
 0x833   : > { %v3387_v34 = vpack.c.bf16 %v3322_v18, %v3318_v12 }
 0x834   : > { %2915 = vst.msk [vmem:[%s5896_s14 + $0x178] sm:$0xff] %vm1514_vm1, %v7074_v9  ;;  %v4871_v61 = vpack.c.bf16 %v7074_v9, %v7068_v0 }
 0x835   : > { %v3325_v59 = vpop.f32.mrb[184].mxu1 }
 0x836   : > { %4873 = vmatprep.subr.msk.bf16.mxu0 %vm5908_vm2, %v4871_v61  ;;  %v3327_v5 = vpop.f32.mrb[185].mxu1  ;;  %v3326_v2 = vadd.f32 %v3325_v59, %v7543_v63 }
 0x837   : > { %4876 = vmatpush3.bf16.xpose.msk.msra.mxu0 %vm5908_vm2, %v4871_v61  ;;  %v3329_v33 = vpop.f32.mrb[186].mxu1  ;;  %v3328_v57 = vadd.f32 %v3327_v5, %v7544_v24 }
 0x838   : > { %3400 = vmatprep.subr.bf16.mxu0 %v3385_v54  ;;  %v3330_v38 = vadd.f32 %v3329_v33, %v7543_v63  ;;  %v3331_v39 = vpop.f32.mrb[187].mxu1 }
 0x839   : > { %v3332_v4 = vadd.f32 %v3331_v39, %v7544_v24 }
 0x83a   : > { %v3388_v7 = vpack.c.bf16 %v3330_v38, %v3326_v2 }
 0x83b   : > { %v3389_v56 = vpack.c.bf16 %v3332_v4, %v3328_v57 }
 0x83d   : > { %v3335_v23 = vpop.f32.mrb[188].mxu1 }
 0x83e   : > { %4654 = vmatmul.mubr.msk.f32.vlgmr.msra.gmra.mrb[176].mxu0 %vm1514_vm1, %v6917_v22  ;;  %v3337_v21 = vpop.f32.mrb[189].mxu1  ;;  %v3336_v30 = vadd.f32 %v3335_v23, %v7543_v63 }
 0x83f   : > { %4656 = vmatprep.mubr.msk.f32.mxu0 %vm1514_vm1, %v6935_v6  ;;  %3401 = vmatpush1.bf16.msra.mxu0 %v3384_v53  ;;  %v3339_v31 = vpop.f32.mrb[190].mxu1  ;;  %v3338_v35 = vadd.f32 %v3337_v21, %v7544_v24 }
 0x840   : > { %3402 = vmatprep.subr.bf16.mxu0 %v3387_v34  ;;  %v3340_v54 = vadd.f32 %v3339_v31, %v7543_v63  ;;  %v3341_v20 = vpop.f32.mrb[191].mxu1 }
 0x841   : > { %v3342_v52 = vadd.f32 %v3341_v20, %v7544_v24 }
 0x842   : > { %4657 = vmatmul.mubr.msk.f32.gmra.mrb[178].mxu0 %vm1514_vm1, %v6938_v16  ;;  %v3390_v22 = vpack.c.bf16 %v3340_v54, %v3336_v30 }
 0x843   : > { %4659 = vmatprep.mubr.msk.f32.mxu0 %vm1514_vm1, %v6957_v28  ;;  %3403 = vmatpush1.bf16.msra.mxu0 %v3386_v27  ;;  %v3391_v6 = vpack.c.bf16 %v3342_v52, %v3338_v35 }
 0x844   : > { %3404 = vmatprep.subr.bf16.mxu0 %v3389_v56 }
 0x845   : > { %v3345_v53 = vpop.f32.mrb[192].mxu1 }
 0x846   : > { %4660 = vmatmul.mubr.msk.f32.gmra.mrb[180].mxu0 %vm1514_vm1, %v6960_v32  ;;  %v3347_v62 = vpop.f32.mrb[193].mxu1  ;;  %v3346_v48 = vadd.f32 %v3345_v53, %v7543_v63 }
 0x847   : > { %3405 = vmatpush1.bf16.msra.mxu0 %v3388_v7  ;;  %v3349_v41 = vpop.f32.mrb[194].mxu1  ;;  %4662 = vmatprep.mubr.msk.f32.mxu0 %vm1514_vm1, %v6979_v10  ;;  %v3348_v28 = vadd.f32 %v3347_v62, %v7544_v24 }
 0x848   : > { %v3350_v16 = vadd.f32 %v3349_v41, %v7543_v63  ;;  %v3351_v50 = vpop.f32.mrb[195].mxu1  ;;  %3406 = vmatprep.subr.bf16.mxu0 %v3391_v6 }
 0x849   : > { %v3352_v8 = vadd.f32 %v3351_v50, %v7544_v24 }
 0x84a   : > { %v3392_v37 = vpack.c.bf16 %v3350_v16, %v3346_v48  ;;  %4663 = vmatmul.mubr.msk.f32.gmra.mrb[182].mxu0 %vm1514_vm1, %v6982_v55 }
 0x84b   : > { %v3393_v32 = vpack.c.bf16 %v3352_v8, %v3348_v28  ;;  %3407 = vmatpush1.bf16.msra.mxu0 %v3390_v22  ;;  %4665 = vmatprep.mubr.msk.f32.mxu0 %vm1514_vm1, %v7001_v25 }
 0x84d   : > { %v3355_v10 = vpop.f32.mrb[196].mxu1  ;;  %3408 = vmatprep.subr.bf16.mxu0 %v3393_v32 }
 0x84e   : > { %v3357_v3 = vpop.f32.mrb[197].mxu1  ;;  %4666 = vmatmul.mubr.msk.f32.gmra.mrb[184].mxu0 %vm1514_vm1, %v7004_v44  ;;  %v3356_v13 = vadd.f32 %v3355_v10, %v7543_v63 }
 0x84f   : > { %v3359_v60 = vpop.f32.mrb[198].mxu1  ;;  %3409 = vmatpush1.bf16.msra.mxu0 %v3392_v37  ;;  %4668 = vmatprep.mubr.msk.f32.mxu0 %vm1514_vm1, %v7023_v45  ;;  %v3358_v29 = vadd.f32 %v3357_v3, %v7544_v24 }
 0x850   : > { %v3360_v55 = vadd.f32 %v3359_v60, %v7543_v63  ;;  %v3361_v15 = vpop.f32.mrb[199].mxu1 }
 0x851   : > { %v3362_v25 = vadd.f32 %v3361_v15, %v7544_v24 }
 0x852   : > { %v3394_v12 = vpack.c.bf16 %v3360_v55, %v3356_v13  ;;  %4669 = vmatmul.mubr.msk.f32.gmra.mrb[186].mxu0 %vm1514_vm1, %v7026_v42 }
 0x853   : > { %v3395_v18 = vpack.c.bf16 %v3362_v25, %v3358_v29  ;;  %4671 = vmatprep.mubr.msk.f32.mxu0 %vm1514_vm1, %v7044_v1 }
 0x855   : > { %v3365_v44 = vpop.f32.mrb[200].mxu1  ;;  %3410 = vmatprep.subr.bf16.mxu0 %v3395_v18 }
 0x856   : > { %v3367_v45 = vpop.f32.mrb[201].mxu1  ;;  %3411 = vmatpush1.bf16.msra.mxu0 %v3394_v12  ;;  %v3366_v34 = vadd.f32 %v3365_v44, %v7543_v63 }
 0x857   : > { %v3369_v27 = vpop.f32.mrb[202].mxu1  ;;  %4672 = vmatmul.mubr.msk.f32.gmra.mrb[188].mxu0 %vm1514_vm1, %v7050_v36  ;;  %v3368_v42 = vadd.f32 %v3367_v45, %v7544_v24 }
 0x858   : > { %v3370_v61 = vadd.f32 %v3369_v27, %v7543_v63  ;;  %v3371_v59 = vpop.f32.mrb[203].mxu1  ;;  %4674 = vmatprep.mubr.msk.f32.mxu0 %vm1514_vm1, %v7068_v0 }
 0x859   : > { %v3372_v1 = vadd.f32 %v3371_v59, %v7544_v24 }
 0x85a   : > { %v3396_v5 = vpack.c.bf16 %v3370_v61, %v3366_v34 }
 0x85b   : > { %v3397_v33 = vpack.c.bf16 %v3372_v1, %v3368_v42  ;;  %4675 = vmatmul.mubr.msk.f32.gmra.mrb[190].mxu0 %vm1514_vm1, %v7074_v9 }
 0x85c   : > { %3432 = vmatprep.mubr.bf16.mxu0 %v7542_v43 }
 0x85d   : > { %v3375_v36 = vpop.f32.mrb[204].mxu1  ;;  %3412 = vmatprep.subr.bf16.mxu0 %v3397_v33 }
 0x85e   : > { %v3377_v2 = vpop.f32.mrb[205].mxu1  ;;  %3413 = vmatpush1.bf16.msra.mxu0 %v3396_v5  ;;  %v3376_v39 = vadd.f32 %v3375_v36, %v7543_v63 }
 0x85f   : > { %v3379_v38 = vpop.f32.mrb[206].mxu1  ;;  %v3378_v4 = vadd.f32 %v3377_v2, %v7544_v24 }
 0x860   : > { %v3380_v0 = vadd.f32 %v3379_v38, %v7543_v63  ;;  %v3381_v57 = vpop.f32.mrb[207].mxu1 }
 0x861   : > { %v3382_v7 = vadd.f32 %v3381_v57, %v7544_v24 }
 0x862   : > { %v3398_v56 = vpack.c.bf16 %v3380_v0, %v3376_v39 }
 0x863   : > { %v3399_v23 = vpack.c.bf16 %v3382_v7, %v3378_v4 }
 0x865   : > { %3414 = vmatprep.subr.bf16.mxu0 %v3399_v23 }
 0x866   : > { %3415 = vmatpush1.bf16.msra.mxu0 %v3398_v56 }
 0x869   : > { %3433 = vmatmul.mubr.bf16.vlgmr.msra.gmra.mrb[192].mxu0 %v6869_v40 }
 0x86a   : > { %3442 = vmatprep.mubr.bf16.mxu0 %v7542_v43 }
 0x871   : > { %3443 = vmatmul.mubr.bf16.gmra.mrb[196].mxu0 %v6874_v58 }
 0x872   : > { %3452 = vmatprep.mubr.bf16.mxu0 %v7542_v43 }
 0x879   : > { %3453 = vmatmul.mubr.bf16.gmra.mrb[200].mxu0 %v6879_v11 }
 0x87a   : > { %3462 = vmatprep.mubr.bf16.mxu0 %v7542_v43 }
 0x881   : > { %3463 = vmatmul.mubr.bf16.gmra.mrb[204].mxu0 %v6884_v26 }
 0x882   : > { %3472 = vmatprep.mubr.bf16.mxu0 %v7542_v43 }
 0x889   : > { %3473 = vmatmul.mubr.bf16.gmra.mrb[208].mxu0 %v6889_v17 }
 0x88a   : > { %3482 = vmatprep.mubr.bf16.mxu0 %v7542_v43 }
 0x891   : > { %3483 = vmatmul.mubr.bf16.gmra.mrb[212].mxu0 %v6894_v19 }
 0x892   : > { %3492 = vmatprep.mubr.bf16.mxu0 %v7542_v43 }
 0x899   : > { %3493 = vmatmul.mubr.bf16.gmra.mrb[216].mxu0 %v6899_v49 }
 0x89a   : > { %3502 = vmatprep.mubr.bf16.mxu0 %v7542_v43 }
 0x8a1   : > { %3503 = vmatmul.mubr.bf16.gmra.mrb[220].mxu0 %v6904_v14 }
 0x911   : > { %v4655_v63 = vpop.f32.mrb[176].mxu0 }
 0x912   : > { %v3110_v24 = vsub.f32 0.0, %v4655_v63  ;;  %v3030_v40 = vpop.f32.mrb[177].mxu0 }
 0x913   : > { %v3109_v58 = vsub.f32 0.0, %v3030_v40 }
 0x914   : > { %v3127_v11 = vmul.f32 1.442695, %v3110_v24 }
 0x915   : > { %v3125_v26 = vmul.f32 1.442695, %v3109_v58  ;;  %v4658_v9 = vpop.f32.mrb[178].mxu0 }
 0x916   : > { %5277 = vpow2.f32 %v3127_v11  ;;  %v3112_v17 = vsub.f32 0.0, %v4658_v9  ;;  %v3040_v21 = vpop.f32.mrb[179].mxu0 }
 0x917   : > { %5279 = vpow2.f32 %v3125_v26  ;;  %v3111_v19 = vsub.f32 0.0, %v3040_v21 }
 0x918   : > { %v3131_v31 = vmul.f32 1.442695, %v3112_v17 }
 0x919   : > { %v3129_v30 = vmul.f32 1.442695, %v3111_v19  ;;  %v4661_v54 = vpop.f32.mrb[180].mxu0 }
 0x91a   : > { %5281 = vpow2.f32 %v3131_v31  ;;  %v3114_v49 = vsub.f32 0.0, %v4661_v54  ;;  %v3050_v43 = vpop.f32.mrb[181].mxu0 }
 0x91b   : > { %5283 = vpow2.f32 %v3129_v30  ;;  %v3113_v14 = vsub.f32 0.0, %v3050_v43 }
 0x91c   : > { %v3135_v20 = vmul.f32 1.442695, %v3114_v49 }
 0x91d   : > { %v3133_v35 = vmul.f32 1.442695, %v3113_v14  ;;  %v4664_v52 = vpop.f32.mrb[182].mxu0 }
 0x91e   : > { %5285 = vpow2.f32 %v3135_v20  ;;  %v3116_v22 = vsub.f32 0.0, %v4664_v52  ;;  %v3060_v6 = vpop.f32.mrb[183].mxu0 }
 0x91f   : > { %5287 = vpow2.f32 %v3133_v35  ;;  %v3115_v53 = vsub.f32 0.0, %v3060_v6 }
 0x920   : > { %v5278_v62 = vpop.eup %5277  ;;  %v3139_v41 = vmul.f32 1.442695, %v3116_v22 }
 0x921   : > { %v5280_v48 = vpop.eup %5279  ;;  %v3158_v16 = vadd.f32 1.0, %v5278_v62  ;;  %v3137_v50 = vmul.f32 1.442695, %v3115_v53  ;;  %v4667_v28 = vpop.f32.mrb[184].mxu0 }
 0x922   : > { %v3157_v8 = vadd.f32 1.0, %v5280_v48  ;;  %5289 = vpow2.f32 %v3139_v41  ;;  %v3118_v37 = vsub.f32 0.0, %v4667_v28  ;;  %v3070_v32 = vpop.f32.mrb[185].mxu0 }
 0x923   : > { %5291 = vrcp.f32 %v3158_v16  ;;  %v3117_v10 = vsub.f32 0.0, %v3070_v32 }
 0x924   : > { %v5282_v3 = vpop.eup %5281  ;;  %5293 = vrcp.f32 %v3157_v8  ;;  %v3143_v60 = vmul.f32 1.442695, %v3118_v37 }
 0x925   : > { %v5284_v13 = vpop.eup %5283  ;;  %v3160_v55 = vadd.f32 1.0, %v5282_v3  ;;  %5295 = vpow2.f32 %v3137_v50  ;;  %v3141_v15 = vmul.f32 1.442695, %v3117_v10  ;;  %v4670_v29 = vpop.f32.mrb[186].mxu0 }
 0x926   : > { %v3159_v25 = vadd.f32 1.0, %v5284_v13  ;;  %5297 = vpow2.f32 %v3143_v60  ;;  %v3120_v12 = vsub.f32 0.0, %v4670_v29  ;;  %v3080_v18 = vpop.f32.mrb[187].mxu0 }
 0x927   : > { %5299 = vrcp.f32 %v3160_v55  ;;  %v3119_v44 = vsub.f32 0.0, %v3080_v18 }
 0x928   : > { %v5286_v45 = vpop.eup %5285  ;;  %5301 = vrcp.f32 %v3159_v25  ;;  %v3147_v27 = vmul.f32 1.442695, %v3120_v12 }
 0x929   : > { %v5288_v34 = vpop.eup %5287  ;;  %v3162_v61 = vadd.f32 1.0, %v5286_v45  ;;  %5303 = vpow2.f32 %v3141_v15  ;;  %v3145_v59 = vmul.f32 1.442695, %v3119_v44 }
 0x92a   : > { %v3161_v42 = vadd.f32 1.0, %v5288_v34  ;;  %5305 = vpow2.f32 %v3147_v27  ;;  %v4673_v1 = vpop.f32.mrb[188].mxu0 }
 0x92b   : > { %5307 = vrcp.f32 %v3162_v61  ;;  %v3122_v5 = vsub.f32 0.0, %v4673_v1  ;;  %v3090_v33 = vpop.f32.mrb[189].mxu0 }
 0x92c   : > { %v5290_v36 = vpop.eup %5289  ;;  %5309 = vrcp.f32 %v3161_v42  ;;  %v3121_v2 = vsub.f32 0.0, %v3090_v33  ;;  %v3513_v33 = vld [vmem:[%s5882_s9 + $0x180] sm:$0xff] }
 0x92d   : > { %v5292_v38 = vpop.eup %5291  ;;  %v3164_v39 = vadd.f32 1.0, %v5290_v36  ;;  %5311 = vpow2.f32 %v3145_v59  ;;  %v3151_v0 = vmul.f32 1.442695, %v3122_v5 }
 0x92e   : > { %v5294_v57 = vpop.eup %5293  ;;  %4285 = vst [vmem:[%s6164_s19 + $0x108] sm:$0xff] %v5292_v38  ;;  %v3149_v4 = vmul.f32 1.442695, %v3121_v2  ;;  %v4676_v7 = vpop.f32.mrb[190].mxu0  ;;  %v3514_v2 = vld [vmem:[%s5882_s9 + $0x188] sm:$0xff] }
 0x92f   : > { %v5296_v56 = vpop.eup %5295  ;;  %4284 = vst [vmem:[%s6164_s19 + $0x100] sm:$0xff] %v5294_v57  ;;  %5313 = vrcp.f32 %v3164_v39  ;;  %v3124_v23 = vsub.f32 0.0, %v4676_v7  ;;  %v3100_v63 = vpop.f32.mrb[191].mxu0 }
 0x930   : > { %v5298_v24 = vpop.eup %5297  ;;  %v3163_v40 = vadd.f32 1.0, %v5296_v56  ;;  %5315 = vpow2.f32 %v3151_v0  ;;  %v3123_v58 = vsub.f32 0.0, %v3100_v63 }
 0x931   : > { %v5300_v11 = vpop.eup %5299  ;;  %v3166_v26 = vadd.f32 1.0, %v5298_v24  ;;  %5317 = vpow2.f32 %v3149_v4  ;;  %v3155_v9 = vmul.f32 1.442695, %v3124_v23 }
 0x932   : > { %v5302_v17 = vpop.eup %5301  ;;  %4287 = vst [vmem:[%s6164_s19 + $0x118] sm:$0xff] %v5300_v11  ;;  %5319 = vrcp.f32 %v3163_v40  ;;  %v3153_v21 = vmul.f32 1.442695, %v3123_v58 }
 0x933   : > { %v5304_v19 = vpop.eup %5303  ;;  %4286 = vst [vmem:[%s6164_s19 + $0x110] sm:$0xff] %v5302_v17  ;;  %5321 = vrcp.f32 %v3166_v26  ;;  %v3515_v17 = vld [vmem:[%s5882_s9 + $0x190] sm:$0xff] }
 0x934   : > { %v5306_v31 = vpop.eup %5305  ;;  %v3165_v30 = vadd.f32 1.0, %v5304_v19  ;;  %5323 = vpow2.f32 %v3155_v9 }
 0x935   : > { %v5308_v54 = vpop.eup %5307  ;;  %v3168_v49 = vadd.f32 1.0, %v5306_v31  ;;  %5325 = vpow2.f32 %v3153_v21 }
 0x936   : > { %v5310_v43 = vpop.eup %5309  ;;  %4289 = vst [vmem:[%s6164_s19 + $0x128] sm:$0xff] %v5308_v54  ;;  %5327 = vrcp.f32 %v3165_v30  ;;  %v3516_v30 = vld [vmem:[%s5882_s9 + $0x198] sm:$0xff] }
 0x937   : > { %v5312_v14 = vpop.eup %5311  ;;  %4288 = vst [vmem:[%s6164_s19 + $0x120] sm:$0xff] %v5310_v43  ;;  %5329 = vrcp.f32 %v3168_v49 }
 0x938   : > { %v3167_v20 = vadd.f32 1.0, %v5312_v14 }
 0x939   : > { %v5314_v35 = vpop.eup %5313 }
 0x93a   : > { %v5316_v52 = vpop.eup %5315  ;;  %4291 = vst [vmem:[%s6164_s19 + $0x138] sm:$0xff] %v5314_v35  ;;  %5331 = vrcp.f32 %v3167_v20 }
 0x93b   : > { %v5318_v22 = vpop.eup %5317  ;;  %v3170_v6 = vadd.f32 1.0, %v5316_v52 }
 0x93c   : > { %v5320_v53 = vpop.eup %5319  ;;  %v3169_v62 = vadd.f32 1.0, %v5318_v22  ;;  %v3434_v41 = vpop.f32.mrb[192].mxu0 }
 0x93d   : > { %v5322_v48 = vpop.eup %5321  ;;  %4290 = vst [vmem:[%s6164_s19 + $0x130] sm:$0xff] %v5320_v53  ;;  %5333 = vrcp.f32 %v3170_v6  ;;  %v3436_v16 = vpop.f32.mrb[193].mxu0  ;;  %v3435_v4 = vadd.f32 %v3434_v41, %v5887_v47 }
 0x93e   : > { %v5324_v50 = vpop.eup %5323  ;;  %4293 = vst [vmem:[%s6164_s19 + $0x148] sm:$0xff] %v5322_v48  ;;  %5335 = vrcp.f32 %v3169_v62  ;;  %v3437_v28 = vadd.f32 %v3436_v16, %v7570_v51  ;;  %v3438_v8 = vpop.f32.mrb[194].mxu0 }
 0x93f   : > { %v5326_v37 = vpop.eup %5325  ;;  %v3172_v32 = vadd.f32 1.0, %v5324_v50  ;;  %v3440_v10 = vpop.f32.mrb[195].mxu0  ;;  %v3439_v63 = vadd.f32 %v3438_v8, %v5887_v47  ;;  %v3517_v50 = vld [vmem:[%s5882_s9 + $0x1a0] sm:$0xff] }
 0x940   : > { %v5328_v3 = vpop.eup %5327  ;;  %v3171_v60 = vadd.f32 1.0, %v5326_v37  ;;  %v3529_v13 = vmul.f32 1.442695, %v3437_v28  ;;  %v3441_v55 = vadd.f32 %v3440_v10, %v7570_v51 }
 0x941   : > { %v5330_v15 = vpop.eup %5329  ;;  %4292 = vst [vmem:[%s6164_s19 + $0x140] sm:$0xff] %v5328_v3  ;;  %5337 = vrcp.f32 %v3172_v32  ;;  %v3518_v32 = vld [vmem:[%s5882_s9 + $0x1a8] sm:$0xff] }
 0x942   : > { %4295 = vst [vmem:[%s6164_s19 + $0x158] sm:$0xff] %v5330_v15  ;;  %5339 = vrcp.f32 %v3171_v60  ;;  %v3531_v29 = vmul.f32 1.442695, %v3441_v55 }
 0x943   : > { %5341 = vpow2.f32 %v3529_v13 }
 0x944   : > { %v5332_v25 = vpop.eup %5331  ;;  %5343 = vpow2.f32 %v3531_v29  ;;  %v3444_v12 = vpop.f32.mrb[196].mxu0 }
 0x945   : > { %4294 = vst [vmem:[%s6164_s19 + $0x150] sm:$0xff] %v5332_v25  ;;  %v3446_v18 = vpop.f32.mrb[197].mxu0  ;;  %v3445_v49 = vadd.f32 %v3444_v12, %v5887_v47 }
 0x946   : > { %v3447_v44 = vadd.f32 %v3446_v18, %v7570_v51  ;;  %v3448_v45 = vpop.f32.mrb[198].mxu0 }
 0x947   : > { %v5334_v27 = vpop.eup %5333  ;;  %v3450_v34 = vpop.f32.mrb[199].mxu0  ;;  %v3449_v22 = vadd.f32 %v3448_v45, %v5887_v47 }
 0x948   : > { %v5336_v61 = vpop.eup %5335  ;;  %4297 = vst [vmem:[%s6164_s19 + $0x168] sm:$0xff] %v5334_v27  ;;  %v3533_v59 = vmul.f32 1.442695, %v3447_v44  ;;  %v3451_v42 = vadd.f32 %v3450_v34, %v7570_v51 }
 0x949   : > { %4296 = vst [vmem:[%s6164_s19 + $0x160] sm:$0xff] %v5336_v61  ;;  %v3519_v61 = vld [vmem:[%s5882_s9 + $0x1b0] sm:$0xff] }
 0x94a   : > { %5345 = vpow2.f32 %v3533_v59  ;;  %v3535_v1 = vmul.f32 1.442695, %v3451_v42 }
 0x94b   : > { %v5338_v5 = vpop.eup %5337 }
 0x94c   : > { %v5340_v36 = vpop.eup %5339  ;;  %4299 = vst [vmem:[%s6164_s19 + $0x178] sm:$0xff] %v5338_v5  ;;  %5347 = vpow2.f32 %v3535_v1  ;;  %v3454_v38 = vpop.f32.mrb[200].mxu0  ;;  %v3520_v5 = vld [vmem:[%s5882_s9 + $0x1b8] sm:$0xff] }
 0x94d   : > { %v5342_v39 = vpop.eup %5341  ;;  %4298 = vst [vmem:[%s6164_s19 + $0x170] sm:$0xff] %v5340_v36  ;;  %v3456_v0 = vpop.f32.mrb[201].mxu0  ;;  %v3455_v3 = vadd.f32 %v3454_v38, %v5887_v47 }
 0x94e   : > { %v5344_v57 = vpop.eup %5343  ;;  %v3561_v7 = vmul.f32 %v5342_v39, %v3513_v33  ;;  %v3457_v56 = vadd.f32 %v3456_v0, %v7570_v51  ;;  %v3458_v23 = vpop.f32.mrb[202].mxu0 }
 0x94f   : > { %v3562_v24 = vmul.f32 %v5344_v57, %v3514_v2  ;;  %v3460_v40 = vpop.f32.mrb[203].mxu0  ;;  %v3459_v25 = vadd.f32 %v3458_v23, %v5887_v47 }
 0x950   : > { %v3537_v58 = vmul.f32 1.442695, %v3457_v56  ;;  %v3461_v11 = vadd.f32 %v3460_v40, %v7570_v51  ;;  %v3577_v26 = vadd.f32 %v3561_v7, %v3435_v4 }
 0x951   : > { %v7184_v9 = vadd.f32 %v3562_v24, %v3439_v63 }
 0x952   : > { %5349 = vpow2.f32 %v3537_v58  ;;  %v3539_v21 = vmul.f32 1.442695, %v3461_v11  ;;  %3593 = vst.msk [vmem:[%s5896_s14 + $0x180] sm:$0xff] %vm1514_vm1, %v3577_v26  ;;  %4709 = vmatprep.mubr.msk.f32.mxu0 %vm1514_vm1, %v3577_v26  ;;  %v3521_v58 = vld [vmem:[%s5882_s9 + $0x1c0] sm:$0xff] }
 0x953   : > { %3594 = vst.msk [vmem:[%s5896_s14 + $0x188] sm:$0xff] %vm1514_vm1, %v7184_v9  ;;  %v4877_v19 = vpack.c.bf16 %v7184_v9, %v3577_v26 }
 0x954   : > { %v5346_v31 = vpop.eup %5345  ;;  %5351 = vpow2.f32 %v3539_v21  ;;  %v3464_v54 = vpop.f32.mrb[204].mxu0  ;;  %v3522_v21 = vld [vmem:[%s5882_s9 + $0x1c8] sm:$0xff] }
 0x955   : > { %v3563_v43 = vmul.f32 %v5346_v31, %v3515_v17  ;;  %v3466_v14 = vpop.f32.mrb[205].mxu0  ;;  %4879 = vmatprep.subr.msk.bf16.mxu0 %vm5908_vm2, %v4877_v19  ;;  %4925 = vmatprep.subr.msk.bf16.mxu1 %vm5908_vm2, %v4877_v19  ;;  %v3465_v36 = vadd.f32 %v3464_v54, %v5887_v47 }
 0x956   : > { %v5348_v20 = vpop.eup %5347  ;;  %v3467_v35 = vadd.f32 %v3466_v14, %v7570_v51  ;;  %v3468_v52 = vpop.f32.mrb[206].mxu0  ;;  %4882 = vmatpush3.bf16.xpose.msk.msra.mxu0 %vm5908_vm2, %v4877_v19  ;;  %4933 = vmatpush3.bf16.xpose.msk.msra.mxu1 %vm5908_vm2, %v4877_v19 }
 0x957   : > { %v3564_v6 = vmul.f32 %v5348_v20, %v3516_v30  ;;  %v3470_v53 = vpop.f32.mrb[207].mxu0  ;;  %v7206_v62 = vadd.f32 %v3563_v43, %v3445_v49  ;;  %v3469_v4 = vadd.f32 %v3468_v52, %v5887_v47 }
 0x958   : > { %v3541_v41 = vmul.f32 1.442695, %v3467_v35  ;;  %v3471_v48 = vadd.f32 %v3470_v53, %v7570_v51 }
 0x959   : > { %v7209_v16 = vadd.f32 %v3564_v6, %v3449_v22  ;;  %3595 = vst.msk [vmem:[%s5896_s14 + $0x190] sm:$0xff] %vm1514_vm1, %v7206_v62 }
 0x95a   : > { %5353 = vpow2.f32 %v3541_v41  ;;  %v3543_v28 = vmul.f32 1.442695, %v3471_v48  ;;  %v3523_v48 = vld [vmem:[%s5882_s9 + $0x1d0] sm:$0xff] }
 0x95b   : > { %3596 = vst.msk [vmem:[%s5896_s14 + $0x198] sm:$0xff] %vm1514_vm1, %v7209_v16  ;;  %v4883_v8 = vpack.c.bf16 %v7209_v16, %v7206_v62 }
 0x95c   : > { %v5350_v37 = vpop.eup %5349  ;;  %5355 = vpow2.f32 %v3543_v28  ;;  %v3474_v10 = vpop.f32.mrb[208].mxu0 }
 0x95d   : > { %v3565_v60 = vmul.f32 %v5350_v37, %v3517_v50  ;;  %v3476_v13 = vpop.f32.mrb[209].mxu0  ;;  %4885 = vmatprep.subr.msk.bf16.mxu0 %vm5908_vm2, %v4883_v8  ;;  %4926 = vmatprep.subr.msk.bf16.mxu1 %vm5908_vm2, %v4883_v8  ;;  %v3475_v31 = vadd.f32 %v3474_v10, %v5887_v47  ;;  %v3524_v37 = vld [vmem:[%s5882_s9 + $0x1d8] sm:$0xff] }
 0x95e   : > { %v5352_v55 = vpop.eup %5351  ;;  %v3477_v15 = vadd.f32 %v3476_v13, %v7570_v51  ;;  %v3478_v29 = vpop.f32.mrb[210].mxu0  ;;  %4888 = vmatpush3.bf16.xpose.msk.msra.mxu0 %vm5908_vm2, %v4883_v8  ;;  %4934 = vmatpush3.bf16.xpose.msk.msra.mxu1 %vm5908_vm2, %v4883_v8 }
 0x95f   : > { %v3566_v12 = vmul.f32 %v5352_v55, %v3518_v32  ;;  %v3480_v18 = vpop.f32.mrb[211].mxu0  ;;  %v7232_v44 = vadd.f32 %v3565_v60, %v3455_v3  ;;  %v3479_v20 = vadd.f32 %v3478_v29, %v5887_v47 }
 0x960   : > { %v3545_v45 = vmul.f32 1.442695, %v3477_v15  ;;  %v3481_v27 = vadd.f32 %v3480_v18, %v7570_v51 }
 0x961   : > { %v7235_v34 = vadd.f32 %v3566_v12, %v3459_v25  ;;  %3597 = vst.msk [vmem:[%s5896_s14 + $0x1a0] sm:$0xff] %vm1514_vm1, %v7232_v44 }
 0x962   : > { %5357 = vpow2.f32 %v3545_v45  ;;  %v3547_v59 = vmul.f32 1.442695, %v3481_v27 }
 0x963   : > { %3598 = vst.msk [vmem:[%s5896_s14 + $0x1a8] sm:$0xff] %vm1514_vm1, %v7235_v34  ;;  %v4889_v42 = vpack.c.bf16 %v7235_v34, %v7232_v44 }
 0x964   : > { %v5354_v1 = vpop.eup %5353  ;;  %5359 = vpow2.f32 %v3547_v59  ;;  %v3484_v33 = vpop.f32.mrb[212].mxu0  ;;  %v3525_v59 = vld [vmem:[%s5882_s9 + $0x1e0] sm:$0xff] }
 0x965   : > { %v3567_v2 = vmul.f32 %v5354_v1, %v3519_v61  ;;  %v3486_v38 = vpop.f32.mrb[213].mxu0  ;;  %4891 = vmatprep.subr.msk.bf16.mxu0 %vm5908_vm2, %v4889_v42  ;;  %4927 = vmatprep.subr.msk.bf16.mxu1 %vm5908_vm2, %v4889_v42  ;;  %v3485_v10 = vadd.f32 %v3484_v33, %v5887_v47  ;;  %v3526_v33 = vld [vmem:[%s5882_s9 + $0x1e8] sm:$0xff] }
 0x966   : > { %v5356_v39 = vpop.eup %5355  ;;  %v3487_v0 = vadd.f32 %v3486_v38, %v7570_v51  ;;  %v3488_v57 = vpop.f32.mrb[214].mxu0  ;;  %4894 = vmatpush3.bf16.xpose.msk.msra.mxu0 %vm5908_vm2, %v4889_v42  ;;  %4935 = vmatpush3.bf16.xpose.msk.msra.mxu1 %vm5908_vm2, %v4889_v42 }
 0x967   : > { %v3568_v7 = vmul.f32 %v5356_v39, %v3520_v5  ;;  %v3490_v56 = vpop.f32.mrb[215].mxu0  ;;  %v3583_v23 = vadd.f32 %v3567_v2, %v3465_v36  ;;  %v3489_v29 = vadd.f32 %v3488_v57, %v5887_v47 }
 0x968   : > { %v3549_v63 = vmul.f32 1.442695, %v3487_v0  ;;  %v3491_v24 = vadd.f32 %v3490_v56, %v7570_v51 }
 0x969   : > { %v7259_v40 = vadd.f32 %v3568_v7, %v3469_v4  ;;  %3599 = vst.msk [vmem:[%s5896_s14 + $0x1b0] sm:$0xff] %vm1514_vm1, %v3583_v23  ;;  %4718 = vmatprep.mubr.msk.f32.mxu1 %vm1514_vm1, %v3583_v23  ;;  %v3527_v4 = vld [vmem:[%s5882_s9 + $0x1f0] sm:$0xff] }
 0x96a   : > { %5361 = vpow2.f32 %v3549_v63  ;;  %v3551_v11 = vmul.f32 1.442695, %v3491_v24 }
 0x96b   : > { %3600 = vst.msk [vmem:[%s5896_s14 + $0x1b8] sm:$0xff] %vm1514_vm1, %v7259_v40  ;;  %v4895_v26 = vpack.c.bf16 %v7259_v40, %v3583_v23  ;;  %v3528_v23 = vld [vmem:[%s5882_s9 + $0x1f8] sm:$0xff]  ;;  %s5441_s9 = sshll.u32 %s5502_s29, 4  ;;  %s5442_s9 = int_to_ptr.vmem [resolvable:$false] %s5441_s9 }
 0x96c   : > { %v5358_v17 = vpop.eup %5357  ;;  %5363 = vpow2.f32 %v3551_v11  ;;  %v3494_v19 = vpop.f32.mrb[216].mxu0  ;;  %s5443_s15 = scalar_lea.vmem %s5442_s9, 16384  ;;  %p5444_p1 = scmp.lt.s32.totalorder %s7394_s17, %s5442_s9 }
 0x96d   : > { %v3569_v30 = vmul.f32 %v5358_v17, %v3521_v58  ;;  %v3496_v54 = vpop.f32.mrb[217].mxu0  ;;  %4897 = vmatprep.subr.msk.bf16.mxu0 %vm5908_vm2, %v4895_v26  ;;  %4928 = vmatprep.subr.msk.bf16.mxu1 %vm5908_vm2, %v4895_v26  ;;  %v3495_v36 = vadd.f32 %v3494_v19, %v5887_v47  ;;  %p5445_p2 = scmp.lt.s32.totalorder %s5443_s15, %s5437_s28 }
 0x96e   : > { %v5360_v49 = vpop.eup %5359  ;;  %v3497_v43 = vadd.f32 %v3496_v54, %v7570_v51  ;;  %v3498_v14 = vpop.f32.mrb[218].mxu0  ;;  %4900 = vmatpush3.bf16.xpose.msk.msra.mxu0 %vm5908_vm2, %v4895_v26  ;;  %4936 = vmatpush3.bf16.xpose.msk.msra.mxu1 %vm5908_vm2, %v4895_v26 }
 0x96f   : > { %v3570_v35 = vmul.f32 %v5360_v49, %v3522_v21  ;;  %v3500_v52 = vpop.f32.mrb[219].mxu0  ;;  %v7281_v22 = vadd.f32 %v3569_v30, %v3475_v31  ;;  %v3499_v38 = vadd.f32 %v3498_v14, %v5887_v47  ;;  %p5446_p3 = por %p5445_p2, %p5444_p1 }
 0x970   : > { %v3553_v6 = vmul.f32 1.442695, %v3497_v43  ;;  %v3501_v53 = vadd.f32 %v3500_v52, %v7570_v51 }
 0x971   : > { %v7284_v41 = vadd.f32 %v3570_v35, %v3479_v20  ;;  %3601 = vst.msk [vmem:[%s5896_s14 + $0x1c0] sm:$0xff] %vm1514_vm1, %v7281_v22  ;;  %p5447_p4 = pnand %p5446_p3, %p5440_p0 }
 0x972   : > { %5365 = vpow2.f32 %v3553_v6  ;;  %v3555_v50 = vmul.f32 1.442695, %v3501_v53 }
 0x973   : > { %3602 = vst.msk [vmem:[%s5896_s14 + $0x1c8] sm:$0xff] %vm1514_vm1, %v7284_v41  ;;  %v4901_v28 = vpack.c.bf16 %v7284_v41, %v7281_v22 }
 0x974   : > { %v5362_v8 = vpop.eup %5361  ;;  %5367 = vpow2.f32 %v3555_v50  ;;  %v3504_v32 = vpop.f32.mrb[220].mxu0 }
 0x975   : > { %v3571_v3 = vmul.f32 %v5362_v8, %v3523_v48  ;;  %v3506_v60 = vpop.f32.mrb[221].mxu0  ;;  %4903 = vmatprep.subr.msk.bf16.mxu0 %vm5908_vm2, %v4901_v28  ;;  %4929 = vmatprep.subr.msk.bf16.mxu1 %vm5908_vm2, %v4901_v28  ;;  %v3505_v63 = vadd.f32 %v3504_v32, %v5887_v47 }
 0x976   : > { %v5364_v13 = vpop.eup %5363  ;;  %v3507_v55 = vadd.f32 %v3506_v60, %v7570_v51  ;;  %v3508_v15 = vpop.f32.mrb[222].mxu0  ;;  %4906 = vmatpush3.bf16.xpose.msk.msra.mxu0 %vm5908_vm2, %v4901_v28  ;;  %4937 = vmatpush3.bf16.xpose.msk.msra.mxu1 %vm5908_vm2, %v4901_v28 }
 0x977   : > { %v3572_v25 = vmul.f32 %v5364_v13, %v3524_v37  ;;  %v3510_v12 = vpop.f32.mrb[223].mxu0  ;;  %v3587_v18 = vadd.f32 %v3571_v3, %v3485_v10  ;;  %v3509_v11 = vadd.f32 %v3508_v15, %v5887_v47 }
 0x978   : > { %v3557_v45 = vmul.f32 1.442695, %v3507_v55  ;;  %v3511_v27 = vadd.f32 %v3510_v12, %v7570_v51 }
 0x979   : > { %v3588_v61 = vadd.f32 %v3572_v25, %v3489_v29  ;;  %3603 = vst.msk [vmem:[%s5896_s14 + $0x1d0] sm:$0xff] %vm1514_vm1, %v3587_v18 }
 0x97a   : > { %5369 = vpow2.f32 %v3557_v45  ;;  %v3559_v42 = vmul.f32 1.442695, %v3511_v27 }
 0x97b   : > { %3604 = vst.msk [vmem:[%s5896_s14 + $0x1d8] sm:$0xff] %vm1514_vm1, %v3588_v61  ;;  %v4907_v1 = vpack.c.bf16 %v3588_v61, %v3587_v18 }
 0x97c   : > { %v5366_v5 = vpop.eup %5365  ;;  %5371 = vpow2.f32 %v3559_v42 }
 0x97d   : > { %v3573_v2 = vmul.f32 %v5366_v5, %v3525_v59  ;;  %4909 = vmatprep.subr.msk.bf16.mxu0 %vm5908_vm2, %v4907_v1  ;;  %4930 = vmatprep.subr.msk.bf16.mxu1 %vm5908_vm2, %v4907_v1 }
 0x97e   : > { %v5368_v51 = vpop.eup %5367  ;;  %4912 = vmatpush3.bf16.xpose.msk.msra.mxu0 %vm5908_vm2, %v4907_v1  ;;  %4938 = vmatpush3.bf16.xpose.msk.msra.mxu1 %vm5908_vm2, %v4907_v1 }
 0x97f   : > { %v3574_v39 = vmul.f32 %v5368_v51, %v3526_v33  ;;  %v3589_v0 = vadd.f32 %v3573_v2, %v3495_v36 }
 0x981   : > { %v3590_v57 = vadd.f32 %v3574_v39, %v3499_v38  ;;  %3605 = vst.msk [vmem:[%s5896_s14 + $0x1e0] sm:$0xff] %vm1514_vm1, %v3589_v0 }
 0x983   : > { %3606 = vst.msk [vmem:[%s5896_s14 + $0x1e8] sm:$0xff] %vm1514_vm1, %v3590_v57  ;;  %v4913_v7 = vpack.c.bf16 %v3590_v57, %v3589_v0 }
 0x984   : > { %v5370_v56 = vpop.eup %5369 }
 0x985   : > { %v3575_v24 = vmul.f32 %v5370_v56, %v3527_v4  ;;  %4915 = vmatprep.subr.msk.bf16.mxu0 %vm5908_vm2, %v4913_v7  ;;  %4931 = vmatprep.subr.msk.bf16.mxu1 %vm5908_vm2, %v4913_v7 }
 0x986   : > { %v5372_v58 = vpop.eup %5371  ;;  %4918 = vmatpush3.bf16.xpose.msk.msra.mxu0 %vm5908_vm2, %v4913_v7  ;;  %4939 = vmatpush3.bf16.xpose.msk.msra.mxu1 %vm5908_vm2, %v4913_v7 }
 0x987   : > { %v3576_v26 = vmul.f32 %v5372_v58, %v3528_v23  ;;  %v3591_v17 = vadd.f32 %v3575_v24, %v3505_v63 }
 0x989   : > { %v3592_v21 = vadd.f32 %v3576_v26, %v3509_v11  ;;  %3607 = vst.msk [vmem:[%s5896_s14 + $0x1f0] sm:$0xff] %vm1514_vm1, %v3591_v17 }
 0x98b   : > { %3608 = vst.msk [vmem:[%s5896_s14 + $0x1f8] sm:$0xff] %vm1514_vm1, %v3592_v21  ;;  %v4919_v19 = vpack.c.bf16 %v3592_v21, %v3591_v17 }
 0x98d   : > { %4921 = vmatprep.subr.msk.bf16.mxu0 %vm5908_vm2, %v4919_v19  ;;  %4932 = vmatprep.subr.msk.bf16.mxu1 %vm5908_vm2, %v4919_v19 }
 0x98e   : > { %4924 = vmatpush3.bf16.xpose.msk.msra.mxu0 %vm5908_vm2, %v4919_v19  ;;  %4940 = vmatpush3.bf16.xpose.msk.msra.mxu1 %vm5908_vm2, %v4919_v19 }
 0x995   : > { %4710 = vmatmul.mubr.msk.f32.vlgmr.msra.gmra.mrb[224].mxu0 %vm1514_vm1, %v7184_v9  ;;  %4719 = vmatmul.mubr.msk.f32.vlgmr.msra.gmra.mrb[208].mxu1 %vm1514_vm1, %v7259_v40 }
 0x996   : > { %4712 = vmatprep.mubr.msk.f32.mxu0 %vm1514_vm1, %v7206_v62  ;;  %4721 = vmatprep.mubr.msk.f32.mxu1 %vm1514_vm1, %v7281_v22 }
 0x999   : > { %4713 = vmatmul.mubr.msk.f32.gmra.mrb[226].mxu0 %vm1514_vm1, %v7209_v16  ;;  %4722 = vmatmul.mubr.msk.f32.gmra.mrb[210].mxu1 %vm1514_vm1, %v7284_v41 }
 0x99a   : > { %4715 = vmatprep.mubr.msk.f32.mxu0 %vm1514_vm1, %v7232_v44  ;;  %4724 = vmatprep.mubr.msk.f32.mxu1 %vm1514_vm1, %v3587_v18 }
 0x99d   : > { %4716 = vmatmul.mubr.msk.f32.gmra.mrb[228].mxu0 %vm1514_vm1, %v7235_v34  ;;  %4725 = vmatmul.mubr.msk.f32.gmra.mrb[212].mxu1 %vm1514_vm1, %v3588_v61 }
 0x99e   : > { %4727 = vmatprep.mubr.msk.f32.mxu1 %vm1514_vm1, %v3589_v0 }
 0x9a1   : > { %4728 = vmatmul.mubr.msk.f32.gmra.mrb[214].mxu1 %vm1514_vm1, %v3590_v57 }
 0x9a2   : > { %4730 = vmatprep.mubr.msk.f32.mxu1 %vm1514_vm1, %v3591_v17 }
 0x9a5   : > { %4731 = vmatmul.mubr.msk.f32.gmra.mrb[216].mxu1 %vm1514_vm1, %v3592_v21 }
 0xa68   : > { %v4711_v47 = vpop.f32.mrb[224].mxu0  ;;  %v4720_v46 = vpop.f32.mrb[208].mxu1 }
 0xa69   : > { %v3803_v9 = vsub.f32 0.0, %v4711_v47  ;;  %v3723_v62 = vpop.f32.mrb[225].mxu0  ;;  %v3809_v16 = vsub.f32 0.0, %v4720_v46  ;;  %v3753_v44 = vpop.f32.mrb[209].mxu1 }
 0xa6a   : > { %v3802_v40 = vsub.f32 0.0, %v3723_v62  ;;  %v3808_v31 = vsub.f32 0.0, %v3753_v44 }
 0xa6b   : > { %v3820_v30 = vmul.f32 1.442695, %v3803_v9  ;;  %v3832_v34 = vmul.f32 1.442695, %v3809_v16 }
 0xa6c   : > { %v3818_v54 = vmul.f32 1.442695, %v3802_v40  ;;  %v4714_v49 = vpop.f32.mrb[226].mxu0  ;;  %v3830_v43 = vmul.f32 1.442695, %v3808_v31  ;;  %v4723_v14 = vpop.f32.mrb[210].mxu1 }
 0xa6d   : > { %5373 = vpow2.f32 %v3820_v30  ;;  %v3805_v20 = vsub.f32 0.0, %v4714_v49  ;;  %v3733_v35 = vpop.f32.mrb[227].mxu0  ;;  %v3811_v52 = vsub.f32 0.0, %v4723_v14  ;;  %v3763_v22 = vpop.f32.mrb[211].mxu1 }
 0xa6e   : > { %5375 = vpow2.f32 %v3818_v54  ;;  %v3804_v6 = vsub.f32 0.0, %v3733_v35  ;;  %v3810_v53 = vsub.f32 0.0, %v3763_v22 }
 0xa6f   : > { %v3824_v41 = vmul.f32 1.442695, %v3805_v20  ;;  %5377 = vpow2.f32 %v3832_v34  ;;  %v3836_v48 = vmul.f32 1.442695, %v3811_v52 }
 0xa70   : > { %v3822_v50 = vmul.f32 1.442695, %v3804_v6  ;;  %v4717_v28 = vpop.f32.mrb[228].mxu0  ;;  %5379 = vpow2.f32 %v3830_v43  ;;  %v3834_v8 = vmul.f32 1.442695, %v3810_v53  ;;  %v4726_v37 = vpop.f32.mrb[212].mxu1 }
 0xa71   : > { %5381 = vpow2.f32 %v3824_v41  ;;  %v3807_v32 = vsub.f32 0.0, %v4717_v28  ;;  %v3743_v10 = vpop.f32.mrb[229].mxu0  ;;  %v3813_v3 = vsub.f32 0.0, %v4726_v37  ;;  %v3773_v60 = vpop.f32.mrb[213].mxu1 }
 0xa72   : > { %5383 = vpow2.f32 %v3822_v50  ;;  %v3806_v13 = vsub.f32 0.0, %v3743_v10  ;;  %v3812_v55 = vsub.f32 0.0, %v3773_v60 }
 0xa73   : > { %v3828_v15 = vmul.f32 1.442695, %v3807_v32  ;;  %5385 = vpow2.f32 %v3836_v48  ;;  %v3840_v29 = vmul.f32 1.442695, %v3813_v3 }
 0xa74   : > { %v3826_v25 = vmul.f32 1.442695, %v3806_v13  ;;  %5387 = vpow2.f32 %v3834_v8  ;;  %v3838_v12 = vmul.f32 1.442695, %v3812_v55  ;;  %v4729_v18 = vpop.f32.mrb[214].mxu1 }
 0xa75   : > { %5389 = vpow2.f32 %v3828_v15  ;;  %v3815_v45 = vsub.f32 0.0, %v4729_v18  ;;  %v3783_v27 = vpop.f32.mrb[215].mxu1 }
 0xa76   : > { %5391 = vpow2.f32 %v3826_v25  ;;  %v3814_v11 = vsub.f32 0.0, %v3783_v27 }
 0xa77   : > { %v5374_v61 = vpop.eup %5373  ;;  %5393 = vpow2.f32 %v3840_v29  ;;  %v3844_v59 = vmul.f32 1.442695, %v3815_v45 }
 0xa78   : > { %v5376_v42 = vpop.eup %5375  ;;  %v3851_v1 = vadd.f32 1.0, %v5374_v61  ;;  %5395 = vpow2.f32 %v3838_v12  ;;  %v4732_v5 = vpop.f32.mrb[216].mxu1  ;;  %v3842_v40 = vmul.f32 1.442695, %v3814_v11 }
 0xa79   : > { %v5378_v33 = vpop.eup %5377  ;;  %v3850_v36 = vadd.f32 1.0, %v5376_v42  ;;  %5397 = vpow2.f32 %v3844_v59  ;;  %v3793_v2 = vpop.f32.mrb[217].mxu1  ;;  %v3817_v21 = vsub.f32 0.0, %v4732_v5 }
 0xa7a   : > { %v5380_v51 = vpop.eup %5379  ;;  %5399 = vrcp.f32 %v3851_v1  ;;  %v3857_v38 = vadd.f32 1.0, %v5378_v33  ;;  %v3816_v46 = vsub.f32 0.0, %v3793_v2 }
 0xa7b   : > { %v5382_v39 = vpop.eup %5381  ;;  %5401 = vrcp.f32 %v3850_v36  ;;  %v3856_v0 = vadd.f32 1.0, %v5380_v51  ;;  %v3848_v34 = vmul.f32 1.442695, %v3817_v21 }
 0xa7c   : > { %v5384_v57 = vpop.eup %5383  ;;  %v3853_v4 = vadd.f32 1.0, %v5382_v39  ;;  %5403 = vrcp.f32 %v3857_v38  ;;  %v3846_v49 = vmul.f32 1.442695, %v3816_v46 }
 0xa7d   : > { %v5386_v7 = vpop.eup %5385  ;;  %v3852_v56 = vadd.f32 1.0, %v5384_v57  ;;  %5405 = vrcp.f32 %v3856_v0 }
 0xa7e   : > { %v5388_v23 = vpop.eup %5387  ;;  %5407 = vrcp.f32 %v3853_v4  ;;  %v3859_v63 = vadd.f32 1.0, %v5386_v7 }
 0xa7f   : > { %v5390_v24 = vpop.eup %5389  ;;  %5409 = vrcp.f32 %v3852_v56  ;;  %v3858_v58 = vadd.f32 1.0, %v5388_v23 }
 0xa80   : > { %v5392_v26 = vpop.eup %5391  ;;  %v3855_v17 = vadd.f32 1.0, %v5390_v24  ;;  %5411 = vrcp.f32 %v3859_v63 }
 0xa81   : > { %v5394_v19 = vpop.eup %5393  ;;  %v3854_v47 = vadd.f32 1.0, %v5392_v26  ;;  %5413 = vrcp.f32 %v3858_v58 }
 0xa82   : > { %v5396_v9 = vpop.eup %5395  ;;  %5415 = vrcp.f32 %v3855_v17  ;;  %v3861_v62 = vadd.f32 1.0, %v5394_v19 }
 0xa83   : > { %v5398_v16 = vpop.eup %5397  ;;  %5417 = vrcp.f32 %v3854_v47  ;;  %v3860_v44 = vadd.f32 1.0, %v5396_v9 }
 0xa84   : > { %v5400_v31 = vpop.eup %5399  ;;  %5419 = vrcp.f32 %v3861_v62  ;;  %v3863_v30 = vadd.f32 1.0, %v5398_v16 }
 0xa85   : > { %v5402_v54 = vpop.eup %5401  ;;  %4357 = vst [vmem:[%s6164_s19 + $0x188] sm:$0xff] %v5400_v31  ;;  %5421 = vrcp.f32 %v3860_v44 }
 0xa86   : > { %v5404_v43 = vpop.eup %5403  ;;  %4356 = vst [vmem:[%s6164_s19 + $0x180] sm:$0xff] %v5402_v54  ;;  %5423 = vrcp.f32 %v3863_v30 }
 0xa87   : > { %v5406_v14 = vpop.eup %5405  ;;  %4363 = vst [vmem:[%s6164_s19 + $0x1b8] sm:$0xff] %v5404_v43  ;;  %5425 = vpow2.f32 %v3842_v40 }
 0xa88   : > { %v5408_v20 = vpop.eup %5407  ;;  %4362 = vst [vmem:[%s6164_s19 + $0x1b0] sm:$0xff] %v5406_v14  ;;  %5427 = vpow2.f32 %v3848_v34 }
 0xa89   : > { %v5410_v35 = vpop.eup %5409  ;;  %4359 = vst [vmem:[%s6164_s19 + $0x198] sm:$0xff] %v5408_v20  ;;  %5429 = vpow2.f32 %v3846_v49 }
 0xa8a   : > { %v5412_v52 = vpop.eup %5411  ;;  %4358 = vst [vmem:[%s6164_s19 + $0x190] sm:$0xff] %v5410_v35 }
 0xa8b   : > { %v5414_v22 = vpop.eup %5413  ;;  %4365 = vst [vmem:[%s6164_s19 + $0x1c8] sm:$0xff] %v5412_v52 }
 0xa8c   : > { %v5416_v6 = vpop.eup %5415  ;;  %4364 = vst [vmem:[%s6164_s19 + $0x1c0] sm:$0xff] %v5414_v22 }
 0xa8d   : > { %v5418_v53 = vpop.eup %5417  ;;  %4361 = vst [vmem:[%s6164_s19 + $0x1a8] sm:$0xff] %v5416_v6 }
 0xa8e   : > { %v5420_v41 = vpop.eup %5419  ;;  %4360 = vst [vmem:[%s6164_s19 + $0x1a0] sm:$0xff] %v5418_v53 }
 0xa8f   : > { %v5422_v48 = vpop.eup %5421  ;;  %4367 = vst [vmem:[%s6164_s19 + $0x1d8] sm:$0xff] %v5420_v41 }
 0xa90   : > { %v5424_v50 = vpop.eup %5423  ;;  %4366 = vst [vmem:[%s6164_s19 + $0x1d0] sm:$0xff] %v5422_v48 }
 0xa91   : > { %v5426_v28 = vpop.eup %5425  ;;  %4369 = vst [vmem:[%s6164_s19 + $0x1e8] sm:$0xff] %v5424_v50 }
 0xa92   : > { %v5428_v8 = vpop.eup %5427  ;;  %v3862_v37 = vadd.f32 1.0, %v5426_v28 }
 0xa93   : > { %v5430_v32 = vpop.eup %5429  ;;  %v3865_v10 = vadd.f32 1.0, %v5428_v8 }
 0xa94   : > { %5431 = vrcp.f32 %v3862_v37  ;;  %v3864_v3 = vadd.f32 1.0, %v5430_v32 }
 0xa95   : > { %5433 = vrcp.f32 %v3865_v10 }
 0xa96   : > { %5435 = vrcp.f32 %v3864_v3 }
 0xa9e   : > { %v5432_v60 = vpop.eup %5431 }
 0xa9f   : > { %v5434_v13 = vpop.eup %5433  ;;  %4368 = vst [vmem:[%s6164_s19 + $0x1e0] sm:$0xff] %v5432_v60 }
 0xaa0   : > { %v5436_v55 = vpop.eup %5435  ;;  %4371 = vst [vmem:[%s6164_s19 + $0x1f8] sm:$0xff] %v5434_v13 }
 0xaa1   : > { %4370 = vst [vmem:[%s6164_s19 + $0x1f0] sm:$0xff] %v5436_v55 }
 0xaa2   : > { %5450 = shalt.err (!%p5447_p4)
}
 0xaa3   : > { %s5451_s13 = scalar_lea.hbm %s7392_s22, 8192  ;;  %s5455_s18 = scalar_lea.hbm %s7449_s7, 16384 }
 0xaa4   : > { %p5452_p7 = scmp.ne.s32.totalorder %s7392_s22, %s5451_s13  ;;  %p5456_p10 = scmp.lt.u32.totalorder %s7392_s22, %s7449_s7 }
 0xaa5   : > { %p5457_p11 = scmp.lt.u32.totalorder %s5455_s18, %s5451_s13  ;;  %p5459_p13 = scmp.lt.u32.totalorder %s5451_s13, %s7392_s22 }
 0xaa6   : > { %p5453_p8 = pnand %p5452_p7, %p5583_p5 }
 0xaa7   : > { %p5458_p12 = por %p5457_p11, %p5456_p10 }
 0xaa8   : > { %p5454_p9 = pneg %p5453_p8 }
 0xaa9   : > { %p5460_p0 = por %p5459_p13, %p5458_p12 }
 0xaab   : > { %p5461_p1 = pnand %p5460_p0, %p5454_p9 }
 0xaad   : > { %5464 = shalt.err (!%p5461_p1)
}
 0xaae   : > { %s5503_s20 = smov 128   ;;  %s5504_s21 = smov 8  }
 0xaaf   : > { %4941 = dma.vmem_to_hbm [thread:$0]  (%p5583_p5), %s7394_s17, 8192, %s7392_s22, %s7401_s23, %s5503_s20, %s5503_s20, %s5504_s21  }
 0xab0 PF: > { %p4947_p2 = scmp.ge.s32.totalorder %s5499_s27, 2  ;;  %s3946_s28 = sand.u32 1, %s5487_s24  }
 0xab1   : > { %s3947_s29 = scalar_lea.sflag [#allocation3], %s3946_s28 }
 0xab2   : > { %p4944_p3 = pnand %p4947_p2, %p5587_p6 }
 0xab4   : > { %5482 = dma.done.wait (!%p4944_p3), %s3947_s29, 8192  }
 0xab5   : > { %5484 = vsyncadd (!%p4944_p3), %s3947_s29, 4294959104  ;;  %p18_p4 = scmp.ge.s32.totalorder %s5570_s30, 4   ;;  %s7571_s24 = smov %s5491_s25 }
 0xab6   : > { %s7572_s25 = smov %s5495_s26  ;;  %s7573_s26 = smov %s5581_s10 }
 0xab7   : > { %s7574_s27 = smov %s5570_s30  ;;  %20 = sbr.rel (!%p18_p4) target bundleno = 3 (0x3), region = 103 }
 0xabe   :  { %3952 = vsyncpa [#allocation3], 1 }
 0xabf   :  { %3954 = vsyncpa [#allocation3 + $0x1], 1 }

</bundles_post_ra>
